<compile_context>
chip_gen: v7x
topology: tpu7x:2x2x1
jax: 0.10.0
libtpu: 0.0.40
codegen_flags: <defaults>
</compile_context>

<pallas_src>
import jax
import jax.numpy as jnp
from jax.experimental import pallas as pl
from jax.experimental.pallas import tpu as pltpu

OBS_DIM = 2
LATENT_DIM = 4
RNN_HIDDEN = 32
ODE_HIDDEN = 32
DEC_HIDDEN = 32
BATCH = 2
SEQ = 8


# ---------------------------------------------------------------------------
# Static slab layout: one weight slab + one bias slab (2 parameter DMAs).
# Row offsets are 8-aligned so every static slice starts on a sublane boundary.
# ---------------------------------------------------------------------------
def _round_up(x, m):
    return ((x + m - 1) // m) * m


_W_SHAPES = (
    ("w_xh",   (OBS_DIM,    RNN_HIDDEN)),
    ("w_hh",   (RNN_HIDDEN, RNN_HIDDEN)),
    ("w_head", (RNN_HIDDEN, 2 * LATENT_DIM)),
    ("wf1",    (LATENT_DIM, ODE_HIDDEN)),
    ("wf2",    (ODE_HIDDEN, ODE_HIDDEN)),
    ("wf3",    (ODE_HIDDEN, LATENT_DIM)),
    ("wd1",    (LATENT_DIM, DEC_HIDDEN)),
    ("wd2",    (DEC_HIDDEN, OBS_DIM)),
)
_W_DIMS = dict(_W_SHAPES)
_SLAB_COLS = max(c for _, (_, c) in _W_SHAPES)  # 32

_W_OFFSETS = {}
_row = 0
for _name, (_r, _c) in _W_SHAPES:
    _W_OFFSETS[_name] = _row
    _row = _round_up(_row + _r, 8)
_W_SLAB_ROWS = _row  # 184

_B_SHAPES = (
    ("b_h",    RNN_HIDDEN),
    ("b_head", 2 * LATENT_DIM),
    ("bf1",    ODE_HIDDEN),
    ("bf2",    ODE_HIDDEN),
    ("bf3",    LATENT_DIM),
    ("bd1",    DEC_HIDDEN),
    ("bd2",    OBS_DIM),
)
_B_DIMS = dict(_B_SHAPES)
_B_ROW = {name: i for i, (name, _) in enumerate(_B_SHAPES)}
_B_SLAB_ROWS = len(_B_SHAPES)


def vae_kernel(x_ref, eps_ref, w_ref, b_ref, xhat_ref, mv_ref):
    f32 = jnp.float32
    TB = x_ref.shape[0]                  # T * B (time-major rows)
    B = eps_ref.shape[0]
    T = TB // B
    L = LATENT_DIM

    # ---- static slab slices (cheap sub-view loads, all offsets 8-aligned) ---
    def w(name):
        r, c = _W_DIMS[name]
        off = _W_OFFSETS[name]
        return w_ref[off:off + r, 0:c]

    def b(name):
        c = _B_DIMS[name]
        i = _B_ROW[name]
        return b_ref[i:i + 1, 0:c]       # (1, c): implicit broadcast in adds

    w_xh = w("w_xh"); w_hh = w("w_hh"); w_head = w("w_head")
    wf1 = w("wf1"); wf2 = w("wf2"); wf3 = w("wf3")
    wd1 = w("wd1"); wd2 = w("wd2")
    b_h = b("b_h"); b_head = b("b_head")
    bf1 = b("bf1"); bf2 = b("bf2"); bf3 = b("bf3")
    bd1 = b("bd1"); bd2 = b("bd2")

    # ---- recognition RNN (tanh), processed in reverse time -----------------
    # Input projection for ALL timesteps in one batched matmul; the serial
    # recurrence then needs only one h @ w_hh per step.
    u_flat = jnp.dot(x_ref[...], w_xh, preferred_element_type=f32) + b_h

    h = jnp.zeros((B, RNN_HIDDEN), f32)
    for t in range(T):                   # fully unrolled, static indices
        rt = T - 1 - t
        u_t = u_flat[rt * B:(rt + 1) * B, :]
        h = jnp.tanh(u_t + jnp.dot(h, w_hh, preferred_element_type=f32))

    # ---- fused mean / logvar head (single matmul, single output store) -----
    mv = jnp.dot(h, w_head, preferred_element_type=f32) + b_head
    mv_ref[...] = mv

    z0_mean = mv[:, :L]
    z0_logvar = mv[:, L:]

    # ---- reparameterization -------------------------------------------------
    z0 = z0_mean + jnp.exp(0.5 * z0_logvar) * eps_ref[...]

    # ---- latent ODE dynamics: ELU MLP (time-invariant) ----------------------
    def elu(v):
        # exp argument clamped so the unselected branch stays finite.
        return jnp.where(v > 0, v, jnp.exp(jnp.minimum(v, 0.0)) - 1.0)

    def ode_f(z):
        h1 = elu(jnp.dot(z, wf1, preferred_element_type=f32) + bf1)
        h2 = elu(jnp.dot(h1, wf2, preferred_element_type=f32) + bf2)
        return jnp.dot(h2, wf3, preferred_element_type=f32) + bf3

    # TODO(synk): torchdiffeq's default adaptive dopri5 solver has no clean
    # Pallas equivalent; a fixed-step RK4 on the same linspace(0,1,T) grid is
    # used instead.
    dt = 1.0 / (T - 1)
    z = z0
    z_steps = [z0]                       # trajectory kept entirely in vregs
    for _ in range(T - 1):               # fully unrolled, static indices
        k1 = ode_f(z)
        k2 = ode_f(z + (0.5 * dt) * k1)
        k3 = ode_f(z + (0.5 * dt) * k2)
        k4 = ode_f(z + dt * k3)
        z = z + (dt / 6.0) * (k1 + 2.0 * k2 + 2.0 * k3 + k4)
        z_steps.append(z)

    # ---- decoder: ReLU MLP, batched over all T*B rows, one bulk store -------
    z_all = jnp.concatenate(z_steps, axis=0)            # (T*B, L), time-major
    hd = jnp.maximum(jnp.dot(z_all, wd1, preferred_element_type=f32) + bd1,
                     0.0)
    xhat_ref[...] = (jnp.dot(hd, wd2, preferred_element_type=f32)
                     + bd2).astype(xhat_ref.dtype)


def init_params(key):
    ks = jax.random.split(key, 9)
    s = 0.1
    f32 = jnp.float32
    return {
        # recognition RNN (i2h split into input / hidden parts + two heads)
        "w_xh": s * jax.random.normal(ks[0], (OBS_DIM, RNN_HIDDEN), f32),
        "w_hh": s * jax.random.normal(ks[1], (RNN_HIDDEN, RNN_HIDDEN), f32),
        "b_h": jnp.zeros((1, RNN_HIDDEN), f32),
        "w_hm": s * jax.random.normal(ks[2], (RNN_HIDDEN, LATENT_DIM), f32),
        "b_m": jnp.zeros((1, LATENT_DIM), f32),
        "w_hv": s * jax.random.normal(ks[3], (RNN_HIDDEN, LATENT_DIM), f32),
        "b_v": jnp.zeros((1, LATENT_DIM), f32),
        # ode_func MLP
        "wf1": s * jax.random.normal(ks[4], (LATENT_DIM, ODE_HIDDEN), f32),
        "bf1": jnp.zeros((1, ODE_HIDDEN), f32),
        "wf2": s * jax.random.normal(ks[5], (ODE_HIDDEN, ODE_HIDDEN), f32),
        "bf2": jnp.zeros((1, ODE_HIDDEN), f32),
        "wf3": s * jax.random.normal(ks[6], (ODE_HIDDEN, LATENT_DIM), f32),
        "bf3": jnp.zeros((1, LATENT_DIM), f32),
        # decoder MLP
        "wd1": s * jax.random.normal(ks[7], (LATENT_DIM, DEC_HIDDEN), f32),
        "bd1": jnp.zeros((1, DEC_HIDDEN), f32),
        "wd2": s * jax.random.normal(ks[8], (DEC_HIDDEN, OBS_DIM), f32),
        "bd2": jnp.zeros((1, OBS_DIM), f32),
    }


def _pack_weight_slab(params, w_head):
    tensors = dict(params)
    tensors["w_head"] = w_head
    slab = jnp.zeros((_W_SLAB_ROWS, _SLAB_COLS), jnp.float32)
    for name, (r, c) in _W_SHAPES:
        off = _W_OFFSETS[name]
        slab = slab.at[off:off + r, 0:c].set(tensors[name].astype(jnp.float32))
    return slab


def _pack_bias_slab(params, b_head):
    tensors = dict(params)
    tensors["b_head"] = b_head
    slab = jnp.zeros((_B_SLAB_ROWS, _SLAB_COLS), jnp.float32)
    for name, c in _B_SHAPES:
        i = _B_ROW[name]
        slab = slab.at[i:i + 1, 0:c].set(tensors[name].astype(jnp.float32))
    return slab


@jax.jit
def vae_forward(x_btd, eps, params):
    """x_btd: (B, T, obs_dim). Returns (x_hat (T,B,obs_dim), z0_mean, z0_logvar)."""
    B, T, D = x_btd.shape
    assert T >= 2, "need at least 2 time points for the ODE time grid"

    # Time-major flattened input rows (row = t*B + b); in-kernel projection is
    # then a single batched matmul with no reshapes.
    x_flat = jnp.transpose(x_btd, (1, 0, 2)).reshape(T * B, D).astype(jnp.float32)

    # Fuse the two recognition heads into one weight / bias (one matmul),
    # then pack all parameters into two contiguous slabs (2 DMAs total).
    w_head = jnp.concatenate([params["w_hm"], params["w_hv"]], axis=1)
    b_head = jnp.concatenate([params["b_m"], params["b_v"]], axis=1)
    w_slab = _pack_weight_slab(params, w_head)
    b_slab = _pack_bias_slab(params, b_head)

    vmem = lambda: pl.BlockSpec(memory_space=pltpu.MemorySpace.VMEM)

    out_shape = (
        jax.ShapeDtypeStruct((T * B, D), jnp.float32),             # x_hat flat
        jax.ShapeDtypeStruct((B, 2 * LATENT_DIM), jnp.float32),    # mean|logvar
    )
    xhat_flat, mv = pl.pallas_call(
        vae_kernel,
        out_shape=out_shape,
        in_specs=[vmem(), vmem(), vmem(), vmem()],
        out_specs=(vmem(), vmem()),
    )(x_flat, eps.astype(jnp.float32), w_slab, b_slab)

    x_hat = xhat_flat.reshape(T, B, D)        # free metadata reshape
    z0_mean = mv[:, :LATENT_DIM]              # free slices in the wrapper
    z0_logvar = mv[:, LATENT_DIM:]
    return x_hat, z0_mean, z0_logvar


if __name__ == "__main__":
    key = jax.random.PRNGKey(0)
    k_x, k_eps, k_p = jax.random.split(key, 3)

    x = jax.random.normal(k_x, (BATCH, SEQ, OBS_DIM), jnp.float32)
    # epsilon for reparameterization (torch.randn equivalent, sampled here
    # deterministically and fed to the kernel)
    eps = jax.random.normal(k_eps, (BATCH, LATENT_DIM), jnp.float32)
    params = init_params(k_p)

    x_hat, z0_mean, z0_logvar = vae_forward(x, eps, params)
    jax.block_until_ready((x_hat, z0_mean, z0_logvar))

    assert x_hat.shape == (SEQ, BATCH, OBS_DIM)
    assert z0_mean.shape == (BATCH, LATENT_DIM)
    assert z0_logvar.shape == (BATCH, LATENT_DIM)
    assert bool(jnp.all(jnp.isfinite(x_hat)))
    assert bool(jnp.all(jnp.isfinite(z0_mean)))
    assert bool(jnp.all(jnp.isfinite(z0_logvar)))

    print("KERNEL_OK")
</pallas_src>

<mosaic_0001>
module attributes {stable_mosaic.version = 11 : i64} {
  func.func @vae_kernel(%arg0: memref<16x2xf32, #tpu.memory_space<vmem>>, %arg1: memref<2x4xf32, #tpu.memory_space<vmem>>, %arg2: memref<184x32xf32, #tpu.memory_space<vmem>>, %arg3: memref<7x32xf32, #tpu.memory_space<vmem>>, %arg4: memref<16x2xf32, #tpu.memory_space<vmem>>, %arg5: memref<2x8xf32, #tpu.memory_space<vmem>>) attributes {dimension_semantics = [], scalar_prefetch = 0 : i64, scratch_operands = 0 : i64, tpu.core_type = #tpu.core_type<tc>} {
    %c0 = arith.constant 0 : index
    %c0_0 = arith.constant 0 : index
    %0 = vector.load %arg2[%c0, %c0_0] : memref<184x32xf32, #tpu.memory_space<vmem>>, vector<2x32xf32>
    %c8 = arith.constant 8 : index
    %c0_1 = arith.constant 0 : index
    %1 = vector.load %arg2[%c8, %c0_1] : memref<184x32xf32, #tpu.memory_space<vmem>>, vector<32x32xf32>
    %c40 = arith.constant 40 : index
    %c0_2 = arith.constant 0 : index
    %2 = vector.load %arg2[%c40, %c0_2] : memref<184x32xf32, #tpu.memory_space<vmem>>, vector<32x8xf32>
    %c72 = arith.constant 72 : index
    %c0_3 = arith.constant 0 : index
    %3 = vector.load %arg2[%c72, %c0_3] : memref<184x32xf32, #tpu.memory_space<vmem>>, vector<4x32xf32>
    %c80 = arith.constant 80 : index
    %c0_4 = arith.constant 0 : index
    %4 = vector.load %arg2[%c80, %c0_4] : memref<184x32xf32, #tpu.memory_space<vmem>>, vector<32x32xf32>
    %c112 = arith.constant 112 : index
    %c0_5 = arith.constant 0 : index
    %5 = vector.load %arg2[%c112, %c0_5] : memref<184x32xf32, #tpu.memory_space<vmem>>, vector<32x4xf32>
    %c144 = arith.constant 144 : index
    %c0_6 = arith.constant 0 : index
    %6 = vector.load %arg2[%c144, %c0_6] : memref<184x32xf32, #tpu.memory_space<vmem>>, vector<4x32xf32>
    %c152 = arith.constant 152 : index
    %c0_7 = arith.constant 0 : index
    %7 = vector.load %arg2[%c152, %c0_7] : memref<184x32xf32, #tpu.memory_space<vmem>>, vector<32x2xf32>
    %c0_8 = arith.constant 0 : index
    %c0_9 = arith.constant 0 : index
    %8 = vector.load %arg3[%c0_8, %c0_9] : memref<7x32xf32, #tpu.memory_space<vmem>>, vector<1x32xf32>
    %c1 = arith.constant 1 : index
    %c0_10 = arith.constant 0 : index
    %9 = vector.load %arg3[%c1, %c0_10] : memref<7x32xf32, #tpu.memory_space<vmem>>, vector<1x8xf32>
    %c2 = arith.constant 2 : index
    %c0_11 = arith.constant 0 : index
    %10 = vector.load %arg3[%c2, %c0_11] : memref<7x32xf32, #tpu.memory_space<vmem>>, vector<1x32xf32>
    %c3 = arith.constant 3 : index
    %c0_12 = arith.constant 0 : index
    %11 = vector.load %arg3[%c3, %c0_12] : memref<7x32xf32, #tpu.memory_space<vmem>>, vector<1x32xf32>
    %c4 = arith.constant 4 : index
    %c0_13 = arith.constant 0 : index
    %12 = vector.load %arg3[%c4, %c0_13] : memref<7x32xf32, #tpu.memory_space<vmem>>, vector<1x4xf32>
    %c5 = arith.constant 5 : index
    %c0_14 = arith.constant 0 : index
    %13 = vector.load %arg3[%c5, %c0_14] : memref<7x32xf32, #tpu.memory_space<vmem>>, vector<1x32xf32>
    %c6 = arith.constant 6 : index
    %c0_15 = arith.constant 0 : index
    %14 = vector.load %arg3[%c6, %c0_15] : memref<7x32xf32, #tpu.memory_space<vmem>>, vector<1x2xf32>
    %c0_16 = arith.constant 0 : index
    %c0_17 = arith.constant 0 : index
    %15 = vector.load %arg0[%c0_16, %c0_17] : memref<16x2xf32, #tpu.memory_space<vmem>>, vector<16x2xf32>
    %cst = arith.constant dense<0.000000e+00> : vector<16x32xf32>
    %16 = tpu.matmul %15, %0, %cst {dimension_numbers = #tpu.dot_dimension_numbers<[1], [0], [0], [1], [0, 0, 1, 1], [], []>} : vector<16x2xf32>, vector<2x32xf32>, vector<16x32xf32> -> vector<16x32xf32>
    %17 = vector.broadcast %8 : vector<1x32xf32> to vector<16x32xf32>
    %18 = arith.addf %16, %17 : vector<16x32xf32>
    %cst_18 = arith.constant 0.000000e+00 : f32
    %19 = vector.broadcast %cst_18 : f32 to vector<2x32xf32>
    %20 = vector.extract_strided_slice %18 {offsets = [14, 0], sizes = [2, 32], strides = [1, 1]} : vector<16x32xf32> to vector<2x32xf32>
    %cst_19 = arith.constant dense<0.000000e+00> : vector<2x32xf32>
    %21 = tpu.matmul %19, %1, %cst_19 {dimension_numbers = #tpu.dot_dimension_numbers<[1], [0], [0], [1], [0, 0, 1, 1], [], []>} : vector<2x32xf32>, vector<32x32xf32>, vector<2x32xf32> -> vector<2x32xf32>
    %22 = arith.addf %20, %21 : vector<2x32xf32>
    %23 = math.tanh %22 : vector<2x32xf32>
    %24 = vector.extract_strided_slice %18 {offsets = [12, 0], sizes = [2, 32], strides = [1, 1]} : vector<16x32xf32> to vector<2x32xf32>
    %cst_20 = arith.constant dense<0.000000e+00> : vector<2x32xf32>
    %25 = tpu.matmul %23, %1, %cst_20 {dimension_numbers = #tpu.dot_dimension_numbers<[1], [0], [0], [1], [0, 0, 1, 1], [], []>} : vector<2x32xf32>, vector<32x32xf32>, vector<2x32xf32> -> vector<2x32xf32>
    %26 = arith.addf %24, %25 : vector<2x32xf32>
    %27 = math.tanh %26 : vector<2x32xf32>
    %28 = vector.extract_strided_slice %18 {offsets = [10, 0], sizes = [2, 32], strides = [1, 1]} : vector<16x32xf32> to vector<2x32xf32>
    %cst_21 = arith.constant dense<0.000000e+00> : vector<2x32xf32>
    %29 = tpu.matmul %27, %1, %cst_21 {dimension_numbers = #tpu.dot_dimension_numbers<[1], [0], [0], [1], [0, 0, 1, 1], [], []>} : vector<2x32xf32>, vector<32x32xf32>, vector<2x32xf32> -> vector<2x32xf32>
    %30 = arith.addf %28, %29 : vector<2x32xf32>
    %31 = math.tanh %30 : vector<2x32xf32>
    %32 = vector.extract_strided_slice %18 {offsets = [8, 0], sizes = [2, 32], strides = [1, 1]} : vector<16x32xf32> to vector<2x32xf32>
    %cst_22 = arith.constant dense<0.000000e+00> : vector<2x32xf32>
    %33 = tpu.matmul %31, %1, %cst_22 {dimension_numbers = #tpu.dot_dimension_numbers<[1], [0], [0], [1], [0, 0, 1, 1], [], []>} : vector<2x32xf32>, vector<32x32xf32>, vector<2x32xf32> -> vector<2x32xf32>
    %34 = arith.addf %32, %33 : vector<2x32xf32>
    %35 = math.tanh %34 : vector<2x32xf32>
    %36 = vector.extract_strided_slice %18 {offsets = [6, 0], sizes = [2, 32], strides = [1, 1]} : vector<16x32xf32> to vector<2x32xf32>
    %cst_23 = arith.constant dense<0.000000e+00> : vector<2x32xf32>
    %37 = tpu.matmul %35, %1, %cst_23 {dimension_numbers = #tpu.dot_dimension_numbers<[1], [0], [0], [1], [0, 0, 1, 1], [], []>} : vector<2x32xf32>, vector<32x32xf32>, vector<2x32xf32> -> vector<2x32xf32>
    %38 = arith.addf %36, %37 : vector<2x32xf32>
    %39 = math.tanh %38 : vector<2x32xf32>
    %40 = vector.extract_strided_slice %18 {offsets = [4, 0], sizes = [2, 32], strides = [1, 1]} : vector<16x32xf32> to vector<2x32xf32>
    %cst_24 = arith.constant dense<0.000000e+00> : vector<2x32xf32>
    %41 = tpu.matmul %39, %1, %cst_24 {dimension_numbers = #tpu.dot_dimension_numbers<[1], [0], [0], [1], [0, 0, 1, 1], [], []>} : vector<2x32xf32>, vector<32x32xf32>, vector<2x32xf32> -> vector<2x32xf32>
    %42 = arith.addf %40, %41 : vector<2x32xf32>
    %43 = math.tanh %42 : vector<2x32xf32>
    %44 = vector.extract_strided_slice %18 {offsets = [2, 0], sizes = [2, 32], strides = [1, 1]} : vector<16x32xf32> to vector<2x32xf32>
    %cst_25 = arith.constant dense<0.000000e+00> : vector<2x32xf32>
    %45 = tpu.matmul %43, %1, %cst_25 {dimension_numbers = #tpu.dot_dimension_numbers<[1], [0], [0], [1], [0, 0, 1, 1], [], []>} : vector<2x32xf32>, vector<32x32xf32>, vector<2x32xf32> -> vector<2x32xf32>
    %46 = arith.addf %44, %45 : vector<2x32xf32>
    %47 = math.tanh %46 : vector<2x32xf32>
    %48 = vector.extract_strided_slice %18 {offsets = [0, 0], sizes = [2, 32], strides = [1, 1]} : vector<16x32xf32> to vector<2x32xf32>
    %cst_26 = arith.constant dense<0.000000e+00> : vector<2x32xf32>
    %49 = tpu.matmul %47, %1, %cst_26 {dimension_numbers = #tpu.dot_dimension_numbers<[1], [0], [0], [1], [0, 0, 1, 1], [], []>} : vector<2x32xf32>, vector<32x32xf32>, vector<2x32xf32> -> vector<2x32xf32>
    %50 = arith.addf %48, %49 : vector<2x32xf32>
    %51 = math.tanh %50 : vector<2x32xf32>
    %cst_27 = arith.constant dense<0.000000e+00> : vector<2x8xf32>
    %52 = tpu.matmul %51, %2, %cst_27 {dimension_numbers = #tpu.dot_dimension_numbers<[1], [0], [0], [1], [0, 0, 1, 1], [], []>} : vector<2x32xf32>, vector<32x8xf32>, vector<2x8xf32> -> vector<2x8xf32>
    %53 = vector.broadcast %9 : vector<1x8xf32> to vector<2x8xf32>
    %54 = arith.addf %52, %53 : vector<2x8xf32>
    %c0_28 = arith.constant 0 : index
    %c0_29 = arith.constant 0 : index
    %55 = vector.load %arg5[%c0_28, %c0_29] : memref<2x8xf32, #tpu.memory_space<vmem>>, vector<2x8xf32>
    tpu.vector_store %arg5[%c0_28, %c0_29], %54 {strides = array<i32>} : memref<2x8xf32, #tpu.memory_space<vmem>>, vector<2x8xf32>,
    %56 = vector.extract_strided_slice %54 {offsets = [0, 0], sizes = [2, 4], strides = [1, 1]} : vector<2x8xf32> to vector<2x4xf32>
    %57 = vector.extract_strided_slice %54 {offsets = [0, 4], sizes = [2, 4], strides = [1, 1]} : vector<2x8xf32> to vector<2x4xf32>
    %cst_30 = arith.constant 5.000000e-01 : f32
    %58 = vector.broadcast %cst_30 : f32 to vector<2x4xf32>
    %59 = arith.mulf %58, %57 : vector<2x4xf32>
    %60 = math.exp %59 : vector<2x4xf32>
    %c0_31 = arith.constant 0 : index
    %c0_32 = arith.constant 0 : index
    %61 = vector.load %arg1[%c0_31, %c0_32] : memref<2x4xf32, #tpu.memory_space<vmem>>, vector<2x4xf32>
    %62 = arith.mulf %60, %61 : vector<2x4xf32>
    %63 = arith.addf %56, %62 : vector<2x4xf32>
    %cst_33 = arith.constant dense<0.000000e+00> : vector<2x32xf32>
    %64 = tpu.matmul %63, %3, %cst_33 {dimension_numbers = #tpu.dot_dimension_numbers<[1], [0], [0], [1], [0, 0, 1, 1], [], []>} : vector<2x4xf32>, vector<4x32xf32>, vector<2x32xf32> -> vector<2x32xf32>
    %65 = vector.broadcast %10 : vector<1x32xf32> to vector<2x32xf32>
    %66 = arith.addf %64, %65 : vector<2x32xf32>
    %cst_34 = arith.constant 0.000000e+00 : f32
    %67 = vector.broadcast %cst_34 : f32 to vector<2x32xf32>
    %68 = arith.cmpf ogt, %66, %67 : vector<2x32xf32>
    %cst_35 = arith.constant 0.000000e+00 : f32
    %69 = vector.broadcast %cst_35 : f32 to vector<2x32xf32>
    %70 = arith.minimumf %66, %69 : vector<2x32xf32>
    %71 = math.exp %70 : vector<2x32xf32>
    %cst_36 = arith.constant 1.000000e+00 : f32
    %72 = vector.broadcast %cst_36 : f32 to vector<2x32xf32>
    %73 = arith.subf %71, %72 : vector<2x32xf32>
    %74 = arith.select %68, %66, %73 : vector<2x32xi1>, vector<2x32xf32>
    %cst_37 = arith.constant dense<0.000000e+00> : vector<2x32xf32>
    %75 = tpu.matmul %74, %4, %cst_37 {dimension_numbers = #tpu.dot_dimension_numbers<[1], [0], [0], [1], [0, 0, 1, 1], [], []>} : vector<2x32xf32>, vector<32x32xf32>, vector<2x32xf32> -> vector<2x32xf32>
    %76 = vector.broadcast %11 : vector<1x32xf32> to vector<2x32xf32>
    %77 = arith.addf %75, %76 : vector<2x32xf32>
    %cst_38 = arith.constant 0.000000e+00 : f32
    %78 = vector.broadcast %cst_38 : f32 to vector<2x32xf32>
    %79 = arith.cmpf ogt, %77, %78 : vector<2x32xf32>
    %cst_39 = arith.constant 0.000000e+00 : f32
    %80 = vector.broadcast %cst_39 : f32 to vector<2x32xf32>
    %81 = arith.minimumf %77, %80 : vector<2x32xf32>
    %82 = math.exp %81 : vector<2x32xf32>
    %cst_40 = arith.constant 1.000000e+00 : f32
    %83 = vector.broadcast %cst_40 : f32 to vector<2x32xf32>
    %84 = arith.subf %82, %83 : vector<2x32xf32>
    %85 = arith.select %79, %77, %84 : vector<2x32xi1>, vector<2x32xf32>
    %cst_41 = arith.constant dense<0.000000e+00> : vector<2x4xf32>
    %86 = tpu.matmul %85, %5, %cst_41 {dimension_numbers = #tpu.dot_dimension_numbers<[1], [0], [0], [1], [0, 0, 1, 1], [], []>} : vector<2x32xf32>, vector<32x4xf32>, vector<2x4xf32> -> vector<2x4xf32>
    %87 = vector.broadcast %12 : vector<1x4xf32> to vector<2x4xf32>
    %88 = arith.addf %86, %87 : vector<2x4xf32>
    %cst_42 = arith.constant 0.0714285746 : f32
    %89 = vector.broadcast %cst_42 : f32 to vector<2x4xf32>
    %90 = arith.mulf %89, %88 : vector<2x4xf32>
    %91 = arith.addf %63, %90 : vector<2x4xf32>
    %cst_43 = arith.constant dense<0.000000e+00> : vector<2x32xf32>
    %92 = tpu.matmul %91, %3, %cst_43 {dimension_numbers = #tpu.dot_dimension_numbers<[1], [0], [0], [1], [0, 0, 1, 1], [], []>} : vector<2x4xf32>, vector<4x32xf32>, vector<2x32xf32> -> vector<2x32xf32>
    %93 = vector.broadcast %10 : vector<1x32xf32> to vector<2x32xf32>
    %94 = arith.addf %92, %93 : vector<2x32xf32>
    %cst_44 = arith.constant 0.000000e+00 : f32
    %95 = vector.broadcast %cst_44 : f32 to vector<2x32xf32>
    %96 = arith.cmpf ogt, %94, %95 : vector<2x32xf32>
    %cst_45 = arith.constant 0.000000e+00 : f32
    %97 = vector.broadcast %cst_45 : f32 to vector<2x32xf32>
    %98 = arith.minimumf %94, %97 : vector<2x32xf32>
    %99 = math.exp %98 : vector<2x32xf32>
    %cst_46 = arith.constant 1.000000e+00 : f32
    %100 = vector.broadcast %cst_46 : f32 to vector<2x32xf32>
    %101 = arith.subf %99, %100 : vector<2x32xf32>
    %102 = arith.select %96, %94, %101 : vector<2x32xi1>, vector<2x32xf32>
    %cst_47 = arith.constant dense<0.000000e+00> : vector<2x32xf32>
    %103 = tpu.matmul %102, %4, %cst_47 {dimension_numbers = #tpu.dot_dimension_numbers<[1], [0], [0], [1], [0, 0, 1, 1], [], []>} : vector<2x32xf32>, vector<32x32xf32>, vector<2x32xf32> -> vector<2x32xf32>
    %104 = vector.broadcast %11 : vector<1x32xf32> to vector<2x32xf32>
    %105 = arith.addf %103, %104 : vector<2x32xf32>
    %cst_48 = arith.constant 0.000000e+00 : f32
    %106 = vector.broadcast %cst_48 : f32 to vector<2x32xf32>
    %107 = arith.cmpf ogt, %105, %106 : vector<2x32xf32>
    %cst_49 = arith.constant 0.000000e+00 : f32
    %108 = vector.broadcast %cst_49 : f32 to vector<2x32xf32>
    %109 = arith.minimumf %105, %108 : vector<2x32xf32>
    %110 = math.exp %109 : vector<2x32xf32>
    %cst_50 = arith.constant 1.000000e+00 : f32
    %111 = vector.broadcast %cst_50 : f32 to vector<2x32xf32>
    %112 = arith.subf %110, %111 : vector<2x32xf32>
    %113 = arith.select %107, %105, %112 : vector<2x32xi1>, vector<2x32xf32>
    %cst_51 = arith.constant dense<0.000000e+00> : vector<2x4xf32>
    %114 = tpu.matmul %113, %5, %cst_51 {dimension_numbers = #tpu.dot_dimension_numbers<[1], [0], [0], [1], [0, 0, 1, 1], [], []>} : vector<2x32xf32>, vector<32x4xf32>, vector<2x4xf32> -> vector<2x4xf32>
    %115 = vector.broadcast %12 : vector<1x4xf32> to vector<2x4xf32>
    %116 = arith.addf %114, %115 : vector<2x4xf32>
    %cst_52 = arith.constant 0.0714285746 : f32
    %117 = vector.broadcast %cst_52 : f32 to vector<2x4xf32>
    %118 = arith.mulf %117, %116 : vector<2x4xf32>
    %119 = arith.addf %63, %118 : vector<2x4xf32>
    %cst_53 = arith.constant dense<0.000000e+00> : vector<2x32xf32>
    %120 = tpu.matmul %119, %3, %cst_53 {dimension_numbers = #tpu.dot_dimension_numbers<[1], [0], [0], [1], [0, 0, 1, 1], [], []>} : vector<2x4xf32>, vector<4x32xf32>, vector<2x32xf32> -> vector<2x32xf32>
    %121 = vector.broadcast %10 : vector<1x32xf32> to vector<2x32xf32>
    %122 = arith.addf %120, %121 : vector<2x32xf32>
    %cst_54 = arith.constant 0.000000e+00 : f32
    %123 = vector.broadcast %cst_54 : f32 to vector<2x32xf32>
    %124 = arith.cmpf ogt, %122, %123 : vector<2x32xf32>
    %cst_55 = arith.constant 0.000000e+00 : f32
    %125 = vector.broadcast %cst_55 : f32 to vector<2x32xf32>
    %126 = arith.minimumf %122, %125 : vector<2x32xf32>
    %127 = math.exp %126 : vector<2x32xf32>
    %cst_56 = arith.constant 1.000000e+00 : f32
    %128 = vector.broadcast %cst_56 : f32 to vector<2x32xf32>
    %129 = arith.subf %127, %128 : vector<2x32xf32>
    %130 = arith.select %124, %122, %129 : vector<2x32xi1>, vector<2x32xf32>
    %cst_57 = arith.constant dense<0.000000e+00> : vector<2x32xf32>
    %131 = tpu.matmul %130, %4, %cst_57 {dimension_numbers = #tpu.dot_dimension_numbers<[1], [0], [0], [1], [0, 0, 1, 1], [], []>} : vector<2x32xf32>, vector<32x32xf32>, vector<2x32xf32> -> vector<2x32xf32>
    %132 = vector.broadcast %11 : vector<1x32xf32> to vector<2x32xf32>
    %133 = arith.addf %131, %132 : vector<2x32xf32>
    %cst_58 = arith.constant 0.000000e+00 : f32
    %134 = vector.broadcast %cst_58 : f32 to vector<2x32xf32>
    %135 = arith.cmpf ogt, %133, %134 : vector<2x32xf32>
    %cst_59 = arith.constant 0.000000e+00 : f32
    %136 = vector.broadcast %cst_59 : f32 to vector<2x32xf32>
    %137 = arith.minimumf %133, %136 : vector<2x32xf32>
    %138 = math.exp %137 : vector<2x32xf32>
    %cst_60 = arith.constant 1.000000e+00 : f32
    %139 = vector.broadcast %cst_60 : f32 to vector<2x32xf32>
    %140 = arith.subf %138, %139 : vector<2x32xf32>
    %141 = arith.select %135, %133, %140 : vector<2x32xi1>, vector<2x32xf32>
    %cst_61 = arith.constant dense<0.000000e+00> : vector<2x4xf32>
    %142 = tpu.matmul %141, %5, %cst_61 {dimension_numbers = #tpu.dot_dimension_numbers<[1], [0], [0], [1], [0, 0, 1, 1], [], []>} : vector<2x32xf32>, vector<32x4xf32>, vector<2x4xf32> -> vector<2x4xf32>
    %143 = vector.broadcast %12 : vector<1x4xf32> to vector<2x4xf32>
    %144 = arith.addf %142, %143 : vector<2x4xf32>
    %cst_62 = arith.constant 0.142857149 : f32
    %145 = vector.broadcast %cst_62 : f32 to vector<2x4xf32>
    %146 = arith.mulf %145, %144 : vector<2x4xf32>
    %147 = arith.addf %63, %146 : vector<2x4xf32>
    %cst_63 = arith.constant dense<0.000000e+00> : vector<2x32xf32>
    %148 = tpu.matmul %147, %3, %cst_63 {dimension_numbers = #tpu.dot_dimension_numbers<[1], [0], [0], [1], [0, 0, 1, 1], [], []>} : vector<2x4xf32>, vector<4x32xf32>, vector<2x32xf32> -> vector<2x32xf32>
    %149 = vector.broadcast %10 : vector<1x32xf32> to vector<2x32xf32>
    %150 = arith.addf %148, %149 : vector<2x32xf32>
    %cst_64 = arith.constant 0.000000e+00 : f32
    %151 = vector.broadcast %cst_64 : f32 to vector<2x32xf32>
    %152 = arith.cmpf ogt, %150, %151 : vector<2x32xf32>
    %cst_65 = arith.constant 0.000000e+00 : f32
    %153 = vector.broadcast %cst_65 : f32 to vector<2x32xf32>
    %154 = arith.minimumf %150, %153 : vector<2x32xf32>
    %155 = math.exp %154 : vector<2x32xf32>
    %cst_66 = arith.constant 1.000000e+00 : f32
    %156 = vector.broadcast %cst_66 : f32 to vector<2x32xf32>
    %157 = arith.subf %155, %156 : vector<2x32xf32>
    %158 = arith.select %152, %150, %157 : vector<2x32xi1>, vector<2x32xf32>
    %cst_67 = arith.constant dense<0.000000e+00> : vector<2x32xf32>
    %159 = tpu.matmul %158, %4, %cst_67 {dimension_numbers = #tpu.dot_dimension_numbers<[1], [0], [0], [1], [0, 0, 1, 1], [], []>} : vector<2x32xf32>, vector<32x32xf32>, vector<2x32xf32> -> vector<2x32xf32>
    %160 = vector.broadcast %11 : vector<1x32xf32> to vector<2x32xf32>
    %161 = arith.addf %159, %160 : vector<2x32xf32>
    %cst_68 = arith.constant 0.000000e+00 : f32
    %162 = vector.broadcast %cst_68 : f32 to vector<2x32xf32>
    %163 = arith.cmpf ogt, %161, %162 : vector<2x32xf32>
    %cst_69 = arith.constant 0.000000e+00 : f32
    %164 = vector.broadcast %cst_69 : f32 to vector<2x32xf32>
    %165 = arith.minimumf %161, %164 : vector<2x32xf32>
    %166 = math.exp %165 : vector<2x32xf32>
    %cst_70 = arith.constant 1.000000e+00 : f32
    %167 = vector.broadcast %cst_70 : f32 to vector<2x32xf32>
    %168 = arith.subf %166, %167 : vector<2x32xf32>
    %169 = arith.select %163, %161, %168 : vector<2x32xi1>, vector<2x32xf32>
    %cst_71 = arith.constant dense<0.000000e+00> : vector<2x4xf32>
    %170 = tpu.matmul %169, %5, %cst_71 {dimension_numbers = #tpu.dot_dimension_numbers<[1], [0], [0], [1], [0, 0, 1, 1], [], []>} : vector<2x32xf32>, vector<32x4xf32>, vector<2x4xf32> -> vector<2x4xf32>
    %171 = vector.broadcast %12 : vector<1x4xf32> to vector<2x4xf32>
    %172 = arith.addf %170, %171 : vector<2x4xf32>
    %cst_72 = arith.constant 2.000000e+00 : f32
    %173 = vector.broadcast %cst_72 : f32 to vector<2x4xf32>
    %174 = arith.mulf %173, %116 : vector<2x4xf32>
    %175 = arith.addf %88, %174 : vector<2x4xf32>
    %cst_73 = arith.constant 2.000000e+00 : f32
    %176 = vector.broadcast %cst_73 : f32 to vector<2x4xf32>
    %177 = arith.mulf %176, %144 : vector<2x4xf32>
    %178 = arith.addf %175, %177 : vector<2x4xf32>
    %179 = arith.addf %178, %172 : vector<2x4xf32>
    %cst_74 = arith.constant 0.0238095243 : f32
    %180 = vector.broadcast %cst_74 : f32 to vector<2x4xf32>
    %181 = arith.mulf %180, %179 : vector<2x4xf32>
    %182 = arith.addf %63, %181 : vector<2x4xf32>
    %cst_75 = arith.constant dense<0.000000e+00> : vector<2x32xf32>
    %183 = tpu.matmul %182, %3, %cst_75 {dimension_numbers = #tpu.dot_dimension_numbers<[1], [0], [0], [1], [0, 0, 1, 1], [], []>} : vector<2x4xf32>, vector<4x32xf32>, vector<2x32xf32> -> vector<2x32xf32>
    %184 = vector.broadcast %10 : vector<1x32xf32> to vector<2x32xf32>
    %185 = arith.addf %183, %184 : vector<2x32xf32>
    %cst_76 = arith.constant 0.000000e+00 : f32
    %186 = vector.broadcast %cst_76 : f32 to vector<2x32xf32>
    %187 = arith.cmpf ogt, %185, %186 : vector<2x32xf32>
    %cst_77 = arith.constant 0.000000e+00 : f32
    %188 = vector.broadcast %cst_77 : f32 to vector<2x32xf32>
    %189 = arith.minimumf %185, %188 : vector<2x32xf32>
    %190 = math.exp %189 : vector<2x32xf32>
    %cst_78 = arith.constant 1.000000e+00 : f32
    %191 = vector.broadcast %cst_78 : f32 to vector<2x32xf32>
    %192 = arith.subf %190, %191 : vector<2x32xf32>
    %193 = arith.select %187, %185, %192 : vector<2x32xi1>, vector<2x32xf32>
    %cst_79 = arith.constant dense<0.000000e+00> : vector<2x32xf32>
    %194 = tpu.matmul %193, %4, %cst_79 {dimension_numbers = #tpu.dot_dimension_numbers<[1], [0], [0], [1], [0, 0, 1, 1], [], []>} : vector<2x32xf32>, vector<32x32xf32>, vector<2x32xf32> -> vector<2x32xf32>
    %195 = vector.broadcast %11 : vector<1x32xf32> to vector<2x32xf32>
    %196 = arith.addf %194, %195 : vector<2x32xf32>
    %cst_80 = arith.constant 0.000000e+00 : f32
    %197 = vector.broadcast %cst_80 : f32 to vector<2x32xf32>
    %198 = arith.cmpf ogt, %196, %197 : vector<2x32xf32>
    %cst_81 = arith.constant 0.000000e+00 : f32
    %199 = vector.broadcast %cst_81 : f32 to vector<2x32xf32>
    %200 = arith.minimumf %196, %199 : vector<2x32xf32>
    %201 = math.exp %200 : vector<2x32xf32>
    %cst_82 = arith.constant 1.000000e+00 : f32
    %202 = vector.broadcast %cst_82 : f32 to vector<2x32xf32>
    %203 = arith.subf %201, %202 : vector<2x32xf32>
    %204 = arith.select %198, %196, %203 : vector<2x32xi1>, vector<2x32xf32>
    %cst_83 = arith.constant dense<0.000000e+00> : vector<2x4xf32>
    %205 = tpu.matmul %204, %5, %cst_83 {dimension_numbers = #tpu.dot_dimension_numbers<[1], [0], [0], [1], [0, 0, 1, 1], [], []>} : vector<2x32xf32>, vector<32x4xf32>, vector<2x4xf32> -> vector<2x4xf32>
    %206 = vector.broadcast %12 : vector<1x4xf32> to vector<2x4xf32>
    %207 = arith.addf %205, %206 : vector<2x4xf32>
    %cst_84 = arith.constant 0.0714285746 : f32
    %208 = vector.broadcast %cst_84 : f32 to vector<2x4xf32>
    %209 = arith.mulf %208, %207 : vector<2x4xf32>
    %210 = arith.addf %182, %209 : vector<2x4xf32>
    %cst_85 = arith.constant dense<0.000000e+00> : vector<2x32xf32>
    %211 = tpu.matmul %210, %3, %cst_85 {dimension_numbers = #tpu.dot_dimension_numbers<[1], [0], [0], [1], [0, 0, 1, 1], [], []>} : vector<2x4xf32>, vector<4x32xf32>, vector<2x32xf32> -> vector<2x32xf32>
    %212 = vector.broadcast %10 : vector<1x32xf32> to vector<2x32xf32>
    %213 = arith.addf %211, %212 : vector<2x32xf32>
    %cst_86 = arith.constant 0.000000e+00 : f32
    %214 = vector.broadcast %cst_86 : f32 to vector<2x32xf32>
    %215 = arith.cmpf ogt, %213, %214 : vector<2x32xf32>
    %cst_87 = arith.constant 0.000000e+00 : f32
    %216 = vector.broadcast %cst_87 : f32 to vector<2x32xf32>
    %217 = arith.minimumf %213, %216 : vector<2x32xf32>
    %218 = math.exp %217 : vector<2x32xf32>
    %cst_88 = arith.constant 1.000000e+00 : f32
    %219 = vector.broadcast %cst_88 : f32 to vector<2x32xf32>
    %220 = arith.subf %218, %219 : vector<2x32xf32>
    %221 = arith.select %215, %213, %220 : vector<2x32xi1>, vector<2x32xf32>
    %cst_89 = arith.constant dense<0.000000e+00> : vector<2x32xf32>
    %222 = tpu.matmul %221, %4, %cst_89 {dimension_numbers = #tpu.dot_dimension_numbers<[1], [0], [0], [1], [0, 0, 1, 1], [], []>} : vector<2x32xf32>, vector<32x32xf32>, vector<2x32xf32> -> vector<2x32xf32>
    %223 = vector.broadcast %11 : vector<1x32xf32> to vector<2x32xf32>
    %224 = arith.addf %222, %223 : vector<2x32xf32>
    %cst_90 = arith.constant 0.000000e+00 : f32
    %225 = vector.broadcast %cst_90 : f32 to vector<2x32xf32>
    %226 = arith.cmpf ogt, %224, %225 : vector<2x32xf32>
    %cst_91 = arith.constant 0.000000e+00 : f32
    %227 = vector.broadcast %cst_91 : f32 to vector<2x32xf32>
    %228 = arith.minimumf %224, %227 : vector<2x32xf32>
    %229 = math.exp %228 : vector<2x32xf32>
    %cst_92 = arith.constant 1.000000e+00 : f32
    %230 = vector.broadcast %cst_92 : f32 to vector<2x32xf32>
    %231 = arith.subf %229, %230 : vector<2x32xf32>
    %232 = arith.select %226, %224, %231 : vector<2x32xi1>, vector<2x32xf32>
    %cst_93 = arith.constant dense<0.000000e+00> : vector<2x4xf32>
    %233 = tpu.matmul %232, %5, %cst_93 {dimension_numbers = #tpu.dot_dimension_numbers<[1], [0], [0], [1], [0, 0, 1, 1], [], []>} : vector<2x32xf32>, vector<32x4xf32>, vector<2x4xf32> -> vector<2x4xf32>
    %234 = vector.broadcast %12 : vector<1x4xf32> to vector<2x4xf32>
    %235 = arith.addf %233, %234 : vector<2x4xf32>
    %cst_94 = arith.constant 0.0714285746 : f32
    %236 = vector.broadcast %cst_94 : f32 to vector<2x4xf32>
    %237 = arith.mulf %236, %235 : vector<2x4xf32>
    %238 = arith.addf %182, %237 : vector<2x4xf32>
    %cst_95 = arith.constant dense<0.000000e+00> : vector<2x32xf32>
    %239 = tpu.matmul %238, %3, %cst_95 {dimension_numbers = #tpu.dot_dimension_numbers<[1], [0], [0], [1], [0, 0, 1, 1], [], []>} : vector<2x4xf32>, vector<4x32xf32>, vector<2x32xf32> -> vector<2x32xf32>
    %240 = vector.broadcast %10 : vector<1x32xf32> to vector<2x32xf32>
    %241 = arith.addf %239, %240 : vector<2x32xf32>
    %cst_96 = arith.constant 0.000000e+00 : f32
    %242 = vector.broadcast %cst_96 : f32 to vector<2x32xf32>
    %243 = arith.cmpf ogt, %241, %242 : vector<2x32xf32>
    %cst_97 = arith.constant 0.000000e+00 : f32
    %244 = vector.broadcast %cst_97 : f32 to vector<2x32xf32>
    %245 = arith.minimumf %241, %244 : vector<2x32xf32>
    %246 = math.exp %245 : vector<2x32xf32>
    %cst_98 = arith.constant 1.000000e+00 : f32
    %247 = vector.broadcast %cst_98 : f32 to vector<2x32xf32>
    %248 = arith.subf %246, %247 : vector<2x32xf32>
    %249 = arith.select %243, %241, %248 : vector<2x32xi1>, vector<2x32xf32>
    %cst_99 = arith.constant dense<0.000000e+00> : vector<2x32xf32>
    %250 = tpu.matmul %249, %4, %cst_99 {dimension_numbers = #tpu.dot_dimension_numbers<[1], [0], [0], [1], [0, 0, 1, 1], [], []>} : vector<2x32xf32>, vector<32x32xf32>, vector<2x32xf32> -> vector<2x32xf32>
    %251 = vector.broadcast %11 : vector<1x32xf32> to vector<2x32xf32>
    %252 = arith.addf %250, %251 : vector<2x32xf32>
    %cst_100 = arith.constant 0.000000e+00 : f32
    %253 = vector.broadcast %cst_100 : f32 to vector<2x32xf32>
    %254 = arith.cmpf ogt, %252, %253 : vector<2x32xf32>
    %cst_101 = arith.constant 0.000000e+00 : f32
    %255 = vector.broadcast %cst_101 : f32 to vector<2x32xf32>
    %256 = arith.minimumf %252, %255 : vector<2x32xf32>
    %257 = math.exp %256 : vector<2x32xf32>
    %cst_102 = arith.constant 1.000000e+00 : f32
    %258 = vector.broadcast %cst_102 : f32 to vector<2x32xf32>
    %259 = arith.subf %257, %258 : vector<2x32xf32>
    %260 = arith.select %254, %252, %259 : vector<2x32xi1>, vector<2x32xf32>
    %cst_103 = arith.constant dense<0.000000e+00> : vector<2x4xf32>
    %261 = tpu.matmul %260, %5, %cst_103 {dimension_numbers = #tpu.dot_dimension_numbers<[1], [0], [0], [1], [0, 0, 1, 1], [], []>} : vector<2x32xf32>, vector<32x4xf32>, vector<2x4xf32> -> vector<2x4xf32>
    %262 = vector.broadcast %12 : vector<1x4xf32> to vector<2x4xf32>
    %263 = arith.addf %261, %262 : vector<2x4xf32>
    %cst_104 = arith.constant 0.142857149 : f32
    %264 = vector.broadcast %cst_104 : f32 to vector<2x4xf32>
    %265 = arith.mulf %264, %263 : vector<2x4xf32>
    %266 = arith.addf %182, %265 : vector<2x4xf32>
    %cst_105 = arith.constant dense<0.000000e+00> : vector<2x32xf32>
    %267 = tpu.matmul %266, %3, %cst_105 {dimension_numbers = #tpu.dot_dimension_numbers<[1], [0], [0], [1], [0, 0, 1, 1], [], []>} : vector<2x4xf32>, vector<4x32xf32>, vector<2x32xf32> -> vector<2x32xf32>
    %268 = vector.broadcast %10 : vector<1x32xf32> to vector<2x32xf32>
    %269 = arith.addf %267, %268 : vector<2x32xf32>
    %cst_106 = arith.constant 0.000000e+00 : f32
    %270 = vector.broadcast %cst_106 : f32 to vector<2x32xf32>
    %271 = arith.cmpf ogt, %269, %270 : vector<2x32xf32>
    %cst_107 = arith.constant 0.000000e+00 : f32
    %272 = vector.broadcast %cst_107 : f32 to vector<2x32xf32>
    %273 = arith.minimumf %269, %272 : vector<2x32xf32>
    %274 = math.exp %273 : vector<2x32xf32>
    %cst_108 = arith.constant 1.000000e+00 : f32
    %275 = vector.broadcast %cst_108 : f32 to vector<2x32xf32>
    %276 = arith.subf %274, %275 : vector<2x32xf32>
    %277 = arith.select %271, %269, %276 : vector<2x32xi1>, vector<2x32xf32>
    %cst_109 = arith.constant dense<0.000000e+00> : vector<2x32xf32>
    %278 = tpu.matmul %277, %4, %cst_109 {dimension_numbers = #tpu.dot_dimension_numbers<[1], [0], [0], [1], [0, 0, 1, 1], [], []>} : vector<2x32xf32>, vector<32x32xf32>, vector<2x32xf32> -> vector<2x32xf32>
    %279 = vector.broadcast %11 : vector<1x32xf32> to vector<2x32xf32>
    %280 = arith.addf %278, %279 : vector<2x32xf32>
    %cst_110 = arith.constant 0.000000e+00 : f32
    %281 = vector.broadcast %cst_110 : f32 to vector<2x32xf32>
    %282 = arith.cmpf ogt, %280, %281 : vector<2x32xf32>
    %cst_111 = arith.constant 0.000000e+00 : f32
    %283 = vector.broadcast %cst_111 : f32 to vector<2x32xf32>
    %284 = arith.minimumf %280, %283 : vector<2x32xf32>
    %285 = math.exp %284 : vector<2x32xf32>
    %cst_112 = arith.constant 1.000000e+00 : f32
    %286 = vector.broadcast %cst_112 : f32 to vector<2x32xf32>
    %287 = arith.subf %285, %286 : vector<2x32xf32>
    %288 = arith.select %282, %280, %287 : vector<2x32xi1>, vector<2x32xf32>
    %cst_113 = arith.constant dense<0.000000e+00> : vector<2x4xf32>
    %289 = tpu.matmul %288, %5, %cst_113 {dimension_numbers = #tpu.dot_dimension_numbers<[1], [0], [0], [1], [0, 0, 1, 1], [], []>} : vector<2x32xf32>, vector<32x4xf32>, vector<2x4xf32> -> vector<2x4xf32>
    %290 = vector.broadcast %12 : vector<1x4xf32> to vector<2x4xf32>
    %291 = arith.addf %289, %290 : vector<2x4xf32>
    %cst_114 = arith.constant 2.000000e+00 : f32
    %292 = vector.broadcast %cst_114 : f32 to vector<2x4xf32>
    %293 = arith.mulf %292, %235 : vector<2x4xf32>
    %294 = arith.addf %207, %293 : vector<2x4xf32>
    %cst_115 = arith.constant 2.000000e+00 : f32
    %295 = vector.broadcast %cst_115 : f32 to vector<2x4xf32>
    %296 = arith.mulf %295, %263 : vector<2x4xf32>
    %297 = arith.addf %294, %296 : vector<2x4xf32>
    %298 = arith.addf %297, %291 : vector<2x4xf32>
    %cst_116 = arith.constant 0.0238095243 : f32
    %299 = vector.broadcast %cst_116 : f32 to vector<2x4xf32>
    %300 = arith.mulf %299, %298 : vector<2x4xf32>
    %301 = arith.addf %182, %300 : vector<2x4xf32>
    %cst_117 = arith.constant dense<0.000000e+00> : vector<2x32xf32>
    %302 = tpu.matmul %301, %3, %cst_117 {dimension_numbers = #tpu.dot_dimension_numbers<[1], [0], [0], [1], [0, 0, 1, 1], [], []>} : vector<2x4xf32>, vector<4x32xf32>, vector<2x32xf32> -> vector<2x32xf32>
    %303 = vector.broadcast %10 : vector<1x32xf32> to vector<2x32xf32>
    %304 = arith.addf %302, %303 : vector<2x32xf32>
    %cst_118 = arith.constant 0.000000e+00 : f32
    %305 = vector.broadcast %cst_118 : f32 to vector<2x32xf32>
    %306 = arith.cmpf ogt, %304, %305 : vector<2x32xf32>
    %cst_119 = arith.constant 0.000000e+00 : f32
    %307 = vector.broadcast %cst_119 : f32 to vector<2x32xf32>
    %308 = arith.minimumf %304, %307 : vector<2x32xf32>
    %309 = math.exp %308 : vector<2x32xf32>
    %cst_120 = arith.constant 1.000000e+00 : f32
    %310 = vector.broadcast %cst_120 : f32 to vector<2x32xf32>
    %311 = arith.subf %309, %310 : vector<2x32xf32>
    %312 = arith.select %306, %304, %311 : vector<2x32xi1>, vector<2x32xf32>
    %cst_121 = arith.constant dense<0.000000e+00> : vector<2x32xf32>
    %313 = tpu.matmul %312, %4, %cst_121 {dimension_numbers = #tpu.dot_dimension_numbers<[1], [0], [0], [1], [0, 0, 1, 1], [], []>} : vector<2x32xf32>, vector<32x32xf32>, vector<2x32xf32> -> vector<2x32xf32>
    %314 = vector.broadcast %11 : vector<1x32xf32> to vector<2x32xf32>
    %315 = arith.addf %313, %314 : vector<2x32xf32>
    %cst_122 = arith.constant 0.000000e+00 : f32
    %316 = vector.broadcast %cst_122 : f32 to vector<2x32xf32>
    %317 = arith.cmpf ogt, %315, %316 : vector<2x32xf32>
    %cst_123 = arith.constant 0.000000e+00 : f32
    %318 = vector.broadcast %cst_123 : f32 to vector<2x32xf32>
    %319 = arith.minimumf %315, %318 : vector<2x32xf32>
    %320 = math.exp %319 : vector<2x32xf32>
    %cst_124 = arith.constant 1.000000e+00 : f32
    %321 = vector.broadcast %cst_124 : f32 to vector<2x32xf32>
    %322 = arith.subf %320, %321 : vector<2x32xf32>
    %323 = arith.select %317, %315, %322 : vector<2x32xi1>, vector<2x32xf32>
    %cst_125 = arith.constant dense<0.000000e+00> : vector<2x4xf32>
    %324 = tpu.matmul %323, %5, %cst_125 {dimension_numbers = #tpu.dot_dimension_numbers<[1], [0], [0], [1], [0, 0, 1, 1], [], []>} : vector<2x32xf32>, vector<32x4xf32>, vector<2x4xf32> -> vector<2x4xf32>
    %325 = vector.broadcast %12 : vector<1x4xf32> to vector<2x4xf32>
    %326 = arith.addf %324, %325 : vector<2x4xf32>
    %cst_126 = arith.constant 0.0714285746 : f32
    %327 = vector.broadcast %cst_126 : f32 to vector<2x4xf32>
    %328 = arith.mulf %327, %326 : vector<2x4xf32>
    %329 = arith.addf %301, %328 : vector<2x4xf32>
    %cst_127 = arith.constant dense<0.000000e+00> : vector<2x32xf32>
    %330 = tpu.matmul %329, %3, %cst_127 {dimension_numbers = #tpu.dot_dimension_numbers<[1], [0], [0], [1], [0, 0, 1, 1], [], []>} : vector<2x4xf32>, vector<4x32xf32>, vector<2x32xf32> -> vector<2x32xf32>
    %331 = vector.broadcast %10 : vector<1x32xf32> to vector<2x32xf32>
    %332 = arith.addf %330, %331 : vector<2x32xf32>
    %cst_128 = arith.constant 0.000000e+00 : f32
    %333 = vector.broadcast %cst_128 : f32 to vector<2x32xf32>
    %334 = arith.cmpf ogt, %332, %333 : vector<2x32xf32>
    %cst_129 = arith.constant 0.000000e+00 : f32
    %335 = vector.broadcast %cst_129 : f32 to vector<2x32xf32>
    %336 = arith.minimumf %332, %335 : vector<2x32xf32>
    %337 = math.exp %336 : vector<2x32xf32>
    %cst_130 = arith.constant 1.000000e+00 : f32
    %338 = vector.broadcast %cst_130 : f32 to vector<2x32xf32>
    %339 = arith.subf %337, %338 : vector<2x32xf32>
    %340 = arith.select %334, %332, %339 : vector<2x32xi1>, vector<2x32xf32>
    %cst_131 = arith.constant dense<0.000000e+00> : vector<2x32xf32>
    %341 = tpu.matmul %340, %4, %cst_131 {dimension_numbers = #tpu.dot_dimension_numbers<[1], [0], [0], [1], [0, 0, 1, 1], [], []>} : vector<2x32xf32>, vector<32x32xf32>, vector<2x32xf32> -> vector<2x32xf32>
    %342 = vector.broadcast %11 : vector<1x32xf32> to vector<2x32xf32>
    %343 = arith.addf %341, %342 : vector<2x32xf32>
    %cst_132 = arith.constant 0.000000e+00 : f32
    %344 = vector.broadcast %cst_132 : f32 to vector<2x32xf32>
    %345 = arith.cmpf ogt, %343, %344 : vector<2x32xf32>
    %cst_133 = arith.constant 0.000000e+00 : f32
    %346 = vector.broadcast %cst_133 : f32 to vector<2x32xf32>
    %347 = arith.minimumf %343, %346 : vector<2x32xf32>
    %348 = math.exp %347 : vector<2x32xf32>
    %cst_134 = arith.constant 1.000000e+00 : f32
    %349 = vector.broadcast %cst_134 : f32 to vector<2x32xf32>
    %350 = arith.subf %348, %349 : vector<2x32xf32>
    %351 = arith.select %345, %343, %350 : vector<2x32xi1>, vector<2x32xf32>
    %cst_135 = arith.constant dense<0.000000e+00> : vector<2x4xf32>
    %352 = tpu.matmul %351, %5, %cst_135 {dimension_numbers = #tpu.dot_dimension_numbers<[1], [0], [0], [1], [0, 0, 1, 1], [], []>} : vector<2x32xf32>, vector<32x4xf32>, vector<2x4xf32> -> vector<2x4xf32>
    %353 = vector.broadcast %12 : vector<1x4xf32> to vector<2x4xf32>
    %354 = arith.addf %352, %353 : vector<2x4xf32>
    %cst_136 = arith.constant 0.0714285746 : f32
    %355 = vector.broadcast %cst_136 : f32 to vector<2x4xf32>
    %356 = arith.mulf %355, %354 : vector<2x4xf32>
    %357 = arith.addf %301, %356 : vector<2x4xf32>
    %cst_137 = arith.constant dense<0.000000e+00> : vector<2x32xf32>
    %358 = tpu.matmul %357, %3, %cst_137 {dimension_numbers = #tpu.dot_dimension_numbers<[1], [0], [0], [1], [0, 0, 1, 1], [], []>} : vector<2x4xf32>, vector<4x32xf32>, vector<2x32xf32> -> vector<2x32xf32>
    %359 = vector.broadcast %10 : vector<1x32xf32> to vector<2x32xf32>
    %360 = arith.addf %358, %359 : vector<2x32xf32>
    %cst_138 = arith.constant 0.000000e+00 : f32
    %361 = vector.broadcast %cst_138 : f32 to vector<2x32xf32>
    %362 = arith.cmpf ogt, %360, %361 : vector<2x32xf32>
    %cst_139 = arith.constant 0.000000e+00 : f32
    %363 = vector.broadcast %cst_139 : f32 to vector<2x32xf32>
    %364 = arith.minimumf %360, %363 : vector<2x32xf32>
    %365 = math.exp %364 : vector<2x32xf32>
    %cst_140 = arith.constant 1.000000e+00 : f32
    %366 = vector.broadcast %cst_140 : f32 to vector<2x32xf32>
    %367 = arith.subf %365, %366 : vector<2x32xf32>
    %368 = arith.select %362, %360, %367 : vector<2x32xi1>, vector<2x32xf32>
    %cst_141 = arith.constant dense<0.000000e+00> : vector<2x32xf32>
    %369 = tpu.matmul %368, %4, %cst_141 {dimension_numbers = #tpu.dot_dimension_numbers<[1], [0], [0], [1], [0, 0, 1, 1], [], []>} : vector<2x32xf32>, vector<32x32xf32>, vector<2x32xf32> -> vector<2x32xf32>
    %370 = vector.broadcast %11 : vector<1x32xf32> to vector<2x32xf32>
    %371 = arith.addf %369, %370 : vector<2x32xf32>
    %cst_142 = arith.constant 0.000000e+00 : f32
    %372 = vector.broadcast %cst_142 : f32 to vector<2x32xf32>
    %373 = arith.cmpf ogt, %371, %372 : vector<2x32xf32>
    %cst_143 = arith.constant 0.000000e+00 : f32
    %374 = vector.broadcast %cst_143 : f32 to vector<2x32xf32>
    %375 = arith.minimumf %371, %374 : vector<2x32xf32>
    %376 = math.exp %375 : vector<2x32xf32>
    %cst_144 = arith.constant 1.000000e+00 : f32
    %377 = vector.broadcast %cst_144 : f32 to vector<2x32xf32>
    %378 = arith.subf %376, %377 : vector<2x32xf32>
    %379 = arith.select %373, %371, %378 : vector<2x32xi1>, vector<2x32xf32>
    %cst_145 = arith.constant dense<0.000000e+00> : vector<2x4xf32>
    %380 = tpu.matmul %379, %5, %cst_145 {dimension_numbers = #tpu.dot_dimension_numbers<[1], [0], [0], [1], [0, 0, 1, 1], [], []>} : vector<2x32xf32>, vector<32x4xf32>, vector<2x4xf32> -> vector<2x4xf32>
    %381 = vector.broadcast %12 : vector<1x4xf32> to vector<2x4xf32>
    %382 = arith.addf %380, %381 : vector<2x4xf32>
    %cst_146 = arith.constant 0.142857149 : f32
    %383 = vector.broadcast %cst_146 : f32 to vector<2x4xf32>
    %384 = arith.mulf %383, %382 : vector<2x4xf32>
    %385 = arith.addf %301, %384 : vector<2x4xf32>
    %cst_147 = arith.constant dense<0.000000e+00> : vector<2x32xf32>
    %386 = tpu.matmul %385, %3, %cst_147 {dimension_numbers = #tpu.dot_dimension_numbers<[1], [0], [0], [1], [0, 0, 1, 1], [], []>} : vector<2x4xf32>, vector<4x32xf32>, vector<2x32xf32> -> vector<2x32xf32>
    %387 = vector.broadcast %10 : vector<1x32xf32> to vector<2x32xf32>
    %388 = arith.addf %386, %387 : vector<2x32xf32>
    %cst_148 = arith.constant 0.000000e+00 : f32
    %389 = vector.broadcast %cst_148 : f32 to vector<2x32xf32>
    %390 = arith.cmpf ogt, %388, %389 : vector<2x32xf32>
    %cst_149 = arith.constant 0.000000e+00 : f32
    %391 = vector.broadcast %cst_149 : f32 to vector<2x32xf32>
    %392 = arith.minimumf %388, %391 : vector<2x32xf32>
    %393 = math.exp %392 : vector<2x32xf32>
    %cst_150 = arith.constant 1.000000e+00 : f32
    %394 = vector.broadcast %cst_150 : f32 to vector<2x32xf32>
    %395 = arith.subf %393, %394 : vector<2x32xf32>
    %396 = arith.select %390, %388, %395 : vector<2x32xi1>, vector<2x32xf32>
    %cst_151 = arith.constant dense<0.000000e+00> : vector<2x32xf32>
    %397 = tpu.matmul %396, %4, %cst_151 {dimension_numbers = #tpu.dot_dimension_numbers<[1], [0], [0], [1], [0, 0, 1, 1], [], []>} : vector<2x32xf32>, vector<32x32xf32>, vector<2x32xf32> -> vector<2x32xf32>
    %398 = vector.broadcast %11 : vector<1x32xf32> to vector<2x32xf32>
    %399 = arith.addf %397, %398 : vector<2x32xf32>
    %cst_152 = arith.constant 0.000000e+00 : f32
    %400 = vector.broadcast %cst_152 : f32 to vector<2x32xf32>
    %401 = arith.cmpf ogt, %399, %400 : vector<2x32xf32>
    %cst_153 = arith.constant 0.000000e+00 : f32
    %402 = vector.broadcast %cst_153 : f32 to vector<2x32xf32>
    %403 = arith.minimumf %399, %402 : vector<2x32xf32>
    %404 = math.exp %403 : vector<2x32xf32>
    %cst_154 = arith.constant 1.000000e+00 : f32
    %405 = vector.broadcast %cst_154 : f32 to vector<2x32xf32>
    %406 = arith.subf %404, %405 : vector<2x32xf32>
    %407 = arith.select %401, %399, %406 : vector<2x32xi1>, vector<2x32xf32>
    %cst_155 = arith.constant dense<0.000000e+00> : vector<2x4xf32>
    %408 = tpu.matmul %407, %5, %cst_155 {dimension_numbers = #tpu.dot_dimension_numbers<[1], [0], [0], [1], [0, 0, 1, 1], [], []>} : vector<2x32xf32>, vector<32x4xf32>, vector<2x4xf32> -> vector<2x4xf32>
    %409 = vector.broadcast %12 : vector<1x4xf32> to vector<2x4xf32>
    %410 = arith.addf %408, %409 : vector<2x4xf32>
    %cst_156 = arith.constant 2.000000e+00 : f32
    %411 = vector.broadcast %cst_156 : f32 to vector<2x4xf32>
    %412 = arith.mulf %411, %354 : vector<2x4xf32>
    %413 = arith.addf %326, %412 : vector<2x4xf32>
    %cst_157 = arith.constant 2.000000e+00 : f32
    %414 = vector.broadcast %cst_157 : f32 to vector<2x4xf32>
    %415 = arith.mulf %414, %382 : vector<2x4xf32>
    %416 = arith.addf %413, %415 : vector<2x4xf32>
    %417 = arith.addf %416, %410 : vector<2x4xf32>
    %cst_158 = arith.constant 0.0238095243 : f32
    %418 = vector.broadcast %cst_158 : f32 to vector<2x4xf32>
    %419 = arith.mulf %418, %417 : vector<2x4xf32>
    %420 = arith.addf %301, %419 : vector<2x4xf32>
    %cst_159 = arith.constant dense<0.000000e+00> : vector<2x32xf32>
    %421 = tpu.matmul %420, %3, %cst_159 {dimension_numbers = #tpu.dot_dimension_numbers<[1], [0], [0], [1], [0, 0, 1, 1], [], []>} : vector<2x4xf32>, vector<4x32xf32>, vector<2x32xf32> -> vector<2x32xf32>
    %422 = vector.broadcast %10 : vector<1x32xf32> to vector<2x32xf32>
    %423 = arith.addf %421, %422 : vector<2x32xf32>
    %cst_160 = arith.constant 0.000000e+00 : f32
    %424 = vector.broadcast %cst_160 : f32 to vector<2x32xf32>
    %425 = arith.cmpf ogt, %423, %424 : vector<2x32xf32>
    %cst_161 = arith.constant 0.000000e+00 : f32
    %426 = vector.broadcast %cst_161 : f32 to vector<2x32xf32>
    %427 = arith.minimumf %423, %426 : vector<2x32xf32>
    %428 = math.exp %427 : vector<2x32xf32>
    %cst_162 = arith.constant 1.000000e+00 : f32
    %429 = vector.broadcast %cst_162 : f32 to vector<2x32xf32>
    %430 = arith.subf %428, %429 : vector<2x32xf32>
    %431 = arith.select %425, %423, %430 : vector<2x32xi1>, vector<2x32xf32>
    %cst_163 = arith.constant dense<0.000000e+00> : vector<2x32xf32>
    %432 = tpu.matmul %431, %4, %cst_163 {dimension_numbers = #tpu.dot_dimension_numbers<[1], [0], [0], [1], [0, 0, 1, 1], [], []>} : vector<2x32xf32>, vector<32x32xf32>, vector<2x32xf32> -> vector<2x32xf32>
    %433 = vector.broadcast %11 : vector<1x32xf32> to vector<2x32xf32>
    %434 = arith.addf %432, %433 : vector<2x32xf32>
    %cst_164 = arith.constant 0.000000e+00 : f32
    %435 = vector.broadcast %cst_164 : f32 to vector<2x32xf32>
    %436 = arith.cmpf ogt, %434, %435 : vector<2x32xf32>
    %cst_165 = arith.constant 0.000000e+00 : f32
    %437 = vector.broadcast %cst_165 : f32 to vector<2x32xf32>
    %438 = arith.minimumf %434, %437 : vector<2x32xf32>
    %439 = math.exp %438 : vector<2x32xf32>
    %cst_166 = arith.constant 1.000000e+00 : f32
    %440 = vector.broadcast %cst_166 : f32 to vector<2x32xf32>
    %441 = arith.subf %439, %440 : vector<2x32xf32>
    %442 = arith.select %436, %434, %441 : vector<2x32xi1>, vector<2x32xf32>
    %cst_167 = arith.constant dense<0.000000e+00> : vector<2x4xf32>
    %443 = tpu.matmul %442, %5, %cst_167 {dimension_numbers = #tpu.dot_dimension_numbers<[1], [0], [0], [1], [0, 0, 1, 1], [], []>} : vector<2x32xf32>, vector<32x4xf32>, vector<2x4xf32> -> vector<2x4xf32>
    %444 = vector.broadcast %12 : vector<1x4xf32> to vector<2x4xf32>
    %445 = arith.addf %443, %444 : vector<2x4xf32>
    %cst_168 = arith.constant 0.0714285746 : f32
    %446 = vector.broadcast %cst_168 : f32 to vector<2x4xf32>
    %447 = arith.mulf %446, %445 : vector<2x4xf32>
    %448 = arith.addf %420, %447 : vector<2x4xf32>
    %cst_169 = arith.constant dense<0.000000e+00> : vector<2x32xf32>
    %449 = tpu.matmul %448, %3, %cst_169 {dimension_numbers = #tpu.dot_dimension_numbers<[1], [0], [0], [1], [0, 0, 1, 1], [], []>} : vector<2x4xf32>, vector<4x32xf32>, vector<2x32xf32> -> vector<2x32xf32>
    %450 = vector.broadcast %10 : vector<1x32xf32> to vector<2x32xf32>
    %451 = arith.addf %449, %450 : vector<2x32xf32>
    %cst_170 = arith.constant 0.000000e+00 : f32
    %452 = vector.broadcast %cst_170 : f32 to vector<2x32xf32>
    %453 = arith.cmpf ogt, %451, %452 : vector<2x32xf32>
    %cst_171 = arith.constant 0.000000e+00 : f32
    %454 = vector.broadcast %cst_171 : f32 to vector<2x32xf32>
    %455 = arith.minimumf %451, %454 : vector<2x32xf32>
    %456 = math.exp %455 : vector<2x32xf32>
    %cst_172 = arith.constant 1.000000e+00 : f32
    %457 = vector.broadcast %cst_172 : f32 to vector<2x32xf32>
    %458 = arith.subf %456, %457 : vector<2x32xf32>
    %459 = arith.select %453, %451, %458 : vector<2x32xi1>, vector<2x32xf32>
    %cst_173 = arith.constant dense<0.000000e+00> : vector<2x32xf32>
    %460 = tpu.matmul %459, %4, %cst_173 {dimension_numbers = #tpu.dot_dimension_numbers<[1], [0], [0], [1], [0, 0, 1, 1], [], []>} : vector<2x32xf32>, vector<32x32xf32>, vector<2x32xf32> -> vector<2x32xf32>
    %461 = vector.broadcast %11 : vector<1x32xf32> to vector<2x32xf32>
    %462 = arith.addf %460, %461 : vector<2x32xf32>
    %cst_174 = arith.constant 0.000000e+00 : f32
    %463 = vector.broadcast %cst_174 : f32 to vector<2x32xf32>
    %464 = arith.cmpf ogt, %462, %463 : vector<2x32xf32>
    %cst_175 = arith.constant 0.000000e+00 : f32
    %465 = vector.broadcast %cst_175 : f32 to vector<2x32xf32>
    %466 = arith.minimumf %462, %465 : vector<2x32xf32>
    %467 = math.exp %466 : vector<2x32xf32>
    %cst_176 = arith.constant 1.000000e+00 : f32
    %468 = vector.broadcast %cst_176 : f32 to vector<2x32xf32>
    %469 = arith.subf %467, %468 : vector<2x32xf32>
    %470 = arith.select %464, %462, %469 : vector<2x32xi1>, vector<2x32xf32>
    %cst_177 = arith.constant dense<0.000000e+00> : vector<2x4xf32>
    %471 = tpu.matmul %470, %5, %cst_177 {dimension_numbers = #tpu.dot_dimension_numbers<[1], [0], [0], [1], [0, 0, 1, 1], [], []>} : vector<2x32xf32>, vector<32x4xf32>, vector<2x4xf32> -> vector<2x4xf32>
    %472 = vector.broadcast %12 : vector<1x4xf32> to vector<2x4xf32>
    %473 = arith.addf %471, %472 : vector<2x4xf32>
    %cst_178 = arith.constant 0.0714285746 : f32
    %474 = vector.broadcast %cst_178 : f32 to vector<2x4xf32>
    %475 = arith.mulf %474, %473 : vector<2x4xf32>
    %476 = arith.addf %420, %475 : vector<2x4xf32>
    %cst_179 = arith.constant dense<0.000000e+00> : vector<2x32xf32>
    %477 = tpu.matmul %476, %3, %cst_179 {dimension_numbers = #tpu.dot_dimension_numbers<[1], [0], [0], [1], [0, 0, 1, 1], [], []>} : vector<2x4xf32>, vector<4x32xf32>, vector<2x32xf32> -> vector<2x32xf32>
    %478 = vector.broadcast %10 : vector<1x32xf32> to vector<2x32xf32>
    %479 = arith.addf %477, %478 : vector<2x32xf32>
    %cst_180 = arith.constant 0.000000e+00 : f32
    %480 = vector.broadcast %cst_180 : f32 to vector<2x32xf32>
    %481 = arith.cmpf ogt, %479, %480 : vector<2x32xf32>
    %cst_181 = arith.constant 0.000000e+00 : f32
    %482 = vector.broadcast %cst_181 : f32 to vector<2x32xf32>
    %483 = arith.minimumf %479, %482 : vector<2x32xf32>
    %484 = math.exp %483 : vector<2x32xf32>
    %cst_182 = arith.constant 1.000000e+00 : f32
    %485 = vector.broadcast %cst_182 : f32 to vector<2x32xf32>
    %486 = arith.subf %484, %485 : vector<2x32xf32>
    %487 = arith.select %481, %479, %486 : vector<2x32xi1>, vector<2x32xf32>
    %cst_183 = arith.constant dense<0.000000e+00> : vector<2x32xf32>
    %488 = tpu.matmul %487, %4, %cst_183 {dimension_numbers = #tpu.dot_dimension_numbers<[1], [0], [0], [1], [0, 0, 1, 1], [], []>} : vector<2x32xf32>, vector<32x32xf32>, vector<2x32xf32> -> vector<2x32xf32>
    %489 = vector.broadcast %11 : vector<1x32xf32> to vector<2x32xf32>
    %490 = arith.addf %488, %489 : vector<2x32xf32>
    %cst_184 = arith.constant 0.000000e+00 : f32
    %491 = vector.broadcast %cst_184 : f32 to vector<2x32xf32>
    %492 = arith.cmpf ogt, %490, %491 : vector<2x32xf32>
    %cst_185 = arith.constant 0.000000e+00 : f32
    %493 = vector.broadcast %cst_185 : f32 to vector<2x32xf32>
    %494 = arith.minimumf %490, %493 : vector<2x32xf32>
    %495 = math.exp %494 : vector<2x32xf32>
    %cst_186 = arith.constant 1.000000e+00 : f32
    %496 = vector.broadcast %cst_186 : f32 to vector<2x32xf32>
    %497 = arith.subf %495, %496 : vector<2x32xf32>
    %498 = arith.select %492, %490, %497 : vector<2x32xi1>, vector<2x32xf32>
    %cst_187 = arith.constant dense<0.000000e+00> : vector<2x4xf32>
    %499 = tpu.matmul %498, %5, %cst_187 {dimension_numbers = #tpu.dot_dimension_numbers<[1], [0], [0], [1], [0, 0, 1, 1], [], []>} : vector<2x32xf32>, vector<32x4xf32>, vector<2x4xf32> -> vector<2x4xf32>
    %500 = vector.broadcast %12 : vector<1x4xf32> to vector<2x4xf32>
    %501 = arith.addf %499, %500 : vector<2x4xf32>
    %cst_188 = arith.constant 0.142857149 : f32
    %502 = vector.broadcast %cst_188 : f32 to vector<2x4xf32>
    %503 = arith.mulf %502, %501 : vector<2x4xf32>
    %504 = arith.addf %420, %503 : vector<2x4xf32>
    %cst_189 = arith.constant dense<0.000000e+00> : vector<2x32xf32>
    %505 = tpu.matmul %504, %3, %cst_189 {dimension_numbers = #tpu.dot_dimension_numbers<[1], [0], [0], [1], [0, 0, 1, 1], [], []>} : vector<2x4xf32>, vector<4x32xf32>, vector<2x32xf32> -> vector<2x32xf32>
    %506 = vector.broadcast %10 : vector<1x32xf32> to vector<2x32xf32>
    %507 = arith.addf %505, %506 : vector<2x32xf32>
    %cst_190 = arith.constant 0.000000e+00 : f32
    %508 = vector.broadcast %cst_190 : f32 to vector<2x32xf32>
    %509 = arith.cmpf ogt, %507, %508 : vector<2x32xf32>
    %cst_191 = arith.constant 0.000000e+00 : f32
    %510 = vector.broadcast %cst_191 : f32 to vector<2x32xf32>
    %511 = arith.minimumf %507, %510 : vector<2x32xf32>
    %512 = math.exp %511 : vector<2x32xf32>
    %cst_192 = arith.constant 1.000000e+00 : f32
    %513 = vector.broadcast %cst_192 : f32 to vector<2x32xf32>
    %514 = arith.subf %512, %513 : vector<2x32xf32>
    %515 = arith.select %509, %507, %514 : vector<2x32xi1>, vector<2x32xf32>
    %cst_193 = arith.constant dense<0.000000e+00> : vector<2x32xf32>
    %516 = tpu.matmul %515, %4, %cst_193 {dimension_numbers = #tpu.dot_dimension_numbers<[1], [0], [0], [1], [0, 0, 1, 1], [], []>} : vector<2x32xf32>, vector<32x32xf32>, vector<2x32xf32> -> vector<2x32xf32>
    %517 = vector.broadcast %11 : vector<1x32xf32> to vector<2x32xf32>
    %518 = arith.addf %516, %517 : vector<2x32xf32>
    %cst_194 = arith.constant 0.000000e+00 : f32
    %519 = vector.broadcast %cst_194 : f32 to vector<2x32xf32>
    %520 = arith.cmpf ogt, %518, %519 : vector<2x32xf32>
    %cst_195 = arith.constant 0.000000e+00 : f32
    %521 = vector.broadcast %cst_195 : f32 to vector<2x32xf32>
    %522 = arith.minimumf %518, %521 : vector<2x32xf32>
    %523 = math.exp %522 : vector<2x32xf32>
    %cst_196 = arith.constant 1.000000e+00 : f32
    %524 = vector.broadcast %cst_196 : f32 to vector<2x32xf32>
    %525 = arith.subf %523, %524 : vector<2x32xf32>
    %526 = arith.select %520, %518, %525 : vector<2x32xi1>, vector<2x32xf32>
    %cst_197 = arith.constant dense<0.000000e+00> : vector<2x4xf32>
    %527 = tpu.matmul %526, %5, %cst_197 {dimension_numbers = #tpu.dot_dimension_numbers<[1], [0], [0], [1], [0, 0, 1, 1], [], []>} : vector<2x32xf32>, vector<32x4xf32>, vector<2x4xf32> -> vector<2x4xf32>
    %528 = vector.broadcast %12 : vector<1x4xf32> to vector<2x4xf32>
    %529 = arith.addf %527, %528 : vector<2x4xf32>
    %cst_198 = arith.constant 2.000000e+00 : f32
    %530 = vector.broadcast %cst_198 : f32 to vector<2x4xf32>
    %531 = arith.mulf %530, %473 : vector<2x4xf32>
    %532 = arith.addf %445, %531 : vector<2x4xf32>
    %cst_199 = arith.constant 2.000000e+00 : f32
    %533 = vector.broadcast %cst_199 : f32 to vector<2x4xf32>
    %534 = arith.mulf %533, %501 : vector<2x4xf32>
    %535 = arith.addf %532, %534 : vector<2x4xf32>
    %536 = arith.addf %535, %529 : vector<2x4xf32>
    %cst_200 = arith.constant 0.0238095243 : f32
    %537 = vector.broadcast %cst_200 : f32 to vector<2x4xf32>
    %538 = arith.mulf %537, %536 : vector<2x4xf32>
    %539 = arith.addf %420, %538 : vector<2x4xf32>
    %cst_201 = arith.constant dense<0.000000e+00> : vector<2x32xf32>
    %540 = tpu.matmul %539, %3, %cst_201 {dimension_numbers = #tpu.dot_dimension_numbers<[1], [0], [0], [1], [0, 0, 1, 1], [], []>} : vector<2x4xf32>, vector<4x32xf32>, vector<2x32xf32> -> vector<2x32xf32>
    %541 = vector.broadcast %10 : vector<1x32xf32> to vector<2x32xf32>
    %542 = arith.addf %540, %541 : vector<2x32xf32>
    %cst_202 = arith.constant 0.000000e+00 : f32
    %543 = vector.broadcast %cst_202 : f32 to vector<2x32xf32>
    %544 = arith.cmpf ogt, %542, %543 : vector<2x32xf32>
    %cst_203 = arith.constant 0.000000e+00 : f32
    %545 = vector.broadcast %cst_203 : f32 to vector<2x32xf32>
    %546 = arith.minimumf %542, %545 : vector<2x32xf32>
    %547 = math.exp %546 : vector<2x32xf32>
    %cst_204 = arith.constant 1.000000e+00 : f32
    %548 = vector.broadcast %cst_204 : f32 to vector<2x32xf32>
    %549 = arith.subf %547, %548 : vector<2x32xf32>
    %550 = arith.select %544, %542, %549 : vector<2x32xi1>, vector<2x32xf32>
    %cst_205 = arith.constant dense<0.000000e+00> : vector<2x32xf32>
    %551 = tpu.matmul %550, %4, %cst_205 {dimension_numbers = #tpu.dot_dimension_numbers<[1], [0], [0], [1], [0, 0, 1, 1], [], []>} : vector<2x32xf32>, vector<32x32xf32>, vector<2x32xf32> -> vector<2x32xf32>
    %552 = vector.broadcast %11 : vector<1x32xf32> to vector<2x32xf32>
    %553 = arith.addf %551, %552 : vector<2x32xf32>
    %cst_206 = arith.constant 0.000000e+00 : f32
    %554 = vector.broadcast %cst_206 : f32 to vector<2x32xf32>
    %555 = arith.cmpf ogt, %553, %554 : vector<2x32xf32>
    %cst_207 = arith.constant 0.000000e+00 : f32
    %556 = vector.broadcast %cst_207 : f32 to vector<2x32xf32>
    %557 = arith.minimumf %553, %556 : vector<2x32xf32>
    %558 = math.exp %557 : vector<2x32xf32>
    %cst_208 = arith.constant 1.000000e+00 : f32
    %559 = vector.broadcast %cst_208 : f32 to vector<2x32xf32>
    %560 = arith.subf %558, %559 : vector<2x32xf32>
    %561 = arith.select %555, %553, %560 : vector<2x32xi1>, vector<2x32xf32>
    %cst_209 = arith.constant dense<0.000000e+00> : vector<2x4xf32>
    %562 = tpu.matmul %561, %5, %cst_209 {dimension_numbers = #tpu.dot_dimension_numbers<[1], [0], [0], [1], [0, 0, 1, 1], [], []>} : vector<2x32xf32>, vector<32x4xf32>, vector<2x4xf32> -> vector<2x4xf32>
    %563 = vector.broadcast %12 : vector<1x4xf32> to vector<2x4xf32>
    %564 = arith.addf %562, %563 : vector<2x4xf32>
    %cst_210 = arith.constant 0.0714285746 : f32
    %565 = vector.broadcast %cst_210 : f32 to vector<2x4xf32>
    %566 = arith.mulf %565, %564 : vector<2x4xf32>
    %567 = arith.addf %539, %566 : vector<2x4xf32>
    %cst_211 = arith.constant dense<0.000000e+00> : vector<2x32xf32>
    %568 = tpu.matmul %567, %3, %cst_211 {dimension_numbers = #tpu.dot_dimension_numbers<[1], [0], [0], [1], [0, 0, 1, 1], [], []>} : vector<2x4xf32>, vector<4x32xf32>, vector<2x32xf32> -> vector<2x32xf32>
    %569 = vector.broadcast %10 : vector<1x32xf32> to vector<2x32xf32>
    %570 = arith.addf %568, %569 : vector<2x32xf32>
    %cst_212 = arith.constant 0.000000e+00 : f32
    %571 = vector.broadcast %cst_212 : f32 to vector<2x32xf32>
    %572 = arith.cmpf ogt, %570, %571 : vector<2x32xf32>
    %cst_213 = arith.constant 0.000000e+00 : f32
    %573 = vector.broadcast %cst_213 : f32 to vector<2x32xf32>
    %574 = arith.minimumf %570, %573 : vector<2x32xf32>
    %575 = math.exp %574 : vector<2x32xf32>
    %cst_214 = arith.constant 1.000000e+00 : f32
    %576 = vector.broadcast %cst_214 : f32 to vector<2x32xf32>
    %577 = arith.subf %575, %576 : vector<2x32xf32>
    %578 = arith.select %572, %570, %577 : vector<2x32xi1>, vector<2x32xf32>
    %cst_215 = arith.constant dense<0.000000e+00> : vector<2x32xf32>
    %579 = tpu.matmul %578, %4, %cst_215 {dimension_numbers = #tpu.dot_dimension_numbers<[1], [0], [0], [1], [0, 0, 1, 1], [], []>} : vector<2x32xf32>, vector<32x32xf32>, vector<2x32xf32> -> vector<2x32xf32>
    %580 = vector.broadcast %11 : vector<1x32xf32> to vector<2x32xf32>
    %581 = arith.addf %579, %580 : vector<2x32xf32>
    %cst_216 = arith.constant 0.000000e+00 : f32
    %582 = vector.broadcast %cst_216 : f32 to vector<2x32xf32>
    %583 = arith.cmpf ogt, %581, %582 : vector<2x32xf32>
    %cst_217 = arith.constant 0.000000e+00 : f32
    %584 = vector.broadcast %cst_217 : f32 to vector<2x32xf32>
    %585 = arith.minimumf %581, %584 : vector<2x32xf32>
    %586 = math.exp %585 : vector<2x32xf32>
    %cst_218 = arith.constant 1.000000e+00 : f32
    %587 = vector.broadcast %cst_218 : f32 to vector<2x32xf32>
    %588 = arith.subf %586, %587 : vector<2x32xf32>
    %589 = arith.select %583, %581, %588 : vector<2x32xi1>, vector<2x32xf32>
    %cst_219 = arith.constant dense<0.000000e+00> : vector<2x4xf32>
    %590 = tpu.matmul %589, %5, %cst_219 {dimension_numbers = #tpu.dot_dimension_numbers<[1], [0], [0], [1], [0, 0, 1, 1], [], []>} : vector<2x32xf32>, vector<32x4xf32>, vector<2x4xf32> -> vector<2x4xf32>
    %591 = vector.broadcast %12 : vector<1x4xf32> to vector<2x4xf32>
    %592 = arith.addf %590, %591 : vector<2x4xf32>
    %cst_220 = arith.constant 0.0714285746 : f32
    %593 = vector.broadcast %cst_220 : f32 to vector<2x4xf32>
    %594 = arith.mulf %593, %592 : vector<2x4xf32>
    %595 = arith.addf %539, %594 : vector<2x4xf32>
    %cst_221 = arith.constant dense<0.000000e+00> : vector<2x32xf32>
    %596 = tpu.matmul %595, %3, %cst_221 {dimension_numbers = #tpu.dot_dimension_numbers<[1], [0], [0], [1], [0, 0, 1, 1], [], []>} : vector<2x4xf32>, vector<4x32xf32>, vector<2x32xf32> -> vector<2x32xf32>
    %597 = vector.broadcast %10 : vector<1x32xf32> to vector<2x32xf32>
    %598 = arith.addf %596, %597 : vector<2x32xf32>
    %cst_222 = arith.constant 0.000000e+00 : f32
    %599 = vector.broadcast %cst_222 : f32 to vector<2x32xf32>
    %600 = arith.cmpf ogt, %598, %599 : vector<2x32xf32>
    %cst_223 = arith.constant 0.000000e+00 : f32
    %601 = vector.broadcast %cst_223 : f32 to vector<2x32xf32>
    %602 = arith.minimumf %598, %601 : vector<2x32xf32>
    %603 = math.exp %602 : vector<2x32xf32>
    %cst_224 = arith.constant 1.000000e+00 : f32
    %604 = vector.broadcast %cst_224 : f32 to vector<2x32xf32>
    %605 = arith.subf %603, %604 : vector<2x32xf32>
    %606 = arith.select %600, %598, %605 : vector<2x32xi1>, vector<2x32xf32>
    %cst_225 = arith.constant dense<0.000000e+00> : vector<2x32xf32>
    %607 = tpu.matmul %606, %4, %cst_225 {dimension_numbers = #tpu.dot_dimension_numbers<[1], [0], [0], [1], [0, 0, 1, 1], [], []>} : vector<2x32xf32>, vector<32x32xf32>, vector<2x32xf32> -> vector<2x32xf32>
    %608 = vector.broadcast %11 : vector<1x32xf32> to vector<2x32xf32>
    %609 = arith.addf %607, %608 : vector<2x32xf32>
    %cst_226 = arith.constant 0.000000e+00 : f32
    %610 = vector.broadcast %cst_226 : f32 to vector<2x32xf32>
    %611 = arith.cmpf ogt, %609, %610 : vector<2x32xf32>
    %cst_227 = arith.constant 0.000000e+00 : f32
    %612 = vector.broadcast %cst_227 : f32 to vector<2x32xf32>
    %613 = arith.minimumf %609, %612 : vector<2x32xf32>
    %614 = math.exp %613 : vector<2x32xf32>
    %cst_228 = arith.constant 1.000000e+00 : f32
    %615 = vector.broadcast %cst_228 : f32 to vector<2x32xf32>
    %616 = arith.subf %614, %615 : vector<2x32xf32>
    %617 = arith.select %611, %609, %616 : vector<2x32xi1>, vector<2x32xf32>
    %cst_229 = arith.constant dense<0.000000e+00> : vector<2x4xf32>
    %618 = tpu.matmul %617, %5, %cst_229 {dimension_numbers = #tpu.dot_dimension_numbers<[1], [0], [0], [1], [0, 0, 1, 1], [], []>} : vector<2x32xf32>, vector<32x4xf32>, vector<2x4xf32> -> vector<2x4xf32>
    %619 = vector.broadcast %12 : vector<1x4xf32> to vector<2x4xf32>
    %620 = arith.addf %618, %619 : vector<2x4xf32>
    %cst_230 = arith.constant 0.142857149 : f32
    %621 = vector.broadcast %cst_230 : f32 to vector<2x4xf32>
    %622 = arith.mulf %621, %620 : vector<2x4xf32>
    %623 = arith.addf %539, %622 : vector<2x4xf32>
    %cst_231 = arith.constant dense<0.000000e+00> : vector<2x32xf32>
    %624 = tpu.matmul %623, %3, %cst_231 {dimension_numbers = #tpu.dot_dimension_numbers<[1], [0], [0], [1], [0, 0, 1, 1], [], []>} : vector<2x4xf32>, vector<4x32xf32>, vector<2x32xf32> -> vector<2x32xf32>
    %625 = vector.broadcast %10 : vector<1x32xf32> to vector<2x32xf32>
    %626 = arith.addf %624, %625 : vector<2x32xf32>
    %cst_232 = arith.constant 0.000000e+00 : f32
    %627 = vector.broadcast %cst_232 : f32 to vector<2x32xf32>
    %628 = arith.cmpf ogt, %626, %627 : vector<2x32xf32>
    %cst_233 = arith.constant 0.000000e+00 : f32
    %629 = vector.broadcast %cst_233 : f32 to vector<2x32xf32>
    %630 = arith.minimumf %626, %629 : vector<2x32xf32>
    %631 = math.exp %630 : vector<2x32xf32>
    %cst_234 = arith.constant 1.000000e+00 : f32
    %632 = vector.broadcast %cst_234 : f32 to vector<2x32xf32>
    %633 = arith.subf %631, %632 : vector<2x32xf32>
    %634 = arith.select %628, %626, %633 : vector<2x32xi1>, vector<2x32xf32>
    %cst_235 = arith.constant dense<0.000000e+00> : vector<2x32xf32>
    %635 = tpu.matmul %634, %4, %cst_235 {dimension_numbers = #tpu.dot_dimension_numbers<[1], [0], [0], [1], [0, 0, 1, 1], [], []>} : vector<2x32xf32>, vector<32x32xf32>, vector<2x32xf32> -> vector<2x32xf32>
    %636 = vector.broadcast %11 : vector<1x32xf32> to vector<2x32xf32>
    %637 = arith.addf %635, %636 : vector<2x32xf32>
    %cst_236 = arith.constant 0.000000e+00 : f32
    %638 = vector.broadcast %cst_236 : f32 to vector<2x32xf32>
    %639 = arith.cmpf ogt, %637, %638 : vector<2x32xf32>
    %cst_237 = arith.constant 0.000000e+00 : f32
    %640 = vector.broadcast %cst_237 : f32 to vector<2x32xf32>
    %641 = arith.minimumf %637, %640 : vector<2x32xf32>
    %642 = math.exp %641 : vector<2x32xf32>
    %cst_238 = arith.constant 1.000000e+00 : f32
    %643 = vector.broadcast %cst_238 : f32 to vector<2x32xf32>
    %644 = arith.subf %642, %643 : vector<2x32xf32>
    %645 = arith.select %639, %637, %644 : vector<2x32xi1>, vector<2x32xf32>
    %cst_239 = arith.constant dense<0.000000e+00> : vector<2x4xf32>
    %646 = tpu.matmul %645, %5, %cst_239 {dimension_numbers = #tpu.dot_dimension_numbers<[1], [0], [0], [1], [0, 0, 1, 1], [], []>} : vector<2x32xf32>, vector<32x4xf32>, vector<2x4xf32> -> vector<2x4xf32>
    %647 = vector.broadcast %12 : vector<1x4xf32> to vector<2x4xf32>
    %648 = arith.addf %646, %647 : vector<2x4xf32>
    %cst_240 = arith.constant 2.000000e+00 : f32
    %649 = vector.broadcast %cst_240 : f32 to vector<2x4xf32>
    %650 = arith.mulf %649, %592 : vector<2x4xf32>
    %651 = arith.addf %564, %650 : vector<2x4xf32>
    %cst_241 = arith.constant 2.000000e+00 : f32
    %652 = vector.broadcast %cst_241 : f32 to vector<2x4xf32>
    %653 = arith.mulf %652, %620 : vector<2x4xf32>
    %654 = arith.addf %651, %653 : vector<2x4xf32>
    %655 = arith.addf %654, %648 : vector<2x4xf32>
    %cst_242 = arith.constant 0.0238095243 : f32
    %656 = vector.broadcast %cst_242 : f32 to vector<2x4xf32>
    %657 = arith.mulf %656, %655 : vector<2x4xf32>
    %658 = arith.addf %539, %657 : vector<2x4xf32>
    %cst_243 = arith.constant dense<0.000000e+00> : vector<2x32xf32>
    %659 = tpu.matmul %658, %3, %cst_243 {dimension_numbers = #tpu.dot_dimension_numbers<[1], [0], [0], [1], [0, 0, 1, 1], [], []>} : vector<2x4xf32>, vector<4x32xf32>, vector<2x32xf32> -> vector<2x32xf32>
    %660 = vector.broadcast %10 : vector<1x32xf32> to vector<2x32xf32>
    %661 = arith.addf %659, %660 : vector<2x32xf32>
    %cst_244 = arith.constant 0.000000e+00 : f32
    %662 = vector.broadcast %cst_244 : f32 to vector<2x32xf32>
    %663 = arith.cmpf ogt, %661, %662 : vector<2x32xf32>
    %cst_245 = arith.constant 0.000000e+00 : f32
    %664 = vector.broadcast %cst_245 : f32 to vector<2x32xf32>
    %665 = arith.minimumf %661, %664 : vector<2x32xf32>
    %666 = math.exp %665 : vector<2x32xf32>
    %cst_246 = arith.constant 1.000000e+00 : f32
    %667 = vector.broadcast %cst_246 : f32 to vector<2x32xf32>
    %668 = arith.subf %666, %667 : vector<2x32xf32>
    %669 = arith.select %663, %661, %668 : vector<2x32xi1>, vector<2x32xf32>
    %cst_247 = arith.constant dense<0.000000e+00> : vector<2x32xf32>
    %670 = tpu.matmul %669, %4, %cst_247 {dimension_numbers = #tpu.dot_dimension_numbers<[1], [0], [0], [1], [0, 0, 1, 1], [], []>} : vector<2x32xf32>, vector<32x32xf32>, vector<2x32xf32> -> vector<2x32xf32>
    %671 = vector.broadcast %11 : vector<1x32xf32> to vector<2x32xf32>
    %672 = arith.addf %670, %671 : vector<2x32xf32>
    %cst_248 = arith.constant 0.000000e+00 : f32
    %673 = vector.broadcast %cst_248 : f32 to vector<2x32xf32>
    %674 = arith.cmpf ogt, %672, %673 : vector<2x32xf32>
    %cst_249 = arith.constant 0.000000e+00 : f32
    %675 = vector.broadcast %cst_249 : f32 to vector<2x32xf32>
    %676 = arith.minimumf %672, %675 : vector<2x32xf32>
    %677 = math.exp %676 : vector<2x32xf32>
    %cst_250 = arith.constant 1.000000e+00 : f32
    %678 = vector.broadcast %cst_250 : f32 to vector<2x32xf32>
    %679 = arith.subf %677, %678 : vector<2x32xf32>
    %680 = arith.select %674, %672, %679 : vector<2x32xi1>, vector<2x32xf32>
    %cst_251 = arith.constant dense<0.000000e+00> : vector<2x4xf32>
    %681 = tpu.matmul %680, %5, %cst_251 {dimension_numbers = #tpu.dot_dimension_numbers<[1], [0], [0], [1], [0, 0, 1, 1], [], []>} : vector<2x32xf32>, vector<32x4xf32>, vector<2x4xf32> -> vector<2x4xf32>
    %682 = vector.broadcast %12 : vector<1x4xf32> to vector<2x4xf32>
    %683 = arith.addf %681, %682 : vector<2x4xf32>
    %cst_252 = arith.constant 0.0714285746 : f32
    %684 = vector.broadcast %cst_252 : f32 to vector<2x4xf32>
    %685 = arith.mulf %684, %683 : vector<2x4xf32>
    %686 = arith.addf %658, %685 : vector<2x4xf32>
    %cst_253 = arith.constant dense<0.000000e+00> : vector<2x32xf32>
    %687 = tpu.matmul %686, %3, %cst_253 {dimension_numbers = #tpu.dot_dimension_numbers<[1], [0], [0], [1], [0, 0, 1, 1], [], []>} : vector<2x4xf32>, vector<4x32xf32>, vector<2x32xf32> -> vector<2x32xf32>
    %688 = vector.broadcast %10 : vector<1x32xf32> to vector<2x32xf32>
    %689 = arith.addf %687, %688 : vector<2x32xf32>
    %cst_254 = arith.constant 0.000000e+00 : f32
    %690 = vector.broadcast %cst_254 : f32 to vector<2x32xf32>
    %691 = arith.cmpf ogt, %689, %690 : vector<2x32xf32>
    %cst_255 = arith.constant 0.000000e+00 : f32
    %692 = vector.broadcast %cst_255 : f32 to vector<2x32xf32>
    %693 = arith.minimumf %689, %692 : vector<2x32xf32>
    %694 = math.exp %693 : vector<2x32xf32>
    %cst_256 = arith.constant 1.000000e+00 : f32
    %695 = vector.broadcast %cst_256 : f32 to vector<2x32xf32>
    %696 = arith.subf %694, %695 : vector<2x32xf32>
    %697 = arith.select %691, %689, %696 : vector<2x32xi1>, vector<2x32xf32>
    %cst_257 = arith.constant dense<0.000000e+00> : vector<2x32xf32>
    %698 = tpu.matmul %697, %4, %cst_257 {dimension_numbers = #tpu.dot_dimension_numbers<[1], [0], [0], [1], [0, 0, 1, 1], [], []>} : vector<2x32xf32>, vector<32x32xf32>, vector<2x32xf32> -> vector<2x32xf32>
    %699 = vector.broadcast %11 : vector<1x32xf32> to vector<2x32xf32>
    %700 = arith.addf %698, %699 : vector<2x32xf32>
    %cst_258 = arith.constant 0.000000e+00 : f32
    %701 = vector.broadcast %cst_258 : f32 to vector<2x32xf32>
    %702 = arith.cmpf ogt, %700, %701 : vector<2x32xf32>
    %cst_259 = arith.constant 0.000000e+00 : f32
    %703 = vector.broadcast %cst_259 : f32 to vector<2x32xf32>
    %704 = arith.minimumf %700, %703 : vector<2x32xf32>
    %705 = math.exp %704 : vector<2x32xf32>
    %cst_260 = arith.constant 1.000000e+00 : f32
    %706 = vector.broadcast %cst_260 : f32 to vector<2x32xf32>
    %707 = arith.subf %705, %706 : vector<2x32xf32>
    %708 = arith.select %702, %700, %707 : vector<2x32xi1>, vector<2x32xf32>
    %cst_261 = arith.constant dense<0.000000e+00> : vector<2x4xf32>
    %709 = tpu.matmul %708, %5, %cst_261 {dimension_numbers = #tpu.dot_dimension_numbers<[1], [0], [0], [1], [0, 0, 1, 1], [], []>} : vector<2x32xf32>, vector<32x4xf32>, vector<2x4xf32> -> vector<2x4xf32>
    %710 = vector.broadcast %12 : vector<1x4xf32> to vector<2x4xf32>
    %711 = arith.addf %709, %710 : vector<2x4xf32>
    %cst_262 = arith.constant 0.0714285746 : f32
    %712 = vector.broadcast %cst_262 : f32 to vector<2x4xf32>
    %713 = arith.mulf %712, %711 : vector<2x4xf32>
    %714 = arith.addf %658, %713 : vector<2x4xf32>
    %cst_263 = arith.constant dense<0.000000e+00> : vector<2x32xf32>
    %715 = tpu.matmul %714, %3, %cst_263 {dimension_numbers = #tpu.dot_dimension_numbers<[1], [0], [0], [1], [0, 0, 1, 1], [], []>} : vector<2x4xf32>, vector<4x32xf32>, vector<2x32xf32> -> vector<2x32xf32>
    %716 = vector.broadcast %10 : vector<1x32xf32> to vector<2x32xf32>
    %717 = arith.addf %715, %716 : vector<2x32xf32>
    %cst_264 = arith.constant 0.000000e+00 : f32
    %718 = vector.broadcast %cst_264 : f32 to vector<2x32xf32>
    %719 = arith.cmpf ogt, %717, %718 : vector<2x32xf32>
    %cst_265 = arith.constant 0.000000e+00 : f32
    %720 = vector.broadcast %cst_265 : f32 to vector<2x32xf32>
    %721 = arith.minimumf %717, %720 : vector<2x32xf32>
    %722 = math.exp %721 : vector<2x32xf32>
    %cst_266 = arith.constant 1.000000e+00 : f32
    %723 = vector.broadcast %cst_266 : f32 to vector<2x32xf32>
    %724 = arith.subf %722, %723 : vector<2x32xf32>
    %725 = arith.select %719, %717, %724 : vector<2x32xi1>, vector<2x32xf32>
    %cst_267 = arith.constant dense<0.000000e+00> : vector<2x32xf32>
    %726 = tpu.matmul %725, %4, %cst_267 {dimension_numbers = #tpu.dot_dimension_numbers<[1], [0], [0], [1], [0, 0, 1, 1], [], []>} : vector<2x32xf32>, vector<32x32xf32>, vector<2x32xf32> -> vector<2x32xf32>
    %727 = vector.broadcast %11 : vector<1x32xf32> to vector<2x32xf32>
    %728 = arith.addf %726, %727 : vector<2x32xf32>
    %cst_268 = arith.constant 0.000000e+00 : f32
    %729 = vector.broadcast %cst_268 : f32 to vector<2x32xf32>
    %730 = arith.cmpf ogt, %728, %729 : vector<2x32xf32>
    %cst_269 = arith.constant 0.000000e+00 : f32
    %731 = vector.broadcast %cst_269 : f32 to vector<2x32xf32>
    %732 = arith.minimumf %728, %731 : vector<2x32xf32>
    %733 = math.exp %732 : vector<2x32xf32>
    %cst_270 = arith.constant 1.000000e+00 : f32
    %734 = vector.broadcast %cst_270 : f32 to vector<2x32xf32>
    %735 = arith.subf %733, %734 : vector<2x32xf32>
    %736 = arith.select %730, %728, %735 : vector<2x32xi1>, vector<2x32xf32>
    %cst_271 = arith.constant dense<0.000000e+00> : vector<2x4xf32>
    %737 = tpu.matmul %736, %5, %cst_271 {dimension_numbers = #tpu.dot_dimension_numbers<[1], [0], [0], [1], [0, 0, 1, 1], [], []>} : vector<2x32xf32>, vector<32x4xf32>, vector<2x4xf32> -> vector<2x4xf32>
    %738 = vector.broadcast %12 : vector<1x4xf32> to vector<2x4xf32>
    %739 = arith.addf %737, %738 : vector<2x4xf32>
    %cst_272 = arith.constant 0.142857149 : f32
    %740 = vector.broadcast %cst_272 : f32 to vector<2x4xf32>
    %741 = arith.mulf %740, %739 : vector<2x4xf32>
    %742 = arith.addf %658, %741 : vector<2x4xf32>
    %cst_273 = arith.constant dense<0.000000e+00> : vector<2x32xf32>
    %743 = tpu.matmul %742, %3, %cst_273 {dimension_numbers = #tpu.dot_dimension_numbers<[1], [0], [0], [1], [0, 0, 1, 1], [], []>} : vector<2x4xf32>, vector<4x32xf32>, vector<2x32xf32> -> vector<2x32xf32>
    %744 = vector.broadcast %10 : vector<1x32xf32> to vector<2x32xf32>
    %745 = arith.addf %743, %744 : vector<2x32xf32>
    %cst_274 = arith.constant 0.000000e+00 : f32
    %746 = vector.broadcast %cst_274 : f32 to vector<2x32xf32>
    %747 = arith.cmpf ogt, %745, %746 : vector<2x32xf32>
    %cst_275 = arith.constant 0.000000e+00 : f32
    %748 = vector.broadcast %cst_275 : f32 to vector<2x32xf32>
    %749 = arith.minimumf %745, %748 : vector<2x32xf32>
    %750 = math.exp %749 : vector<2x32xf32>
    %cst_276 = arith.constant 1.000000e+00 : f32
    %751 = vector.broadcast %cst_276 : f32 to vector<2x32xf32>
    %752 = arith.subf %750, %751 : vector<2x32xf32>
    %753 = arith.select %747, %745, %752 : vector<2x32xi1>, vector<2x32xf32>
    %cst_277 = arith.constant dense<0.000000e+00> : vector<2x32xf32>
    %754 = tpu.matmul %753, %4, %cst_277 {dimension_numbers = #tpu.dot_dimension_numbers<[1], [0], [0], [1], [0, 0, 1, 1], [], []>} : vector<2x32xf32>, vector<32x32xf32>, vector<2x32xf32> -> vector<2x32xf32>
    %755 = vector.broadcast %11 : vector<1x32xf32> to vector<2x32xf32>
    %756 = arith.addf %754, %755 : vector<2x32xf32>
    %cst_278 = arith.constant 0.000000e+00 : f32
    %757 = vector.broadcast %cst_278 : f32 to vector<2x32xf32>
    %758 = arith.cmpf ogt, %756, %757 : vector<2x32xf32>
    %cst_279 = arith.constant 0.000000e+00 : f32
    %759 = vector.broadcast %cst_279 : f32 to vector<2x32xf32>
    %760 = arith.minimumf %756, %759 : vector<2x32xf32>
    %761 = math.exp %760 : vector<2x32xf32>
    %cst_280 = arith.constant 1.000000e+00 : f32
    %762 = vector.broadcast %cst_280 : f32 to vector<2x32xf32>
    %763 = arith.subf %761, %762 : vector<2x32xf32>
    %764 = arith.select %758, %756, %763 : vector<2x32xi1>, vector<2x32xf32>
    %cst_281 = arith.constant dense<0.000000e+00> : vector<2x4xf32>
    %765 = tpu.matmul %764, %5, %cst_281 {dimension_numbers = #tpu.dot_dimension_numbers<[1], [0], [0], [1], [0, 0, 1, 1], [], []>} : vector<2x32xf32>, vector<32x4xf32>, vector<2x4xf32> -> vector<2x4xf32>
    %766 = vector.broadcast %12 : vector<1x4xf32> to vector<2x4xf32>
    %767 = arith.addf %765, %766 : vector<2x4xf32>
    %cst_282 = arith.constant 2.000000e+00 : f32
    %768 = vector.broadcast %cst_282 : f32 to vector<2x4xf32>
    %769 = arith.mulf %768, %711 : vector<2x4xf32>
    %770 = arith.addf %683, %769 : vector<2x4xf32>
    %cst_283 = arith.constant 2.000000e+00 : f32
    %771 = vector.broadcast %cst_283 : f32 to vector<2x4xf32>
    %772 = arith.mulf %771, %739 : vector<2x4xf32>
    %773 = arith.addf %770, %772 : vector<2x4xf32>
    %774 = arith.addf %773, %767 : vector<2x4xf32>
    %cst_284 = arith.constant 0.0238095243 : f32
    %775 = vector.broadcast %cst_284 : f32 to vector<2x4xf32>
    %776 = arith.mulf %775, %774 : vector<2x4xf32>
    %777 = arith.addf %658, %776 : vector<2x4xf32>
    %cst_285 = arith.constant dense<0.000000e+00> : vector<2x32xf32>
    %778 = tpu.matmul %777, %3, %cst_285 {dimension_numbers = #tpu.dot_dimension_numbers<[1], [0], [0], [1], [0, 0, 1, 1], [], []>} : vector<2x4xf32>, vector<4x32xf32>, vector<2x32xf32> -> vector<2x32xf32>
    %779 = vector.broadcast %10 : vector<1x32xf32> to vector<2x32xf32>
    %780 = arith.addf %778, %779 : vector<2x32xf32>
    %cst_286 = arith.constant 0.000000e+00 : f32
    %781 = vector.broadcast %cst_286 : f32 to vector<2x32xf32>
    %782 = arith.cmpf ogt, %780, %781 : vector<2x32xf32>
    %cst_287 = arith.constant 0.000000e+00 : f32
    %783 = vector.broadcast %cst_287 : f32 to vector<2x32xf32>
    %784 = arith.minimumf %780, %783 : vector<2x32xf32>
    %785 = math.exp %784 : vector<2x32xf32>
    %cst_288 = arith.constant 1.000000e+00 : f32
    %786 = vector.broadcast %cst_288 : f32 to vector<2x32xf32>
    %787 = arith.subf %785, %786 : vector<2x32xf32>
    %788 = arith.select %782, %780, %787 : vector<2x32xi1>, vector<2x32xf32>
    %cst_289 = arith.constant dense<0.000000e+00> : vector<2x32xf32>
    %789 = tpu.matmul %788, %4, %cst_289 {dimension_numbers = #tpu.dot_dimension_numbers<[1], [0], [0], [1], [0, 0, 1, 1], [], []>} : vector<2x32xf32>, vector<32x32xf32>, vector<2x32xf32> -> vector<2x32xf32>
    %790 = vector.broadcast %11 : vector<1x32xf32> to vector<2x32xf32>
    %791 = arith.addf %789, %790 : vector<2x32xf32>
    %cst_290 = arith.constant 0.000000e+00 : f32
    %792 = vector.broadcast %cst_290 : f32 to vector<2x32xf32>
    %793 = arith.cmpf ogt, %791, %792 : vector<2x32xf32>
    %cst_291 = arith.constant 0.000000e+00 : f32
    %794 = vector.broadcast %cst_291 : f32 to vector<2x32xf32>
    %795 = arith.minimumf %791, %794 : vector<2x32xf32>
    %796 = math.exp %795 : vector<2x32xf32>
    %cst_292 = arith.constant 1.000000e+00 : f32
    %797 = vector.broadcast %cst_292 : f32 to vector<2x32xf32>
    %798 = arith.subf %796, %797 : vector<2x32xf32>
    %799 = arith.select %793, %791, %798 : vector<2x32xi1>, vector<2x32xf32>
    %cst_293 = arith.constant dense<0.000000e+00> : vector<2x4xf32>
    %800 = tpu.matmul %799, %5, %cst_293 {dimension_numbers = #tpu.dot_dimension_numbers<[1], [0], [0], [1], [0, 0, 1, 1], [], []>} : vector<2x32xf32>, vector<32x4xf32>, vector<2x4xf32> -> vector<2x4xf32>
    %801 = vector.broadcast %12 : vector<1x4xf32> to vector<2x4xf32>
    %802 = arith.addf %800, %801 : vector<2x4xf32>
    %cst_294 = arith.constant 0.0714285746 : f32
    %803 = vector.broadcast %cst_294 : f32 to vector<2x4xf32>
    %804 = arith.mulf %803, %802 : vector<2x4xf32>
    %805 = arith.addf %777, %804 : vector<2x4xf32>
    %cst_295 = arith.constant dense<0.000000e+00> : vector<2x32xf32>
    %806 = tpu.matmul %805, %3, %cst_295 {dimension_numbers = #tpu.dot_dimension_numbers<[1], [0], [0], [1], [0, 0, 1, 1], [], []>} : vector<2x4xf32>, vector<4x32xf32>, vector<2x32xf32> -> vector<2x32xf32>
    %807 = vector.broadcast %10 : vector<1x32xf32> to vector<2x32xf32>
    %808 = arith.addf %806, %807 : vector<2x32xf32>
    %cst_296 = arith.constant 0.000000e+00 : f32
    %809 = vector.broadcast %cst_296 : f32 to vector<2x32xf32>
    %810 = arith.cmpf ogt, %808, %809 : vector<2x32xf32>
    %cst_297 = arith.constant 0.000000e+00 : f32
    %811 = vector.broadcast %cst_297 : f32 to vector<2x32xf32>
    %812 = arith.minimumf %808, %811 : vector<2x32xf32>
    %813 = math.exp %812 : vector<2x32xf32>
    %cst_298 = arith.constant 1.000000e+00 : f32
    %814 = vector.broadcast %cst_298 : f32 to vector<2x32xf32>
    %815 = arith.subf %813, %814 : vector<2x32xf32>
    %816 = arith.select %810, %808, %815 : vector<2x32xi1>, vector<2x32xf32>
    %cst_299 = arith.constant dense<0.000000e+00> : vector<2x32xf32>
    %817 = tpu.matmul %816, %4, %cst_299 {dimension_numbers = #tpu.dot_dimension_numbers<[1], [0], [0], [1], [0, 0, 1, 1], [], []>} : vector<2x32xf32>, vector<32x32xf32>, vector<2x32xf32> -> vector<2x32xf32>
    %818 = vector.broadcast %11 : vector<1x32xf32> to vector<2x32xf32>
    %819 = arith.addf %817, %818 : vector<2x32xf32>
    %cst_300 = arith.constant 0.000000e+00 : f32
    %820 = vector.broadcast %cst_300 : f32 to vector<2x32xf32>
    %821 = arith.cmpf ogt, %819, %820 : vector<2x32xf32>
    %cst_301 = arith.constant 0.000000e+00 : f32
    %822 = vector.broadcast %cst_301 : f32 to vector<2x32xf32>
    %823 = arith.minimumf %819, %822 : vector<2x32xf32>
    %824 = math.exp %823 : vector<2x32xf32>
    %cst_302 = arith.constant 1.000000e+00 : f32
    %825 = vector.broadcast %cst_302 : f32 to vector<2x32xf32>
    %826 = arith.subf %824, %825 : vector<2x32xf32>
    %827 = arith.select %821, %819, %826 : vector<2x32xi1>, vector<2x32xf32>
    %cst_303 = arith.constant dense<0.000000e+00> : vector<2x4xf32>
    %828 = tpu.matmul %827, %5, %cst_303 {dimension_numbers = #tpu.dot_dimension_numbers<[1], [0], [0], [1], [0, 0, 1, 1], [], []>} : vector<2x32xf32>, vector<32x4xf32>, vector<2x4xf32> -> vector<2x4xf32>
    %829 = vector.broadcast %12 : vector<1x4xf32> to vector<2x4xf32>
    %830 = arith.addf %828, %829 : vector<2x4xf32>
    %cst_304 = arith.constant 0.0714285746 : f32
    %831 = vector.broadcast %cst_304 : f32 to vector<2x4xf32>
    %832 = arith.mulf %831, %830 : vector<2x4xf32>
    %833 = arith.addf %777, %832 : vector<2x4xf32>
    %cst_305 = arith.constant dense<0.000000e+00> : vector<2x32xf32>
    %834 = tpu.matmul %833, %3, %cst_305 {dimension_numbers = #tpu.dot_dimension_numbers<[1], [0], [0], [1], [0, 0, 1, 1], [], []>} : vector<2x4xf32>, vector<4x32xf32>, vector<2x32xf32> -> vector<2x32xf32>
    %835 = vector.broadcast %10 : vector<1x32xf32> to vector<2x32xf32>
    %836 = arith.addf %834, %835 : vector<2x32xf32>
    %cst_306 = arith.constant 0.000000e+00 : f32
    %837 = vector.broadcast %cst_306 : f32 to vector<2x32xf32>
    %838 = arith.cmpf ogt, %836, %837 : vector<2x32xf32>
    %cst_307 = arith.constant 0.000000e+00 : f32
    %839 = vector.broadcast %cst_307 : f32 to vector<2x32xf32>
    %840 = arith.minimumf %836, %839 : vector<2x32xf32>
    %841 = math.exp %840 : vector<2x32xf32>
    %cst_308 = arith.constant 1.000000e+00 : f32
    %842 = vector.broadcast %cst_308 : f32 to vector<2x32xf32>
    %843 = arith.subf %841, %842 : vector<2x32xf32>
    %844 = arith.select %838, %836, %843 : vector<2x32xi1>, vector<2x32xf32>
    %cst_309 = arith.constant dense<0.000000e+00> : vector<2x32xf32>
    %845 = tpu.matmul %844, %4, %cst_309 {dimension_numbers = #tpu.dot_dimension_numbers<[1], [0], [0], [1], [0, 0, 1, 1], [], []>} : vector<2x32xf32>, vector<32x32xf32>, vector<2x32xf32> -> vector<2x32xf32>
    %846 = vector.broadcast %11 : vector<1x32xf32> to vector<2x32xf32>
    %847 = arith.addf %845, %846 : vector<2x32xf32>
    %cst_310 = arith.constant 0.000000e+00 : f32
    %848 = vector.broadcast %cst_310 : f32 to vector<2x32xf32>
    %849 = arith.cmpf ogt, %847, %848 : vector<2x32xf32>
    %cst_311 = arith.constant 0.000000e+00 : f32
    %850 = vector.broadcast %cst_311 : f32 to vector<2x32xf32>
    %851 = arith.minimumf %847, %850 : vector<2x32xf32>
    %852 = math.exp %851 : vector<2x32xf32>
    %cst_312 = arith.constant 1.000000e+00 : f32
    %853 = vector.broadcast %cst_312 : f32 to vector<2x32xf32>
    %854 = arith.subf %852, %853 : vector<2x32xf32>
    %855 = arith.select %849, %847, %854 : vector<2x32xi1>, vector<2x32xf32>
    %cst_313 = arith.constant dense<0.000000e+00> : vector<2x4xf32>
    %856 = tpu.matmul %855, %5, %cst_313 {dimension_numbers = #tpu.dot_dimension_numbers<[1], [0], [0], [1], [0, 0, 1, 1], [], []>} : vector<2x32xf32>, vector<32x4xf32>, vector<2x4xf32> -> vector<2x4xf32>
    %857 = vector.broadcast %12 : vector<1x4xf32> to vector<2x4xf32>
    %858 = arith.addf %856, %857 : vector<2x4xf32>
    %cst_314 = arith.constant 0.142857149 : f32
    %859 = vector.broadcast %cst_314 : f32 to vector<2x4xf32>
    %860 = arith.mulf %859, %858 : vector<2x4xf32>
    %861 = arith.addf %777, %860 : vector<2x4xf32>
    %cst_315 = arith.constant dense<0.000000e+00> : vector<2x32xf32>
    %862 = tpu.matmul %861, %3, %cst_315 {dimension_numbers = #tpu.dot_dimension_numbers<[1], [0], [0], [1], [0, 0, 1, 1], [], []>} : vector<2x4xf32>, vector<4x32xf32>, vector<2x32xf32> -> vector<2x32xf32>
    %863 = vector.broadcast %10 : vector<1x32xf32> to vector<2x32xf32>
    %864 = arith.addf %862, %863 : vector<2x32xf32>
    %cst_316 = arith.constant 0.000000e+00 : f32
    %865 = vector.broadcast %cst_316 : f32 to vector<2x32xf32>
    %866 = arith.cmpf ogt, %864, %865 : vector<2x32xf32>
    %cst_317 = arith.constant 0.000000e+00 : f32
    %867 = vector.broadcast %cst_317 : f32 to vector<2x32xf32>
    %868 = arith.minimumf %864, %867 : vector<2x32xf32>
    %869 = math.exp %868 : vector<2x32xf32>
    %cst_318 = arith.constant 1.000000e+00 : f32
    %870 = vector.broadcast %cst_318 : f32 to vector<2x32xf32>
    %871 = arith.subf %869, %870 : vector<2x32xf32>
    %872 = arith.select %866, %864, %871 : vector<2x32xi1>, vector<2x32xf32>
    %cst_319 = arith.constant dense<0.000000e+00> : vector<2x32xf32>
    %873 = tpu.matmul %872, %4, %cst_319 {dimension_numbers = #tpu.dot_dimension_numbers<[1], [0], [0], [1], [0, 0, 1, 1], [], []>} : vector<2x32xf32>, vector<32x32xf32>, vector<2x32xf32> -> vector<2x32xf32>
    %874 = vector.broadcast %11 : vector<1x32xf32> to vector<2x32xf32>
    %875 = arith.addf %873, %874 : vector<2x32xf32>
    %cst_320 = arith.constant 0.000000e+00 : f32
    %876 = vector.broadcast %cst_320 : f32 to vector<2x32xf32>
    %877 = arith.cmpf ogt, %875, %876 : vector<2x32xf32>
    %cst_321 = arith.constant 0.000000e+00 : f32
    %878 = vector.broadcast %cst_321 : f32 to vector<2x32xf32>
    %879 = arith.minimumf %875, %878 : vector<2x32xf32>
    %880 = math.exp %879 : vector<2x32xf32>
    %cst_322 = arith.constant 1.000000e+00 : f32
    %881 = vector.broadcast %cst_322 : f32 to vector<2x32xf32>
    %882 = arith.subf %880, %881 : vector<2x32xf32>
    %883 = arith.select %877, %875, %882 : vector<2x32xi1>, vector<2x32xf32>
    %cst_323 = arith.constant dense<0.000000e+00> : vector<2x4xf32>
    %884 = tpu.matmul %883, %5, %cst_323 {dimension_numbers = #tpu.dot_dimension_numbers<[1], [0], [0], [1], [0, 0, 1, 1], [], []>} : vector<2x32xf32>, vector<32x4xf32>, vector<2x4xf32> -> vector<2x4xf32>
    %885 = vector.broadcast %12 : vector<1x4xf32> to vector<2x4xf32>
    %886 = arith.addf %884, %885 : vector<2x4xf32>
    %cst_324 = arith.constant 2.000000e+00 : f32
    %887 = vector.broadcast %cst_324 : f32 to vector<2x4xf32>
    %888 = arith.mulf %887, %830 : vector<2x4xf32>
    %889 = arith.addf %802, %888 : vector<2x4xf32>
    %cst_325 = arith.constant 2.000000e+00 : f32
    %890 = vector.broadcast %cst_325 : f32 to vector<2x4xf32>
    %891 = arith.mulf %890, %858 : vector<2x4xf32>
    %892 = arith.addf %889, %891 : vector<2x4xf32>
    %893 = arith.addf %892, %886 : vector<2x4xf32>
    %cst_326 = arith.constant 0.0238095243 : f32
    %894 = vector.broadcast %cst_326 : f32 to vector<2x4xf32>
    %895 = arith.mulf %894, %893 : vector<2x4xf32>
    %896 = arith.addf %777, %895 : vector<2x4xf32>
    %897 = tpu.concatenate %63, %182, %301, %420, %539, %658, %777, %896 in 0 : vector<2x4xf32>, vector<2x4xf32>, vector<2x4xf32>, vector<2x4xf32>, vector<2x4xf32>, vector<2x4xf32>, vector<2x4xf32>, vector<2x4xf32> -> vector<16x4xf32>
    %cst_327 = arith.constant dense<0.000000e+00> : vector<16x32xf32>
    %898 = tpu.matmul %897, %6, %cst_327 {dimension_numbers = #tpu.dot_dimension_numbers<[1], [0], [0], [1], [0, 0, 1, 1], [], []>} : vector<16x4xf32>, vector<4x32xf32>, vector<16x32xf32> -> vector<16x32xf32>
    %899 = vector.broadcast %13 : vector<1x32xf32> to vector<16x32xf32>
    %900 = arith.addf %898, %899 : vector<16x32xf32>
    %cst_328 = arith.constant 0.000000e+00 : f32
    %901 = vector.broadcast %cst_328 : f32 to vector<16x32xf32>
    %902 = arith.maximumf %900, %901 : vector<16x32xf32>
    %cst_329 = arith.constant dense<0.000000e+00> : vector<16x2xf32>
    %903 = tpu.matmul %902, %7, %cst_329 {dimension_numbers = #tpu.dot_dimension_numbers<[1], [0], [0], [1], [0, 0, 1, 1], [], []>} : vector<16x32xf32>, vector<32x2xf32>, vector<16x2xf32> -> vector<16x2xf32>
    %904 = vector.broadcast %14 : vector<1x2xf32> to vector<16x2xf32>
    %905 = arith.addf %903, %904 : vector<16x2xf32>
    %c0_330 = arith.constant 0 : index
    %c0_331 = arith.constant 0 : index
    %906 = vector.load %arg4[%c0_330, %c0_331] : memref<16x2xf32, #tpu.memory_space<vmem>>, vector<16x2xf32>
    tpu.vector_store %arg4[%c0_330, %c0_331], %905 {strides = array<i32>} : memref<16x2xf32, #tpu.memory_space<vmem>>, vector<16x2xf32>,
    return
  }
}

</mosaic_0001>

<bundles_post_ra>
// kernel: vae_forward.1
= control target key start
LH: loop header
LB: loop body
LE: loop exit
PB: predicated region body
PF: predicated region fallthrough
CT: control target
= control target key end

     0   :  { %vm62_vm0 = vcmask 1041408   ;;  %v9641_v1 = vmov 0.0|0.0   ;;  %vm55_vm1 = vcmask 15360   ;;  %vm9642_vm2 = vmmov 0   ;;  %s9644_s18 = smov 4   ;;  %s10645_s2 = inlined_call_operand.vmem [shape: f32[184,32], index: 2, kind: input, shape index: {}]   ;;  %s10646_s0 = inlined_call_operand.vmem [shape: f32[16,2], index: 0, kind: input, shape index: {}]   ;;  %s10647_s3 = inlined_call_operand.vmem [shape: f32[7,32], index: 3, kind: input, shape index: {}]   ;;  %s10648_s1 = inlined_call_operand.vmem [shape: f32[2,4], index: 1, kind: input, shape index: {}]   ;;  %s10649_s5 = inlined_call_operand.vmem [shape: f32[2,8], index: 5, kind: output, shape index: {1}]   ;;  %s10650_s4 = inlined_call_operand.vmem [shape: f32[16,2], index: 4, kind: output, shape index: {0}]  }
   0x1   :  { %v19_v0 = vld [vmem:[%s10645_s2] sm:$0x3]  ;;  %9106 = vmatprep.subr.bf16.mxu0 %v9641_v1  ;;  %v9643_v2 = vmov 0.0   ;;  %v50_v4 = vld [vmem:[%s10646_s0 + $0x8] sm:$0xff]  ;;  %v21_v6 = vld [vmem:[%s10645_s2 + $0x10] sm:$0xff]  ;;  %vm141_vm3 = vcmask 261120  }
   0x2   :  { %8224 = vmatprep.subr.msk.mxu1 %vm62_vm0, %v19_v0  ;;  %8248 = vmatprep.mubr.msk.f32.mxu0 %vm9642_vm2, %v9643_v2  ;;  %v49_v3 = vld [vmem:[%s10646_s0] sm:$0xff]  ;;  %v20_v5 = vld [vmem:[%s10645_s2 + $0x8] sm:$0xff]  ;;  %v22_v7 = vld [vmem:[%s10645_s2 + $0x18] sm:$0xff]  ;;  %vm867_vm4 = vcmask 1043456   ;;  %vm843_vm5 = vcmask 58368   ;;  %s9645_s0 = smov 124  }
   0x3   :  { %8225 = vmatpush3.msk.msra.mxu1 %vm62_vm0, %v19_v0  ;;  %8226 = vmatprep.mubr.msk.f32.mxu1 %vm55_vm1, %v49_v3  ;;  %v23_v8 = vld [vmem:[%s10645_s2 + $0x20] sm:$0xff]  ;;  %v9705_v9 = vpack.c.bf16 %v21_v6, %v20_v5  ;;  %v24_v56 = vld [vmem:[%s10645_s2 + $0x28] sm:$0xff]  ;;  %v25_v57 = vld [vmem:[%s10645_s2 + $0x30] sm:$0xff]  ;;  %vm863_vm6 = vcmask 31744  }
   0x4   :  { %9100 = vmatprep.subr.bf16.mxu1 %v9641_v1  ;;  %8227 = vmatmul.mubr.msk.f32.vlgmr.msra.gmra.mrb[0].mxu1 %vm55_vm1, %v50_v4  ;;  %v9710_v10 = vpack.c.bf16 %v23_v8, %v22_v7  ;;  %v7640_v11 = vld [vmem:[%s10647_s3] ss:$0 sm:$0xff]  ;;  %v26_v58 = vld [vmem:[%s10645_s2 + $0x38] sm:$0xff]  ;;  %v9149_v59 = vpack.c.bf16 %v25_v57, %v24_v56  ;;  %v33_v4 = vld [vmem:[%s10645_s2 + $0x70] sm:$0xff] }
   0x5   :  { %8237 = vmatprep.mubr.msk.f32.mxu1 %vm9642_vm2, %v9643_v2  ;;  %9102 = vmatpush3.bf16.msra.mxu1 %v9705_v9  ;;  %v27_v60 = vld [vmem:[%s10645_s2 + $0x40] sm:$0xff]  ;;  %v34_v5 = vld [vmem:[%s10645_s2 + $0x78] sm:$0xff]  ;;  %v36_v8 = vld [vmem:[%s10645_s2 + $0x88] sm:$0xff] }
   0x6   :  { %9108 = vmatpush3.bf16.msra.mxu0 %v9705_v9  ;;  %9103 = vmatprep.subr.bf16.mxu1 %v9641_v1  ;;  %v9152_v61 = vpack.c.bf16 %v27_v60, %v26_v58  ;;  %v848_v62 = vld [vmem:[%s10648_s1] sm:$0x3]  ;;  %v9799_v6 = vpack.c.bf16 %v34_v5, %v33_v4 }
   0x7   :  { %9109 = vmatprep.subr.bf16.mxu0 %v9641_v1  ;;  %850 = vrot.lane.b32.xlu0 %v848_v62, %s9644_s18  ;;  %v35_v7 = vld [vmem:[%s10645_s2 + $0x80] sm:$0xff] }
   0x9   :  { %9105 = vmatpush3.bf16.msra.mxu1 %v9710_v10 }
   0xa   :  { %9111 = vmatpush3.bf16.msra.mxu0 %v9710_v10  ;;  %9112 = vmatprep.subr.bf16.mxu1 %v9641_v1 }
   0xb   :  { %9118 = vmatprep.subr.bf16.mxu0 %v9641_v1 }
   0xc   :  { %8238 = vmatmul.mubr.f32.vlgmr.msra.gmra.mrb[2].mxu1 %v9643_v2 }
   0xd   :  { %9114 = vmatpush3.bf16.msra.mxu1 %v9705_v9  ;;  %8259 = vmatprep.mubr.msk.f32.mxu1 %vm9642_vm2, %v9643_v2 }
   0xe   :  { %9115 = vmatprep.subr.bf16.mxu1 %v9641_v1 }
  0x11   :  { %9117 = vmatpush3.bf16.msra.mxu1 %v9710_v10 }
  0x12   :  { %9124 = vmatprep.subr.bf16.mxu1 %v9641_v1 }
  0xd7   :  { %v8228_v12 = vpop.f32.mrb[0].mxu1 }
  0xd8   :  { %v132_v13 = vpop.f32.mrb[1].mxu1  ;;  %v138_v16 = vadd.f32 %v8228_v12, %v7640_v11  ;;  %v7651_v12 = vld [vmem:[%s10647_s3 + $0x1] ss:$0 sm:$0xff] }
  0xd9   :  { %v9729_v14 = vadd.f32 %v7640_v11, %v132_v13  ;;  %v9819_v11 = vld [vmem:[%s10645_s2 + $0x48] sm:$0xf] }
  0xdf   :  { %v211_v15 = vpop.f32.mrb[2].mxu1 }
  0xe0   :  { %v216_v17 = vrot.slane %v211_v15, 2  ;;  %v8239_v18 = vpop.f32.mrb[3].mxu1 }
  0xe1   :  { %v851_v18 = vpop.permute.xlu0 %850 }
  0xe2   :  { %v218_v19 = vadd.f32 %v216_v17, %v138_v16 }
  0xe4   :  { %9503 = vtanh.f32 %v218_v19 }
  0xee   :  { %v9504_v20 = vpop.eup %9503 }
  0xef   :  { %v221_v21 = vrot.slane %v9504_v20, 6 }
  0xf1   :  { %8249 = vmatmul.mubr.msk.f32.vlgmr.msra.gmra.mrb[0].mxu0 %vm141_vm3, %v221_v21  ;;  %v29_v21 = vld [vmem:[%s10645_s2 + $0x50] sm:$0xff] }
  0xf2   :  { %9120 = vmatpush3.bf16.msra.mxu0 %v9705_v9  ;;  %8270 = vmatprep.mubr.msk.f32.mxu0 %vm9642_vm2, %v9643_v2 }
  0xf3   :  { %9121 = vmatprep.subr.bf16.mxu0 %v9641_v1 }
  0xf6   :  { %9123 = vmatpush3.bf16.msra.mxu0 %v9710_v10 }
  0xf7   :  { %9130 = vmatprep.subr.bf16.mxu0 %v9641_v1 }
 0x1c4   :  { %v290_v22 = vpop.f32.mrb[0].mxu0 }
 0x1c5   :  { %v295_v23 = vrot.slane %v290_v22, 4  ;;  %v8250_v24 = vpop.f32.mrb[1].mxu0  ;;  %v30_v22 = vld [vmem:[%s10645_s2 + $0x58] sm:$0xff] }
 0x1c7   :  { %v297_v25 = vadd.f32 %v295_v23, %v138_v16  ;;  %v9836_v23 = vpack.c.bf16 %v30_v22, %v29_v21 }
 0x1c9   :  { %9505 = vtanh.f32 %v297_v25  ;;  %v31_v25 = vld [vmem:[%s10645_s2 + $0x60] sm:$0xff] }
 0x1d3   :  { %v9506_v26 = vpop.eup %9505 }
 0x1d4   :  { %v300_v27 = vrot.slane %v9506_v26, 4  ;;  %v32_v26 = vld [vmem:[%s10645_s2 + $0x68] sm:$0xff] }
 0x1d6   :  { %8260 = vmatmul.mubr.msk.f32.vlgmr.msra.gmra.mrb[4].mxu1 %vm141_vm3, %v300_v27 }
 0x1d7   :  { %9126 = vmatpush3.bf16.msra.mxu1 %v9705_v9  ;;  %8281 = vmatprep.mubr.msk.f32.mxu1 %vm9642_vm2, %v9643_v2 }
 0x1d8   :  { %9127 = vmatprep.subr.bf16.mxu1 %v9641_v1 }
 0x1db   :  { %9129 = vmatpush3.bf16.msra.mxu1 %v9710_v10 }
 0x1dc   :  { %9136 = vmatprep.subr.bf16.mxu1 %v9641_v1 }
 0x2a9   :  { %v369_v28 = vpop.f32.mrb[4].mxu1 }
 0x2aa   :  { %v374_v29 = vrot.slane %v369_v28, 6  ;;  %v8261_v30 = vpop.f32.mrb[5].mxu1  ;;  %v9848_v28 = vpack.c.bf16 %v32_v26, %v31_v25 }
 0x2ac   :  { %v376_v31 = vadd.f32 %v374_v29, %v138_v16  ;;  %v9859_v29 = vld [vmem:[%s10647_s3 + $0x2] ss:$0 sm:$0xff] }
 0x2ae   :  { %9507 = vtanh.f32 %v376_v31 }
 0x2b8   :  { %v9508_v32 = vpop.eup %9507 }
 0x2b9   :  { %v379_v33 = vrot.slane %v9508_v32, 2 }
 0x2bb   :  { %8271 = vmatmul.mubr.msk.f32.vlgmr.msra.gmra.mrb[2].mxu0 %vm141_vm3, %v379_v33 }
 0x2bc   :  { %9132 = vmatpush3.bf16.msra.mxu0 %v9705_v9  ;;  %8292 = vmatprep.mubr.msk.f32.mxu0 %vm9642_vm2, %v9643_v2 }
 0x2bd   :  { %9133 = vmatprep.subr.bf16.mxu0 %v9641_v1 }
 0x2c0   :  { %9135 = vmatpush3.bf16.msra.mxu0 %v9710_v10 }
 0x2c1   :  { %9142 = vmatprep.subr.bf16.mxu0 %v9641_v1 }
 0x38e   :  { %v448_v34 = vpop.f32.mrb[2].mxu0 }
 0x38f   :  { %v452_v35 = vadd.f32 %v448_v34, %v138_v16  ;;  %v8272_v36 = vpop.f32.mrb[3].mxu0 }
 0x391   :  { %9509 = vtanh.f32 %v452_v35 }
 0x39b   :  { %v9510_v37 = vpop.eup %9509 }
 0x39c   :  { %8282 = vmatmul.mubr.msk.f32.vlgmr.msra.gmra.mrb[6].mxu1 %vm141_vm3, %v9510_v37 }
 0x39d   :  { %9138 = vmatpush3.bf16.msra.mxu1 %v9705_v9  ;;  %8303 = vmatprep.mubr.msk.f32.mxu1 %vm9642_vm2, %v9643_v2 }
 0x39e   :  { %9139 = vmatprep.subr.bf16.mxu1 %v9641_v1 }
 0x3a1   :  { %9141 = vmatpush3.bf16.msra.mxu1 %v9710_v10 }
 0x3a2   :  { %9148 = vmatprep.subr.bf16.mxu1 %v9641_v1 }
 0x46f   :  { %v523_v38 = vpop.f32.mrb[6].mxu1 }
 0x470   :  { %v528_v39 = vrot.slane %v523_v38, 2  ;;  %v8283_v40 = vpop.f32.mrb[7].mxu1  ;;  %v9871_v38 = vld [vmem:[%s10647_s3 + $0x3] ss:$0 sm:$0xff] }
 0x472   :  { %v530_v41 = vadd.f32 %v528_v39, %v9729_v14 }
 0x474   :  { %9511 = vtanh.f32 %v530_v41 }
 0x47e   :  { %v9512_v42 = vpop.eup %9511 }
 0x47f   :  { %v533_v43 = vrot.slane %v9512_v42, 6 }
 0x481   :  { %8293 = vmatmul.mubr.msk.f32.vlgmr.msra.gmra.mrb[4].mxu0 %vm141_vm3, %v533_v43 }
 0x482   :  { %9144 = vmatpush3.bf16.msra.mxu0 %v9705_v9  ;;  %8314 = vmatprep.mubr.msk.f32.mxu0 %vm9642_vm2, %v9643_v2 }
 0x483   :  { %9145 = vmatprep.subr.bf16.mxu0 %v9641_v1 }
 0x486   :  { %9147 = vmatpush3.bf16.msra.mxu0 %v9710_v10  ;;  %v9808_v10 = vpack.c.bf16 %v36_v8, %v35_v7 }
 0x487   :  { %8328 = vmatprep.subr.mxu0 %v9643_v2 }
 0x554   :  { %v602_v44 = vpop.f32.mrb[4].mxu0 }
 0x555   :  { %v607_v45 = vrot.slane %v602_v44, 4  ;;  %v8294_v46 = vpop.f32.mrb[5].mxu0 }
 0x557   :  { %v609_v47 = vadd.f32 %v607_v45, %v9729_v14 }
 0x559   :  { %9513 = vtanh.f32 %v609_v47  ;;  %v9884_v47 = vld [vmem:[%s10647_s3 + $0x4] ss:$0 sm:$0xff] }
 0x563   :  { %v9514_v48 = vpop.eup %9513 }
 0x564   :  { %v612_v49 = vrot.slane %v9514_v48, 4 }
 0x566   :  { %8304 = vmatmul.mubr.msk.f32.vlgmr.msra.gmra.mrb[8].mxu1 %vm141_vm3, %v612_v49 }
 0x567   :  { %8325 = vmatprep.mubr.msk.f32.mxu1 %vm9642_vm2, %v9643_v2  ;;  %9150 = vmatpush3.bf16.msra.mxu1 %v9149_v59 }
 0x568   :  { %9151 = vmatprep.subr.bf16.mxu1 %v9641_v1 }
 0x56b   :  { %9153 = vmatpush3.bf16.msra.mxu1 %v9152_v61 }
 0x56c   :  { %9160 = vmatprep.subr.bf16.mxu1 %v9641_v1 }
 0x639   :  { %v681_v50 = vpop.f32.mrb[8].mxu1 }
 0x63a   :  { %v686_v51 = vrot.slane %v681_v50, 6  ;;  %v8305_v52 = vpop.f32.mrb[9].mxu1 }
 0x63c   :  { %v688_v53 = vadd.f32 %v686_v51, %v9729_v14 }
 0x63e   :  { %9515 = vtanh.f32 %v688_v53 }
 0x648   :  { %v9516_v54 = vpop.eup %9515 }
 0x649   :  { %v691_v55 = vrot.slane %v9516_v54, 2 }
 0x64b   :  { %8315 = vmatmul.mubr.msk.f32.vlgmr.msra.gmra.mrb[6].mxu0 %vm141_vm3, %v691_v55 }
 0x64c   :  { %8330 = vmatprep.mubr.msk.f32.mxu0 %vm9642_vm2, %v9643_v2  ;;  %8329 = vmatpush3.msk.msra.mxu0 %vm867_vm4, %v9819_v11 }
 0x64d   :  { %9154 = vmatprep.subr.bf16.mxu0 %v9641_v1 }
 0x71e   :  { %v760_v63 = vpop.f32.mrb[6].mxu0 }
 0x71f   :  { %v764_v0 = vadd.f32 %v760_v63, %v9729_v14  ;;  %v8316_v3 = vpop.f32.mrb[7].mxu0 }
 0x721   :  { %9517 = vtanh.f32 %v764_v0 }
 0x72b   :  { %v9518_v9 = vpop.eup %9517 }
 0x72c   :  { %8326 = vmatmul.mubr.msk.f32.vlgmr.msra.gmra.mrb[10].mxu1 %vm141_vm3, %v9518_v9 }
 0x72d   :  { %9162 = vmatpush3.bf16.msra.mxu1 %v9799_v6  ;;  %8352 = vmatprep.mubr.msk.f32.mxu1 %vm9642_vm2, %v9643_v2 }
 0x72e   :  { %9163 = vmatprep.subr.bf16.mxu1 %v9641_v1 }
 0x731   :  { %9165 = vmatpush3.bf16.msra.mxu1 %v9808_v10 }
 0x732   :  { %9166 = vmatprep.subr.bf16.mxu1 %v9641_v1 }
 0x7ff   :  { %v839_v13 = vpop.f32.mrb[10].mxu1 }
 0x800   :  { %v840_v14 = vadd.f32 %v7651_v12, %v839_v13  ;;  %v8327_v15 = vpop.f32.mrb[11].mxu1 }
 0x802   :  { %844 = vst.msk [vmem:[%s10649_s5] sm:$0x3] %vm843_vm5, %v840_v14  ;;  %v845_v16 = vmul.f32 0.5, %v840_v14 }
 0x804   :  { %v846_v17 = vmul.f32 1.442695, %v845_v16 }
 0x806   :  { %9519 = vpow2.f32 %v846_v17 }
 0x810   :  { %v9520_v19 = vpop.eup %9519 }
 0x811   :  { %v853_v20 = vmul.f32 %v9520_v19, %v851_v18 }
 0x813   :  { %855 = vrot.lane.b32.xlu0 %v853_v20, %s9645_s0 }
 0x885   :  { %v856_v24 = vpop.permute.xlu0 %855 }
 0x886   :  { %v9844_v27 = vadd.f32 %v856_v24, %v840_v14 }
 0x888   :  { %8331 = vmatmul.mubr.msk.f32.vlgmr.msra.gmra.mrb[8].mxu0 %vm863_vm6, %v9844_v27 }
 0x889   :  { %9156 = vmatpush3.bf16.msra.mxu0 %v9836_v23  ;;  %8341 = vmatprep.mubr.msk.f32.mxu0 %vm9642_vm2, %v9643_v2 }
 0x88a   :  { %9157 = vmatprep.subr.bf16.mxu0 %v9641_v1 }
 0x88d   :  { %9159 = vmatpush3.bf16.msra.mxu0 %v9848_v28 }
 0x88e   :  { %8355 = vmatprep.subr.mxu0 %v9643_v2 }
 0x95b   :  { %v937_v30 = vpop.f32.mrb[8].mxu0 }
 0x95c   :  { %v938_v31 = vadd.f32 %v9859_v29, %v937_v30  ;;  %v8332_v32 = vpop.f32.mrb[9].mxu0 }
 0x95e   :  { %v942_v33 = vmin.f32 %v938_v31, 0.0  ;;  %vm941_vm7 = vcmp.gt.f32.partialorder %v938_v31, 0.0 }
 0x960   :  { %v943_v34 = vmul.f32 1.442695, %v942_v33 }
 0x962   :  { %9521 = vpow2.f32 %v943_v34 }
 0x96c   :  { %v9522_v35 = vpop.eup %9521 }
 0x96d   :  { %v7656_v36 = vadd.f32 -1.0, %v9522_v35 }
 0x96f   :  { %v946_v37 = vsel %vm941_vm7, %v938_v31, %v7656_v36 }
 0x970   :  { %8342 = vmatmul.mubr.msk.f32.vlgmr.msra.gmra.mrb[10].mxu0 %vm141_vm3, %v946_v37 }
 0x971   :  { %8356 = vmatpush3.msk.msra.mxu0 %vm867_vm4, %v9819_v11  ;;  %8357 = vmatprep.mubr.msk.f32.mxu0 %vm9642_vm2, %v9643_v2 }
 0x972   :  { %9172 = vmatprep.subr.bf16.mxu0 %v9641_v1 }
 0xa43   :  { %v1020_v39 = vpop.f32.mrb[10].mxu0 }
 0xa44   :  { %v1021_v40 = vadd.f32 %v9871_v38, %v1020_v39  ;;  %v8343_v41 = vpop.f32.mrb[11].mxu0 }
 0xa46   :  { %v1025_v42 = vmin.f32 %v1021_v40, 0.0  ;;  %vm1024_vm8 = vcmp.gt.f32.partialorder %v1021_v40, 0.0 }
 0xa48   :  { %v1026_v43 = vmul.f32 1.442695, %v1025_v42 }
 0xa4a   :  { %9523 = vpow2.f32 %v1026_v43 }
 0xa54   :  { %v9524_v44 = vpop.eup %9523 }
 0xa55   :  { %v7659_v45 = vadd.f32 -1.0, %v9524_v44 }
 0xa57   :  { %v1029_v46 = vsel %vm1024_vm8, %v1021_v40, %v7659_v45 }
 0xa58   :  { %8353 = vmatmul.mubr.msk.f32.vlgmr.msra.gmra.mrb[12].mxu1 %vm141_vm3, %v1029_v46 }
 0xa59   :  { %9168 = vmatpush3.bf16.msra.mxu1 %v9836_v23  ;;  %8368 = vmatprep.mubr.msk.f32.mxu1 %vm9642_vm2, %v9643_v2 }
 0xa5a   :  { %9169 = vmatprep.subr.bf16.mxu1 %v9641_v1 }
 0xa5d   :  { %9171 = vmatpush3.bf16.msra.mxu1 %v9848_v28 }
 0xa5e   :  { %8382 = vmatprep.subr.mxu1 %v9643_v2 }
 0xb2b   :  { %v1103_v48 = vpop.f32.mrb[12].mxu1 }
 0xb2c   :  { %v9887_v49 = vadd.f32 %v9884_v47, %v1103_v48  ;;  %v8354_v50 = vpop.f32.mrb[13].mxu1 }
 0xb2e   :  { %v1107_v51 = vmul.f32 0.071428575, %v9887_v49 }
 0xb30   :  { %v1108_v52 = vadd.f32 %v1107_v51, %v9844_v27 }
 0xb32   :  { %8358 = vmatmul.mubr.msk.f32.vlgmr.msra.gmra.mrb[12].mxu0 %vm863_vm6, %v1108_v52 }
 0xb33   :  { %9174 = vmatpush3.bf16.msra.mxu0 %v9799_v6  ;;  %8379 = vmatprep.mubr.msk.f32.mxu0 %vm9642_vm2, %v9643_v2 }
 0xb34   :  { %9175 = vmatprep.subr.bf16.mxu0 %v9641_v1 }
 0xb37   :  { %9177 = vmatpush3.bf16.msra.mxu0 %v9808_v10 }
 0xb38   :  { %9178 = vmatprep.subr.bf16.mxu0 %v9641_v1 }
 0xc05   :  { %v1178_v53 = vpop.f32.mrb[12].mxu0 }
 0xc06   :  { %v1179_v54 = vadd.f32 %v9859_v29, %v1178_v53  ;;  %v8359_v55 = vpop.f32.mrb[13].mxu0 }
 0xc08   :  { %v1183_v56 = vmin.f32 %v1179_v54, 0.0  ;;  %vm1182_vm9 = vcmp.gt.f32.partialorder %v1179_v54, 0.0 }
 0xc0a   :  { %v1184_v57 = vmul.f32 1.442695, %v1183_v56 }
 0xc0c   :  { %9525 = vpow2.f32 %v1184_v57 }
 0xc16   :  { %v9526_v58 = vpop.eup %9525 }
 0xc17   :  { %v7664_v59 = vadd.f32 -1.0, %v9526_v58 }
 0xc19   :  { %v1187_v60 = vsel %vm1182_vm9, %v1179_v54, %v7664_v59 }
 0xc1a   :  { %8369 = vmatmul.mubr.msk.f32.vlgmr.msra.gmra.mrb[14].mxu1 %vm141_vm3, %v1187_v60 }
 0xc1b   :  { %8383 = vmatpush3.msk.msra.mxu1 %vm867_vm4, %v9819_v11  ;;  %8384 = vmatprep.mubr.msk.f32.mxu1 %vm9642_vm2, %v9643_v2 }
 0xc1c   :  { %9184 = vmatprep.subr.bf16.mxu1 %v9641_v1 }
 0xced   :  { %v1257_v61 = vpop.f32.mrb[14].mxu1 }
 0xcee   :  { %v1258_v62 = vadd.f32 %v9871_v38, %v1257_v61  ;;  %v8370_v63 = vpop.f32.mrb[15].mxu1 }
 0xcf0   :  { %v1262_v0 = vmin.f32 %v1258_v62, 0.0  ;;  %vm1261_vm10 = vcmp.gt.f32.partialorder %v1258_v62, 0.0 }
 0xcf2   :  { %v1263_v3 = vmul.f32 1.442695, %v1262_v0 }
 0xcf4   :  { %9527 = vpow2.f32 %v1263_v3 }
 0xcfe   :  { %v9528_v4 = vpop.eup %9527 }
 0xcff   :  { %v7666_v5 = vadd.f32 -1.0, %v9528_v4 }
 0xd01   :  { %v1266_v7 = vsel %vm1261_vm10, %v1258_v62, %v7666_v5 }
 0xd02   :  { %8380 = vmatmul.mubr.msk.f32.vlgmr.msra.gmra.mrb[14].mxu0 %vm141_vm3, %v1266_v7 }
 0xd03   :  { %9180 = vmatpush3.bf16.msra.mxu0 %v9836_v23  ;;  %8395 = vmatprep.mubr.msk.f32.mxu0 %vm9642_vm2, %v9643_v2 }
 0xd04   :  { %9181 = vmatprep.subr.bf16.mxu0 %v9641_v1 }
 0xd07   :  { %9183 = vmatpush3.bf16.msra.mxu0 %v9848_v28 }
 0xd08   :  { %8409 = vmatprep.subr.mxu0 %v9643_v2 }
 0xdd5   :  { %v1336_v8 = vpop.f32.mrb[14].mxu0 }
 0xdd6   :  { %v1337_v9 = vadd.f32 %v9884_v47, %v1336_v8  ;;  %v8381_v12 = vpop.f32.mrb[15].mxu0 }
 0xdd8   :  { %v1340_v13 = vmul.f32 0.071428575, %v1337_v9  ;;  %v1806_v35 = vmul.f32 2.0, %v1337_v9 }
 0xdda   :  { %v1341_v14 = vadd.f32 %v1340_v13, %v9844_v27  ;;  %v1807_v40 = vadd.f32 %v1806_v35, %v9887_v49 }
 0xddc   :  { %8385 = vmatmul.mubr.msk.f32.vlgmr.msra.gmra.mrb[16].mxu1 %vm863_vm6, %v1341_v14 }
 0xddd   :  { %9186 = vmatpush3.bf16.msra.mxu1 %v9799_v6  ;;  %8406 = vmatprep.mubr.msk.f32.mxu1 %vm9642_vm2, %v9643_v2 }
 0xdde   :  { %9187 = vmatprep.subr.bf16.mxu1 %v9641_v1 }
 0xde1   :  { %9189 = vmatpush3.bf16.msra.mxu1 %v9808_v10 }
 0xde2   :  { %9190 = vmatprep.subr.bf16.mxu1 %v9641_v1 }
 0xeaf   :  { %v1411_v15 = vpop.f32.mrb[16].mxu1 }
 0xeb0   :  { %v1412_v16 = vadd.f32 %v9859_v29, %v1411_v15  ;;  %v8386_v17 = vpop.f32.mrb[17].mxu1 }
 0xeb2   :  { %v1416_v18 = vmin.f32 %v1412_v16, 0.0  ;;  %vm1415_vm11 = vcmp.gt.f32.partialorder %v1412_v16, 0.0 }
 0xeb4   :  { %v1417_v19 = vmul.f32 1.442695, %v1416_v18 }
 0xeb6   :  { %9529 = vpow2.f32 %v1417_v19 }
 0xec0   :  { %v9530_v20 = vpop.eup %9529 }
 0xec1   :  { %v7670_v21 = vadd.f32 -1.0, %v9530_v20 }
 0xec3   :  { %v1420_v22 = vsel %vm1415_vm11, %v1412_v16, %v7670_v21 }
 0xec4   :  { %8396 = vmatmul.mubr.msk.f32.vlgmr.msra.gmra.mrb[16].mxu0 %vm141_vm3, %v1420_v22 }
 0xec5   :  { %8410 = vmatpush3.msk.msra.mxu0 %vm867_vm4, %v9819_v11  ;;  %8411 = vmatprep.mubr.msk.f32.mxu0 %vm9642_vm2, %v9643_v2 }
 0xec6   :  { %9196 = vmatprep.subr.bf16.mxu0 %v9641_v1 }
 0xf97   :  { %v1490_v24 = vpop.f32.mrb[16].mxu0 }
 0xf98   :  { %v1491_v25 = vadd.f32 %v9871_v38, %v1490_v24  ;;  %v8397_v26 = vpop.f32.mrb[17].mxu0 }
 0xf9a   :  { %v1495_v30 = vmin.f32 %v1491_v25, 0.0  ;;  %vm1494_vm12 = vcmp.gt.f32.partialorder %v1491_v25, 0.0 }
 0xf9c   :  { %v1496_v31 = vmul.f32 1.442695, %v1495_v30 }
 0xf9e   :  { %9531 = vpow2.f32 %v1496_v31 }
 0xfa8   :  { %v9532_v32 = vpop.eup %9531 }
 0xfa9   :  { %v7672_v33 = vadd.f32 -1.0, %v9532_v32 }
 0xfab   :  { %v1499_v34 = vsel %vm1494_vm12, %v1491_v25, %v7672_v33 }
 0xfac   :  { %8407 = vmatmul.mubr.msk.f32.vlgmr.msra.gmra.mrb[18].mxu1 %vm141_vm3, %v1499_v34 }
 0xfad   :  { %9192 = vmatpush3.bf16.msra.mxu1 %v9836_v23  ;;  %8422 = vmatprep.mubr.msk.f32.mxu1 %vm9642_vm2, %v9643_v2 }
 0xfae   :  { %9193 = vmatprep.subr.bf16.mxu1 %v9641_v1 }
 0xfb1   :  { %9195 = vmatpush3.bf16.msra.mxu1 %v9848_v28 }
 0xfb2   :  { %8436 = vmatprep.subr.mxu1 %v9643_v2 }
0x107f   :  { %v1569_v36 = vpop.f32.mrb[18].mxu1 }
0x1080   :  { %v1570_v37 = vadd.f32 %v9884_v47, %v1569_v36  ;;  %v8408_v39 = vpop.f32.mrb[19].mxu1 }
0x1082   :  { %v1573_v41 = vmul.f32 0.14285715, %v1570_v37  ;;  %v1808_v42 = vmul.f32 2.0, %v1570_v37 }
0x1084   :  { %v1574_v43 = vadd.f32 %v1573_v41, %v9844_v27  ;;  %v1809_v44 = vadd.f32 %v1808_v42, %v1807_v40 }
0x1086   :  { %8412 = vmatmul.mubr.msk.f32.vlgmr.msra.gmra.mrb[18].mxu0 %vm863_vm6, %v1574_v43 }
0x1087   :  { %9198 = vmatpush3.bf16.msra.mxu0 %v9799_v6  ;;  %8433 = vmatprep.mubr.msk.f32.mxu0 %vm9642_vm2, %v9643_v2 }
0x1088   :  { %9199 = vmatprep.subr.bf16.mxu0 %v9641_v1 }
0x108b   :  { %9201 = vmatpush3.bf16.msra.mxu0 %v9808_v10 }
0x108c   :  { %9202 = vmatprep.subr.bf16.mxu0 %v9641_v1 }
0x1159   :  { %v1644_v45 = vpop.f32.mrb[18].mxu0 }
0x115a   :  { %v1645_v46 = vadd.f32 %v9859_v29, %v1644_v45  ;;  %v8413_v48 = vpop.f32.mrb[19].mxu0 }
0x115c   :  { %v1649_v49 = vmin.f32 %v1645_v46, 0.0  ;;  %vm1648_vm13 = vcmp.gt.f32.partialorder %v1645_v46, 0.0 }
0x115e   :  { %v1650_v50 = vmul.f32 1.442695, %v1649_v49 }
0x1160   :  { %9533 = vpow2.f32 %v1650_v50 }
0x116a   :  { %v9534_v51 = vpop.eup %9533 }
0x116b   :  { %v7676_v52 = vadd.f32 -1.0, %v9534_v51 }
0x116d   :  { %v1653_v53 = vsel %vm1648_vm13, %v1645_v46, %v7676_v52 }
0x116e   :  { %8423 = vmatmul.mubr.msk.f32.vlgmr.msra.gmra.mrb[20].mxu1 %vm141_vm3, %v1653_v53 }
0x116f   :  { %8437 = vmatpush3.msk.msra.mxu1 %vm867_vm4, %v9819_v11  ;;  %8438 = vmatprep.mubr.msk.f32.mxu1 %vm9642_vm2, %v9643_v2 }
0x1170   :  { %9208 = vmatprep.subr.bf16.mxu1 %v9641_v1 }
0x1241   :  { %v1723_v54 = vpop.f32.mrb[20].mxu1 }
0x1242   :  { %v1724_v55 = vadd.f32 %v9871_v38, %v1723_v54  ;;  %v8424_v56 = vpop.f32.mrb[21].mxu1 }
0x1244   :  { %v1728_v57 = vmin.f32 %v1724_v55, 0.0  ;;  %vm1727_vm14 = vcmp.gt.f32.partialorder %v1724_v55, 0.0 }
0x1246   :  { %v1729_v58 = vmul.f32 1.442695, %v1728_v57 }
0x1248   :  { %9535 = vpow2.f32 %v1729_v58 }
0x1252   :  { %v9536_v59 = vpop.eup %9535 }
0x1253   :  { %v7678_v60 = vadd.f32 -1.0, %v9536_v59 }
0x1255   :  { %v1732_v61 = vsel %vm1727_vm14, %v1724_v55, %v7678_v60 }
0x1256   :  { %8434 = vmatmul.mubr.msk.f32.vlgmr.msra.gmra.mrb[20].mxu0 %vm141_vm3, %v1732_v61 }
0x1257   :  { %9204 = vmatpush3.bf16.msra.mxu0 %v9836_v23  ;;  %8449 = vmatprep.mubr.msk.f32.mxu0 %vm9642_vm2, %v9643_v2 }
0x1258   :  { %9205 = vmatprep.subr.bf16.mxu0 %v9641_v1 }
0x125b   :  { %9207 = vmatpush3.bf16.msra.mxu0 %v9848_v28 }
0x125c   :  { %8463 = vmatprep.subr.mxu0 %v9643_v2 }
0x1329   :  { %v1802_v62 = vpop.f32.mrb[20].mxu0 }
0x132a   :  { %v1803_v63 = vadd.f32 %v9884_v47, %v1802_v62  ;;  %v8435_v0 = vpop.f32.mrb[21].mxu0 }
0x132c   :  { %v1810_v3 = vadd.f32 %v1809_v44, %v1803_v63 }
0x132e   :  { %v1811_v4 = vmul.f32 0.023809524, %v1810_v3 }
0x1330   :  { %v9964_v5 = vadd.f32 %v1811_v4, %v9844_v27 }
0x1332   :  { %8439 = vmatmul.mubr.msk.f32.vlgmr.msra.gmra.mrb[22].mxu1 %vm863_vm6, %v9964_v5 }
0x1333   :  { %9210 = vmatpush3.bf16.msra.mxu1 %v9799_v6  ;;  %8460 = vmatprep.mubr.msk.f32.mxu1 %vm9642_vm2, %v9643_v2 }
0x1334   :  { %9211 = vmatprep.subr.bf16.mxu1 %v9641_v1 }
0x1337   :  { %9213 = vmatpush3.bf16.msra.mxu1 %v9808_v10 }
0x1338   :  { %9214 = vmatprep.subr.bf16.mxu1 %v9641_v1 }
0x1405   :  { %v1882_v7 = vpop.f32.mrb[22].mxu1 }
0x1406   :  { %v1883_v8 = vadd.f32 %v9859_v29, %v1882_v7  ;;  %v8440_v9 = vpop.f32.mrb[23].mxu1 }
0x1408   :  { %v1887_v12 = vmin.f32 %v1883_v8, 0.0  ;;  %vm1886_vm15 = vcmp.gt.f32.partialorder %v1883_v8, 0.0 }
0x140a   :  { %v1888_v13 = vmul.f32 1.442695, %v1887_v12 }
0x140c   :  { %9537 = vpow2.f32 %v1888_v13 }
0x1416   :  { %v9538_v14 = vpop.eup %9537 }
0x1417   :  { %v7682_v15 = vadd.f32 -1.0, %v9538_v14 }
0x1419   :  { %v1891_v16 = vsel %vm1886_vm15, %v1883_v8, %v7682_v15 }
0x141a   :  { %8450 = vmatmul.mubr.msk.f32.vlgmr.msra.gmra.mrb[22].mxu0 %vm141_vm3, %v1891_v16 }
0x141b   :  { %8464 = vmatpush3.msk.msra.mxu0 %vm867_vm4, %v9819_v11  ;;  %8465 = vmatprep.mubr.msk.f32.mxu0 %vm9642_vm2, %v9643_v2 }
0x141c   :  { %9220 = vmatprep.subr.bf16.mxu0 %v9641_v1 }
0x14ed   :  { %v1961_v17 = vpop.f32.mrb[22].mxu0 }
0x14ee   :  { %v1962_v18 = vadd.f32 %v9871_v38, %v1961_v17  ;;  %v8451_v19 = vpop.f32.mrb[23].mxu0 }
0x14f0   :  { %v1966_v20 = vmin.f32 %v1962_v18, 0.0  ;;  %vm1965_vm5 = vcmp.gt.f32.partialorder %v1962_v18, 0.0 }
0x14f2   :  { %v1967_v21 = vmul.f32 1.442695, %v1966_v20 }
0x14f4   :  { %9539 = vpow2.f32 %v1967_v21 }
0x14fe   :  { %v9540_v22 = vpop.eup %9539 }
0x14ff   :  { %v7684_v24 = vadd.f32 -1.0, %v9540_v22 }
0x1501   :  { %v1970_v25 = vsel %vm1965_vm5, %v1962_v18, %v7684_v24 }
0x1502   :  { %8461 = vmatmul.mubr.msk.f32.vlgmr.msra.gmra.mrb[24].mxu1 %vm141_vm3, %v1970_v25 }
0x1503   :  { %9216 = vmatpush3.bf16.msra.mxu1 %v9836_v23  ;;  %8476 = vmatprep.mubr.msk.f32.mxu1 %vm9642_vm2, %v9643_v2 }
0x1504   :  { %9217 = vmatprep.subr.bf16.mxu1 %v9641_v1 }
0x1507   :  { %9219 = vmatpush3.bf16.msra.mxu1 %v9848_v28 }
0x1508   :  { %8490 = vmatprep.subr.mxu1 %v9643_v2 }
0x15d5   :  { %v2040_v26 = vpop.f32.mrb[24].mxu1 }
0x15d6   :  { %v9990_v30 = vadd.f32 %v9884_v47, %v2040_v26  ;;  %v8462_v31 = vpop.f32.mrb[25].mxu1 }
0x15d8   :  { %v2044_v32 = vmul.f32 0.071428575, %v9990_v30 }
0x15da   :  { %v2045_v33 = vadd.f32 %v2044_v32, %v9964_v5 }
0x15dc   :  { %8466 = vmatmul.mubr.msk.f32.vlgmr.msra.gmra.mrb[24].mxu0 %vm863_vm6, %v2045_v33 }
0x15dd   :  { %9222 = vmatpush3.bf16.msra.mxu0 %v9799_v6  ;;  %8487 = vmatprep.mubr.msk.f32.mxu0 %vm9642_vm2, %v9643_v2 }
0x15de   :  { %9223 = vmatprep.subr.bf16.mxu0 %v9641_v1 }
0x15e1   :  { %9225 = vmatpush3.bf16.msra.mxu0 %v9808_v10 }
0x15e2   :  { %9226 = vmatprep.subr.bf16.mxu0 %v9641_v1 }
0x16af   :  { %v2115_v34 = vpop.f32.mrb[24].mxu0 }
0x16b0   :  { %v2116_v35 = vadd.f32 %v9859_v29, %v2115_v34  ;;  %v8467_v36 = vpop.f32.mrb[25].mxu0 }
0x16b2   :  { %v2120_v37 = vmin.f32 %v2116_v35, 0.0  ;;  %vm2119_vm7 = vcmp.gt.f32.partialorder %v2116_v35, 0.0 }
0x16b4   :  { %v2121_v39 = vmul.f32 1.442695, %v2120_v37 }
0x16b6   :  { %9541 = vpow2.f32 %v2121_v39 }
0x16c0   :  { %v9542_v40 = vpop.eup %9541 }
0x16c1   :  { %v7688_v41 = vadd.f32 -1.0, %v9542_v40 }
0x16c3   :  { %v2124_v42 = vsel %vm2119_vm7, %v2116_v35, %v7688_v41 }
0x16c4   :  { %8477 = vmatmul.mubr.msk.f32.vlgmr.msra.gmra.mrb[26].mxu1 %vm141_vm3, %v2124_v42 }
0x16c5   :  { %8491 = vmatpush3.msk.msra.mxu1 %vm867_vm4, %v9819_v11  ;;  %8492 = vmatprep.mubr.msk.f32.mxu1 %vm9642_vm2, %v9643_v2 }
0x16c6   :  { %9232 = vmatprep.subr.bf16.mxu1 %v9641_v1 }
0x1797   :  { %v2194_v43 = vpop.f32.mrb[26].mxu1 }
0x1798   :  { %v2195_v44 = vadd.f32 %v9871_v38, %v2194_v43  ;;  %v8478_v45 = vpop.f32.mrb[27].mxu1 }
0x179a   :  { %v2199_v46 = vmin.f32 %v2195_v44, 0.0  ;;  %vm2198_vm8 = vcmp.gt.f32.partialorder %v2195_v44, 0.0 }
0x179c   :  { %v2200_v48 = vmul.f32 1.442695, %v2199_v46 }
0x179e   :  { %9543 = vpow2.f32 %v2200_v48 }
0x17a8   :  { %v9544_v49 = vpop.eup %9543 }
0x17a9   :  { %v7690_v50 = vadd.f32 -1.0, %v9544_v49 }
0x17ab   :  { %v2203_v51 = vsel %vm2198_vm8, %v2195_v44, %v7690_v50 }
0x17ac   :  { %8488 = vmatmul.mubr.msk.f32.vlgmr.msra.gmra.mrb[26].mxu0 %vm141_vm3, %v2203_v51 }
0x17ad   :  { %9228 = vmatpush3.bf16.msra.mxu0 %v9836_v23  ;;  %8503 = vmatprep.mubr.msk.f32.mxu0 %vm9642_vm2, %v9643_v2 }
0x17ae   :  { %9229 = vmatprep.subr.bf16.mxu0 %v9641_v1 }
0x17b1   :  { %9231 = vmatpush3.bf16.msra.mxu0 %v9848_v28 }
0x17b2   :  { %8517 = vmatprep.subr.mxu0 %v9643_v2 }
0x187f   :  { %v2273_v52 = vpop.f32.mrb[26].mxu0 }
0x1880   :  { %v2274_v53 = vadd.f32 %v9884_v47, %v2273_v52  ;;  %v8489_v54 = vpop.f32.mrb[27].mxu0 }
0x1882   :  { %v2277_v55 = vmul.f32 0.071428575, %v2274_v53  ;;  %v2743_v15 = vmul.f32 2.0, %v2274_v53 }
0x1884   :  { %v2278_v56 = vadd.f32 %v2277_v55, %v9964_v5  ;;  %v2744_v19 = vadd.f32 %v2743_v15, %v9990_v30 }
0x1886   :  { %8493 = vmatmul.mubr.msk.f32.vlgmr.msra.gmra.mrb[28].mxu1 %vm863_vm6, %v2278_v56 }
0x1887   :  { %9234 = vmatpush3.bf16.msra.mxu1 %v9799_v6  ;;  %8514 = vmatprep.mubr.msk.f32.mxu1 %vm9642_vm2, %v9643_v2 }
0x1888   :  { %9235 = vmatprep.subr.bf16.mxu1 %v9641_v1 }
0x188b   :  { %9237 = vmatpush3.bf16.msra.mxu1 %v9808_v10 }
0x188c   :  { %9238 = vmatprep.subr.bf16.mxu1 %v9641_v1 }
0x1959   :  { %v2348_v57 = vpop.f32.mrb[28].mxu1 }
0x195a   :  { %v2349_v58 = vadd.f32 %v9859_v29, %v2348_v57  ;;  %v8494_v59 = vpop.f32.mrb[29].mxu1 }
0x195c   :  { %v2353_v60 = vmin.f32 %v2349_v58, 0.0  ;;  %vm2352_vm9 = vcmp.gt.f32.partialorder %v2349_v58, 0.0 }
0x195e   :  { %v2354_v61 = vmul.f32 1.442695, %v2353_v60 }
0x1960   :  { %9545 = vpow2.f32 %v2354_v61 }
0x196a   :  { %v9546_v62 = vpop.eup %9545 }
0x196b   :  { %v7694_v63 = vadd.f32 -1.0, %v9546_v62 }
0x196d   :  { %v2357_v0 = vsel %vm2352_vm9, %v2349_v58, %v7694_v63 }
0x196e   :  { %8504 = vmatmul.mubr.msk.f32.vlgmr.msra.gmra.mrb[28].mxu0 %vm141_vm3, %v2357_v0 }
0x196f   :  { %8518 = vmatpush3.msk.msra.mxu0 %vm867_vm4, %v9819_v11  ;;  %8519 = vmatprep.mubr.msk.f32.mxu0 %vm9642_vm2, %v9643_v2 }
0x1970   :  { %9244 = vmatprep.subr.bf16.mxu0 %v9641_v1 }
0x1a41   :  { %v2427_v3 = vpop.f32.mrb[28].mxu0 }
0x1a42   :  { %v2428_v4 = vadd.f32 %v9871_v38, %v2427_v3  ;;  %v8505_v7 = vpop.f32.mrb[29].mxu0 }
0x1a44   :  { %v2432_v8 = vmin.f32 %v2428_v4, 0.0  ;;  %vm2431_vm10 = vcmp.gt.f32.partialorder %v2428_v4, 0.0 }
0x1a46   :  { %v2433_v9 = vmul.f32 1.442695, %v2432_v8 }
0x1a48   :  { %9547 = vpow2.f32 %v2433_v9 }
0x1a52   :  { %v9548_v12 = vpop.eup %9547 }
0x1a53   :  { %v7696_v13 = vadd.f32 -1.0, %v9548_v12 }
0x1a55   :  { %v2436_v14 = vsel %vm2431_vm10, %v2428_v4, %v7696_v13 }
0x1a56   :  { %8515 = vmatmul.mubr.msk.f32.vlgmr.msra.gmra.mrb[30].mxu1 %vm141_vm3, %v2436_v14 }
0x1a57   :  { %9240 = vmatpush3.bf16.msra.mxu1 %v9836_v23  ;;  %8530 = vmatprep.mubr.msk.f32.mxu1 %vm9642_vm2, %v9643_v2 }
0x1a58   :  { %9241 = vmatprep.subr.bf16.mxu1 %v9641_v1 }
0x1a5b   :  { %9243 = vmatpush3.bf16.msra.mxu1 %v9848_v28 }
0x1a5c   :  { %8544 = vmatprep.subr.mxu1 %v9643_v2 }
0x1b29   :  { %v2506_v16 = vpop.f32.mrb[30].mxu1 }
0x1b2a   :  { %v2507_v17 = vadd.f32 %v9884_v47, %v2506_v16  ;;  %v8516_v18 = vpop.f32.mrb[31].mxu1 }
0x1b2c   :  { %v2510_v20 = vmul.f32 0.14285715, %v2507_v17  ;;  %v2745_v21 = vmul.f32 2.0, %v2507_v17 }
0x1b2e   :  { %v2511_v22 = vadd.f32 %v2510_v20, %v9964_v5  ;;  %v2746_v24 = vadd.f32 %v2745_v21, %v2744_v19 }
0x1b30   :  { %8520 = vmatmul.mubr.msk.f32.vlgmr.msra.gmra.mrb[30].mxu0 %vm863_vm6, %v2511_v22 }
0x1b31   :  { %9246 = vmatpush3.bf16.msra.mxu0 %v9799_v6  ;;  %8541 = vmatprep.mubr.msk.f32.mxu0 %vm9642_vm2, %v9643_v2 }
0x1b32   :  { %9247 = vmatprep.subr.bf16.mxu0 %v9641_v1 }
0x1b35   :  { %9249 = vmatpush3.bf16.msra.mxu0 %v9808_v10 }
0x1b36   :  { %9250 = vmatprep.subr.bf16.mxu0 %v9641_v1 }
0x1c03   :  { %v2581_v25 = vpop.f32.mrb[30].mxu0 }
0x1c04   :  { %v2582_v26 = vadd.f32 %v9859_v29, %v2581_v25  ;;  %v8521_v30 = vpop.f32.mrb[31].mxu0 }
0x1c06   :  { %v2586_v31 = vmin.f32 %v2582_v26, 0.0  ;;  %vm2585_vm11 = vcmp.gt.f32.partialorder %v2582_v26, 0.0 }
0x1c08   :  { %v2587_v32 = vmul.f32 1.442695, %v2586_v31 }
0x1c0a   :  { %9549 = vpow2.f32 %v2587_v32 }
0x1c14   :  { %v9550_v33 = vpop.eup %9549 }
0x1c15   :  { %v7700_v34 = vadd.f32 -1.0, %v9550_v33 }
0x1c17   :  { %v2590_v35 = vsel %vm2585_vm11, %v2582_v26, %v7700_v34 }
0x1c18   :  { %8531 = vmatmul.mubr.msk.f32.vlgmr.msra.gmra.mrb[32].mxu1 %vm141_vm3, %v2590_v35 }
0x1c19   :  { %8545 = vmatpush3.msk.msra.mxu1 %vm867_vm4, %v9819_v11  ;;  %8546 = vmatprep.mubr.msk.f32.mxu1 %vm9642_vm2, %v9643_v2 }
0x1c1a   :  { %9256 = vmatprep.subr.bf16.mxu1 %v9641_v1 }
0x1ceb   :  { %v2660_v36 = vpop.f32.mrb[32].mxu1 }
0x1cec   :  { %v2661_v37 = vadd.f32 %v9871_v38, %v2660_v36  ;;  %v8532_v39 = vpop.f32.mrb[33].mxu1 }
0x1cee   :  { %v2665_v40 = vmin.f32 %v2661_v37, 0.0  ;;  %vm2664_vm12 = vcmp.gt.f32.partialorder %v2661_v37, 0.0 }
0x1cf0   :  { %v2666_v41 = vmul.f32 1.442695, %v2665_v40 }
0x1cf2   :  { %9551 = vpow2.f32 %v2666_v41 }
0x1cfc   :  { %v9552_v42 = vpop.eup %9551 }
0x1cfd   :  { %v7702_v43 = vadd.f32 -1.0, %v9552_v42 }
0x1cff   :  { %v2669_v44 = vsel %vm2664_vm12, %v2661_v37, %v7702_v43 }
0x1d00   :  { %8542 = vmatmul.mubr.msk.f32.vlgmr.msra.gmra.mrb[32].mxu0 %vm141_vm3, %v2669_v44 }
0x1d01   :  { %9252 = vmatpush3.bf16.msra.mxu0 %v9836_v23  ;;  %8557 = vmatprep.mubr.msk.f32.mxu0 %vm9642_vm2, %v9643_v2 }
0x1d02   :  { %9253 = vmatprep.subr.bf16.mxu0 %v9641_v1 }
0x1d05   :  { %9255 = vmatpush3.bf16.msra.mxu0 %v9848_v28 }
0x1d06   :  { %8571 = vmatprep.subr.mxu0 %v9643_v2 }
0x1dd3   :  { %v2739_v45 = vpop.f32.mrb[32].mxu0 }
0x1dd4   :  { %v2740_v46 = vadd.f32 %v9884_v47, %v2739_v45  ;;  %v8543_v48 = vpop.f32.mrb[33].mxu0 }
0x1dd6   :  { %v2747_v49 = vadd.f32 %v2746_v24, %v2740_v46 }
0x1dd8   :  { %v2748_v50 = vmul.f32 0.023809524, %v2747_v49 }
0x1dda   :  { %v10067_v51 = vadd.f32 %v2748_v50, %v9964_v5 }
0x1ddc   :  { %8547 = vmatmul.mubr.msk.f32.vlgmr.msra.gmra.mrb[34].mxu1 %vm863_vm6, %v10067_v51 }
0x1ddd   :  { %9258 = vmatpush3.bf16.msra.mxu1 %v9799_v6  ;;  %8568 = vmatprep.mubr.msk.f32.mxu1 %vm9642_vm2, %v9643_v2 }
0x1dde   :  { %9259 = vmatprep.subr.bf16.mxu1 %v9641_v1 }
0x1de1   :  { %9261 = vmatpush3.bf16.msra.mxu1 %v9808_v10 }
0x1de2   :  { %9262 = vmatprep.subr.bf16.mxu1 %v9641_v1 }
0x1eaf   :  { %v2819_v52 = vpop.f32.mrb[34].mxu1 }
0x1eb0   :  { %v2820_v53 = vadd.f32 %v9859_v29, %v2819_v52  ;;  %v8548_v54 = vpop.f32.mrb[35].mxu1 }
0x1eb2   :  { %v2824_v55 = vmin.f32 %v2820_v53, 0.0  ;;  %vm2823_vm13 = vcmp.gt.f32.partialorder %v2820_v53, 0.0 }
0x1eb4   :  { %v2825_v56 = vmul.f32 1.442695, %v2824_v55 }
0x1eb6   :  { %9553 = vpow2.f32 %v2825_v56 }
0x1ec0   :  { %v9554_v57 = vpop.eup %9553 }
0x1ec1   :  { %v7706_v58 = vadd.f32 -1.0, %v9554_v57 }
0x1ec3   :  { %v2828_v59 = vsel %vm2823_vm13, %v2820_v53, %v7706_v58 }
0x1ec4   :  { %8558 = vmatmul.mubr.msk.f32.vlgmr.msra.gmra.mrb[34].mxu0 %vm141_vm3, %v2828_v59 }
0x1ec5   :  { %8572 = vmatpush3.msk.msra.mxu0 %vm867_vm4, %v9819_v11  ;;  %8573 = vmatprep.mubr.msk.f32.mxu0 %vm9642_vm2, %v9643_v2 }
0x1ec6   :  { %9268 = vmatprep.subr.bf16.mxu0 %v9641_v1 }
0x1f97   :  { %v2898_v60 = vpop.f32.mrb[34].mxu0 }
0x1f98   :  { %v2899_v61 = vadd.f32 %v9871_v38, %v2898_v60  ;;  %v8559_v62 = vpop.f32.mrb[35].mxu0 }
0x1f9a   :  { %v2903_v63 = vmin.f32 %v2899_v61, 0.0  ;;  %vm2902_vm14 = vcmp.gt.f32.partialorder %v2899_v61, 0.0 }
0x1f9c   :  { %v2904_v0 = vmul.f32 1.442695, %v2903_v63 }
0x1f9e   :  { %9555 = vpow2.f32 %v2904_v0 }
0x1fa8   :  { %v9556_v3 = vpop.eup %9555 }
0x1fa9   :  { %v7708_v4 = vadd.f32 -1.0, %v9556_v3 }
0x1fab   :  { %v2907_v7 = vsel %vm2902_vm14, %v2899_v61, %v7708_v4 }
0x1fac   :  { %8569 = vmatmul.mubr.msk.f32.vlgmr.msra.gmra.mrb[36].mxu1 %vm141_vm3, %v2907_v7 }
0x1fad   :  { %9264 = vmatpush3.bf16.msra.mxu1 %v9836_v23  ;;  %8584 = vmatprep.mubr.msk.f32.mxu1 %vm9642_vm2, %v9643_v2 }
0x1fae   :  { %9265 = vmatprep.subr.bf16.mxu1 %v9641_v1 }
0x1fb1   :  { %9267 = vmatpush3.bf16.msra.mxu1 %v9848_v28 }
0x1fb2   :  { %8598 = vmatprep.subr.mxu1 %v9643_v2 }
0x207f   :  { %v2977_v8 = vpop.f32.mrb[36].mxu1 }
0x2080   :  { %v10093_v9 = vadd.f32 %v9884_v47, %v2977_v8  ;;  %v8570_v12 = vpop.f32.mrb[37].mxu1 }
0x2082   :  { %v2981_v13 = vmul.f32 0.071428575, %v10093_v9 }
0x2084   :  { %v2982_v14 = vadd.f32 %v2981_v13, %v10067_v51 }
0x2086   :  { %8574 = vmatmul.mubr.msk.f32.vlgmr.msra.gmra.mrb[36].mxu0 %vm863_vm6, %v2982_v14 }
0x2087   :  { %9270 = vmatpush3.bf16.msra.mxu0 %v9799_v6  ;;  %8595 = vmatprep.mubr.msk.f32.mxu0 %vm9642_vm2, %v9643_v2 }
0x2088   :  { %9271 = vmatprep.subr.bf16.mxu0 %v9641_v1 }
0x208b   :  { %9273 = vmatpush3.bf16.msra.mxu0 %v9808_v10 }
0x208c   :  { %9274 = vmatprep.subr.bf16.mxu0 %v9641_v1 }
0x2159   :  { %v3052_v15 = vpop.f32.mrb[36].mxu0 }
0x215a   :  { %v3053_v16 = vadd.f32 %v9859_v29, %v3052_v15  ;;  %v8575_v17 = vpop.f32.mrb[37].mxu0 }
0x215b   :  { %v10158_v17 = vld [vmem:[%s10645_s2 + $0x48] sm:$0xf] }
0x215c   :  { %v3057_v18 = vmin.f32 %v3053_v16, 0.0  ;;  %vm3056_vm15 = vcmp.gt.f32.partialorder %v3053_v16, 0.0 }
0x215e   :  { %v3058_v19 = vmul.f32 1.442695, %v3057_v18 }
0x2160   :  { %9557 = vpow2.f32 %v3058_v19 }
0x216a   :  { %v9558_v20 = vpop.eup %9557 }
0x216b   :  { %v7712_v21 = vadd.f32 -1.0, %v9558_v20 }
0x216d   :  { %v3061_v22 = vsel %vm3056_vm15, %v3053_v16, %v7712_v21 }
0x216e   :  { %8585 = vmatmul.mubr.msk.f32.vlgmr.msra.gmra.mrb[38].mxu1 %vm141_vm3, %v3061_v22 }
0x216f   :  { %8599 = vmatpush3.msk.msra.mxu1 %vm867_vm4, %v9819_v11  ;;  %8600 = vmatprep.mubr.msk.f32.mxu1 %vm9642_vm2, %v9643_v2 }
0x2170   :  { %9280 = vmatprep.subr.bf16.mxu1 %v9641_v1 }
0x2241   :  { %v3131_v24 = vpop.f32.mrb[38].mxu1 }
0x2242   :  { %v3132_v25 = vadd.f32 %v9871_v38, %v3131_v24  ;;  %v8586_v26 = vpop.f32.mrb[39].mxu1 }
0x2244   :  { %v3136_v30 = vmin.f32 %v3132_v25, 0.0  ;;  %vm3135_vm5 = vcmp.gt.f32.partialorder %v3132_v25, 0.0 }
0x2246   :  { %v3137_v31 = vmul.f32 1.442695, %v3136_v30 }
0x2248   :  { %9559 = vpow2.f32 %v3137_v31 }
0x2252   :  { %v9560_v32 = vpop.eup %9559 }
0x2253   :  { %v7714_v33 = vadd.f32 -1.0, %v9560_v32 }
0x2255   :  { %v3140_v34 = vsel %vm3135_vm5, %v3132_v25, %v7714_v33 }
0x2256   :  { %8596 = vmatmul.mubr.msk.f32.vlgmr.msra.gmra.mrb[38].mxu0 %vm141_vm3, %v3140_v34 }
0x2257   :  { %9276 = vmatpush3.bf16.msra.mxu0 %v9836_v23  ;;  %8611 = vmatprep.mubr.msk.f32.mxu0 %vm9642_vm2, %v9643_v2 }
0x2258   :  { %9277 = vmatprep.subr.bf16.mxu0 %v9641_v1 }
0x225b   :  { %9279 = vmatpush3.bf16.msra.mxu0 %v9848_v28 }
0x225c   :  { %8625 = vmatprep.subr.mxu0 %v9643_v2 }
0x2329   :  { %v3210_v35 = vpop.f32.mrb[38].mxu0 }
0x232a   :  { %v3211_v36 = vadd.f32 %v9884_v47, %v3210_v35  ;;  %v8597_v37 = vpop.f32.mrb[39].mxu0 }
0x232c   :  { %v3214_v39 = vmul.f32 0.071428575, %v3211_v36 }
0x232e   :  { %v3215_v40 = vadd.f32 %v3214_v39, %v10067_v51 }
0x2330   :  { %8601 = vmatmul.mubr.msk.f32.vlgmr.msra.gmra.mrb[40].mxu1 %vm863_vm6, %v3215_v40 }
0x2331   :  { %9282 = vmatpush3.bf16.msra.mxu1 %v9799_v6  ;;  %8622 = vmatprep.mubr.msk.f32.mxu1 %vm9642_vm2, %v9643_v2 }
0x2332   :  { %9283 = vmatprep.subr.bf16.mxu1 %v9641_v1 }
0x2335   :  { %9285 = vmatpush3.bf16.msra.mxu1 %v9808_v10 }
0x2336   :  { %9286 = vmatprep.subr.bf16.mxu1 %v9641_v1 }
0x2403   :  { %v3285_v41 = vpop.f32.mrb[40].mxu1 }
0x2404   :  { %v3286_v42 = vadd.f32 %v9859_v29, %v3285_v41  ;;  %v8602_v43 = vpop.f32.mrb[41].mxu1 }
0x2406   :  { %v3290_v44 = vmin.f32 %v3286_v42, 0.0  ;;  %vm3289_vm7 = vcmp.gt.f32.partialorder %v3286_v42, 0.0 }
0x2408   :  { %v3291_v45 = vmul.f32 1.442695, %v3290_v44 }
0x240a   :  { %9561 = vpow2.f32 %v3291_v45 }
0x2414   :  { %v9562_v46 = vpop.eup %9561 }
0x2415   :  { %v7718_v48 = vadd.f32 -1.0, %v9562_v46 }
0x2417   :  { %v3294_v49 = vsel %vm3289_vm7, %v3286_v42, %v7718_v48 }
0x2418   :  { %8612 = vmatmul.mubr.msk.f32.vlgmr.msra.gmra.mrb[40].mxu0 %vm141_vm3, %v3294_v49 }
0x2419   :  { %8626 = vmatpush3.msk.msra.mxu0 %vm867_vm4, %v9819_v11  ;;  %8627 = vmatprep.mubr.msk.f32.mxu0 %vm9642_vm2, %v9643_v2  ;;  %v3680_v11 = vmul.f32 2.0, %v3211_v36 }
0x241a   :  { %9292 = vmatprep.subr.bf16.mxu0 %v9641_v1 }
0x241b   :  { %v3681_v62 = vadd.f32 %v3680_v11, %v10093_v9 }
0x24eb   :  { %v3364_v50 = vpop.f32.mrb[40].mxu0 }
0x24ec   :  { %v3365_v52 = vadd.f32 %v9871_v38, %v3364_v50  ;;  %v8613_v53 = vpop.f32.mrb[41].mxu0 }
0x24ee   :  { %v3369_v54 = vmin.f32 %v3365_v52, 0.0  ;;  %vm3368_vm8 = vcmp.gt.f32.partialorder %v3365_v52, 0.0 }
0x24f0   :  { %v3370_v55 = vmul.f32 1.442695, %v3369_v54 }
0x24f2   :  { %9563 = vpow2.f32 %v3370_v55 }
0x24fc   :  { %v9564_v56 = vpop.eup %9563 }
0x24fd   :  { %v7720_v57 = vadd.f32 -1.0, %v9564_v56 }
0x24ff   :  { %v3373_v58 = vsel %vm3368_vm8, %v3365_v52, %v7720_v57 }
0x2500   :  { %8623 = vmatmul.mubr.msk.f32.vlgmr.msra.gmra.mrb[42].mxu1 %vm141_vm3, %v3373_v58  ;;  %v10215_v58 = vld [vmem:[%s10647_s3 + $0x2] ss:$0 sm:$0xff] }
0x2501   :  { %9288 = vmatpush3.bf16.msra.mxu1 %v9836_v23  ;;  %8638 = vmatprep.mubr.msk.f32.mxu1 %vm9642_vm2, %v9643_v2 }
0x2502   :  { %9289 = vmatprep.subr.bf16.mxu1 %v9641_v1 }
0x2505   :  { %9291 = vmatpush3.bf16.msra.mxu1 %v9848_v28 }
0x2506   :  { %8652 = vmatprep.subr.mxu1 %v9643_v2 }
0x25d3   :  { %v3443_v59 = vpop.f32.mrb[42].mxu1 }
0x25d4   :  { %v3444_v60 = vadd.f32 %v9884_v47, %v3443_v59  ;;  %v8624_v61 = vpop.f32.mrb[43].mxu1 }
0x25d6   :  { %v3447_v63 = vmul.f32 0.14285715, %v3444_v60  ;;  %v3682_v0 = vmul.f32 2.0, %v3444_v60 }
0x25d8   :  { %v3448_v3 = vadd.f32 %v3447_v63, %v10067_v51  ;;  %v3683_v4 = vadd.f32 %v3682_v0, %v3681_v62 }
0x25da   :  { %8628 = vmatmul.mubr.msk.f32.vlgmr.msra.gmra.mrb[42].mxu0 %vm863_vm6, %v3448_v3 }
0x25db   :  { %9294 = vmatpush3.bf16.msra.mxu0 %v9799_v6  ;;  %8649 = vmatprep.mubr.msk.f32.mxu0 %vm9642_vm2, %v9643_v2 }
0x25dc   :  { %9295 = vmatprep.subr.bf16.mxu0 %v9641_v1 }
0x25df   :  { %9297 = vmatpush3.bf16.msra.mxu0 %v9808_v10 }
0x25e0   :  { %9298 = vmatprep.subr.bf16.mxu0 %v9641_v1 }
0x26ad   :  { %v3518_v7 = vpop.f32.mrb[42].mxu0 }
0x26ae   :  { %v3519_v8 = vadd.f32 %v9859_v29, %v3518_v7  ;;  %v8629_v9 = vpop.f32.mrb[43].mxu0 }
0x26b0   :  { %v3523_v12 = vmin.f32 %v3519_v8, 0.0  ;;  %vm3522_vm9 = vcmp.gt.f32.partialorder %v3519_v8, 0.0 }
0x26b2   :  { %v3524_v13 = vmul.f32 1.442695, %v3523_v12 }
0x26b4   :  { %9565 = vpow2.f32 %v3524_v13 }
0x26be   :  { %v9566_v14 = vpop.eup %9565 }
0x26bf   :  { %v7724_v15 = vadd.f32 -1.0, %v9566_v14 }
0x26c1   :  { %v3527_v16 = vsel %vm3522_vm9, %v3519_v8, %v7724_v15 }
0x26c2   :  { %8639 = vmatmul.mubr.msk.f32.vlgmr.msra.gmra.mrb[44].mxu1 %vm141_vm3, %v3527_v16 }
0x26c3   :  { %8653 = vmatpush3.msk.msra.mxu1 %vm867_vm4, %v10158_v17  ;;  %8654 = vmatprep.mubr.msk.f32.mxu1 %vm9642_vm2, %v9643_v2 }
0x26c4   :  { %9304 = vmatprep.subr.bf16.mxu1 %v9641_v1 }
0x2795   :  { %v3597_v18 = vpop.f32.mrb[44].mxu1 }
0x2796   :  { %v3598_v19 = vadd.f32 %v9871_v38, %v3597_v18  ;;  %v8640_v20 = vpop.f32.mrb[45].mxu1  ;;  %v10240_v18 = vld [vmem:[%s10647_s3 + $0x4] ss:$0 sm:$0xff] }
0x2798   :  { %v3602_v21 = vmin.f32 %v3598_v19, 0.0  ;;  %vm3601_vm10 = vcmp.gt.f32.partialorder %v3598_v19, 0.0 }
0x279a   :  { %v3603_v22 = vmul.f32 1.442695, %v3602_v21 }
0x279c   :  { %9567 = vpow2.f32 %v3603_v22 }
0x27a6   :  { %v9568_v24 = vpop.eup %9567 }
0x27a7   :  { %v7726_v25 = vadd.f32 -1.0, %v9568_v24 }
0x27a9   :  { %v3606_v26 = vsel %vm3601_vm10, %v3598_v19, %v7726_v25 }
0x27aa   :  { %8650 = vmatmul.mubr.msk.f32.vlgmr.msra.gmra.mrb[44].mxu0 %vm141_vm3, %v3606_v26 }
0x27ab   :  { %9300 = vmatpush3.bf16.msra.mxu0 %v9836_v23  ;;  %8665 = vmatprep.mubr.msk.f32.mxu0 %vm9642_vm2, %v9643_v2 }
0x27ac   :  { %9301 = vmatprep.subr.bf16.mxu0 %v9641_v1 }
0x27af   :  { %9303 = vmatpush3.bf16.msra.mxu0 %v9848_v28 }
0x27b0   :  { %8679 = vmatprep.subr.mxu0 %v9643_v2 }
0x287d   :  { %v3676_v30 = vpop.f32.mrb[44].mxu0 }
0x287e   :  { %v3677_v31 = vadd.f32 %v9884_v47, %v3676_v30  ;;  %v8651_v32 = vpop.f32.mrb[45].mxu0 }
0x2880   :  { %v3684_v33 = vadd.f32 %v3683_v4, %v3677_v31  ;;  %v10227_v4 = vld [vmem:[%s10647_s3 + $0x3] ss:$0 sm:$0xff] }
0x2882   :  { %v3685_v34 = vmul.f32 0.023809524, %v3684_v33 }
0x2884   :  { %v10175_v35 = vadd.f32 %v3685_v34, %v10067_v51 }
0x2886   :  { %8655 = vmatmul.mubr.msk.f32.vlgmr.msra.gmra.mrb[46].mxu1 %vm863_vm6, %v10175_v35 }
0x2887   :  { %9306 = vmatpush3.bf16.msra.mxu1 %v9799_v6  ;;  %8676 = vmatprep.mubr.msk.f32.mxu1 %vm9642_vm2, %v9643_v2 }
0x2888   :  { %9307 = vmatprep.subr.bf16.mxu1 %v9641_v1 }
0x288b   :  { %9309 = vmatpush3.bf16.msra.mxu1 %v9808_v10 }
0x288c   :  { %9310 = vmatprep.subr.bf16.mxu1 %v9641_v1 }
0x2959   :  { %v3756_v36 = vpop.f32.mrb[46].mxu1 }
0x295a   :  { %v3757_v37 = vadd.f32 %v9859_v29, %v3756_v36  ;;  %v8656_v39 = vpop.f32.mrb[47].mxu1 }
0x295c   :  { %v3761_v40 = vmin.f32 %v3757_v37, 0.0  ;;  %vm3760_vm11 = vcmp.gt.f32.partialorder %v3757_v37, 0.0 }
0x295e   :  { %v3762_v41 = vmul.f32 1.442695, %v3761_v40 }
0x2960   :  { %9569 = vpow2.f32 %v3762_v41 }
0x296a   :  { %v9570_v42 = vpop.eup %9569 }
0x296b   :  { %v7730_v43 = vadd.f32 -1.0, %v9570_v42 }
0x296d   :  { %v3765_v44 = vsel %vm3760_vm11, %v3757_v37, %v7730_v43 }
0x296e   :  { %8666 = vmatmul.mubr.msk.f32.vlgmr.msra.gmra.mrb[46].mxu0 %vm141_vm3, %v3765_v44 }
0x296f   :  { %8680 = vmatpush3.msk.msra.mxu0 %vm867_vm4, %v10158_v17  ;;  %8681 = vmatprep.mubr.msk.f32.mxu0 %vm9642_vm2, %v9643_v2 }
0x2970   :  { %9316 = vmatprep.subr.bf16.mxu0 %v9641_v1 }
0x2a41   :  { %v3835_v45 = vpop.f32.mrb[46].mxu0 }
0x2a42   :  { %v3836_v29 = vadd.f32 %v9871_v38, %v3835_v45  ;;  %v8667_v46 = vpop.f32.mrb[47].mxu0 }
0x2a44   :  { %v3840_v48 = vmin.f32 %v3836_v29, 0.0  ;;  %vm3839_vm12 = vcmp.gt.f32.partialorder %v3836_v29, 0.0 }
0x2a46   :  { %v3841_v49 = vmul.f32 1.442695, %v3840_v48 }
0x2a48   :  { %9571 = vpow2.f32 %v3841_v49 }
0x2a52   :  { %v9572_v50 = vpop.eup %9571 }
0x2a53   :  { %v7732_v52 = vadd.f32 -1.0, %v9572_v50 }
0x2a55   :  { %v3844_v53 = vsel %vm3839_vm12, %v3836_v29, %v7732_v52 }
0x2a56   :  { %8677 = vmatmul.mubr.msk.f32.vlgmr.msra.gmra.mrb[48].mxu1 %vm141_vm3, %v3844_v53 }
0x2a57   :  { %9312 = vmatpush3.bf16.msra.mxu1 %v9836_v23  ;;  %8692 = vmatprep.mubr.msk.f32.mxu1 %vm9642_vm2, %v9643_v2 }
0x2a58   :  { %9313 = vmatprep.subr.bf16.mxu1 %v9641_v1 }
0x2a5b   :  { %9315 = vmatpush3.bf16.msra.mxu1 %v9848_v28 }
0x2a5c   :  { %8706 = vmatprep.subr.mxu1 %v9643_v2 }
0x2b29   :  { %v3914_v38 = vpop.f32.mrb[48].mxu1 }
0x2b2a   :  { %v10201_v54 = vadd.f32 %v9884_v47, %v3914_v38  ;;  %v8678_v55 = vpop.f32.mrb[49].mxu1 }
0x2b2c   :  { %v3918_v56 = vmul.f32 0.071428575, %v10201_v54 }
0x2b2e   :  { %v3919_v57 = vadd.f32 %v3918_v56, %v10175_v35 }
0x2b30   :  { %8682 = vmatmul.mubr.msk.f32.vlgmr.msra.gmra.mrb[48].mxu0 %vm863_vm6, %v3919_v57 }
0x2b31   :  { %9318 = vmatpush3.bf16.msra.mxu0 %v9799_v6  ;;  %8703 = vmatprep.mubr.msk.f32.mxu0 %vm9642_vm2, %v9643_v2 }
0x2b32   :  { %9319 = vmatprep.subr.bf16.mxu0 %v9641_v1 }
0x2b35   :  { %9321 = vmatpush3.bf16.msra.mxu0 %v9808_v10 }
0x2b36   :  { %9322 = vmatprep.subr.bf16.mxu0 %v9641_v1 }
0x2c03   :  { %v3989_v47 = vpop.f32.mrb[48].mxu0 }
0x2c04   :  { %v3990_v11 = vadd.f32 %v10215_v58, %v3989_v47  ;;  %v8683_v59 = vpop.f32.mrb[49].mxu0 }
0x2c06   :  { %v3994_v60 = vmin.f32 %v3990_v11, 0.0  ;;  %vm3993_vm13 = vcmp.gt.f32.partialorder %v3990_v11, 0.0 }
0x2c08   :  { %v3995_v61 = vmul.f32 1.442695, %v3994_v60 }
0x2c0a   :  { %9573 = vpow2.f32 %v3995_v61 }
0x2c14   :  { %v9574_v62 = vpop.eup %9573 }
0x2c15   :  { %v7736_v63 = vadd.f32 -1.0, %v9574_v62 }
0x2c17   :  { %v3998_v0 = vsel %vm3993_vm13, %v3990_v11, %v7736_v63 }
0x2c18   :  { %8693 = vmatmul.mubr.msk.f32.vlgmr.msra.gmra.mrb[50].mxu1 %vm141_vm3, %v3998_v0 }
0x2c19   :  { %8707 = vmatpush3.msk.msra.mxu1 %vm867_vm4, %v10158_v17  ;;  %8708 = vmatprep.mubr.msk.f32.mxu1 %vm9642_vm2, %v9643_v2 }
0x2c1a   :  { %9328 = vmatprep.subr.bf16.mxu1 %v9641_v1 }
0x2ceb   :  { %v4068_v3 = vpop.f32.mrb[50].mxu1 }
0x2cec   :  { %v4069_v7 = vadd.f32 %v10227_v4, %v4068_v3  ;;  %v8694_v8 = vpop.f32.mrb[51].mxu1 }
0x2cee   :  { %v4073_v9 = vmin.f32 %v4069_v7, 0.0  ;;  %vm4072_vm14 = vcmp.gt.f32.partialorder %v4069_v7, 0.0 }
0x2cf0   :  { %v4074_v12 = vmul.f32 1.442695, %v4073_v9 }
0x2cf2   :  { %9575 = vpow2.f32 %v4074_v12 }
0x2cfc   :  { %v9576_v13 = vpop.eup %9575 }
0x2cfd   :  { %v7738_v14 = vadd.f32 -1.0, %v9576_v13 }
0x2cff   :  { %v4077_v15 = vsel %vm4072_vm14, %v4069_v7, %v7738_v14 }
0x2d00   :  { %8704 = vmatmul.mubr.msk.f32.vlgmr.msra.gmra.mrb[50].mxu0 %vm141_vm3, %v4077_v15 }
0x2d01   :  { %9324 = vmatpush3.bf16.msra.mxu0 %v9836_v23  ;;  %8719 = vmatprep.mubr.msk.f32.mxu0 %vm9642_vm2, %v9643_v2 }
0x2d02   :  { %9325 = vmatprep.subr.bf16.mxu0 %v9641_v1 }
0x2d05   :  { %9327 = vmatpush3.bf16.msra.mxu0 %v9848_v28 }
0x2d06   :  { %8733 = vmatprep.subr.mxu0 %v9643_v2 }
0x2dd3   :  { %v4147_v16 = vpop.f32.mrb[50].mxu0 }
0x2dd4   :  { %v4148_v19 = vadd.f32 %v10240_v18, %v4147_v16  ;;  %v8705_v20 = vpop.f32.mrb[51].mxu0 }
0x2dd6   :  { %v4151_v21 = vmul.f32 0.071428575, %v4148_v19  ;;  %v4617_v45 = vmul.f32 2.0, %v4148_v19 }
0x2dd8   :  { %v4152_v22 = vadd.f32 %v4151_v21, %v10175_v35  ;;  %v4618_v49 = vadd.f32 %v4617_v45, %v10201_v54 }
0x2dda   :  { %8709 = vmatmul.mubr.msk.f32.vlgmr.msra.gmra.mrb[52].mxu1 %vm863_vm6, %v4152_v22 }
0x2ddb   :  { %9330 = vmatpush3.bf16.msra.mxu1 %v9799_v6  ;;  %8730 = vmatprep.mubr.msk.f32.mxu1 %vm9642_vm2, %v9643_v2 }
0x2ddc   :  { %9331 = vmatprep.subr.bf16.mxu1 %v9641_v1 }
0x2ddf   :  { %9333 = vmatpush3.bf16.msra.mxu1 %v9808_v10 }
0x2de0   :  { %9334 = vmatprep.subr.bf16.mxu1 %v9641_v1 }
0x2ead   :  { %v4222_v24 = vpop.f32.mrb[52].mxu1 }
0x2eae   :  { %v4223_v25 = vadd.f32 %v10215_v58, %v4222_v24  ;;  %v8710_v26 = vpop.f32.mrb[53].mxu1 }
0x2eb0   :  { %v4227_v30 = vmin.f32 %v4223_v25, 0.0  ;;  %vm4226_vm15 = vcmp.gt.f32.partialorder %v4223_v25, 0.0 }
0x2eb2   :  { %v4228_v31 = vmul.f32 1.442695, %v4227_v30 }
0x2eb4   :  { %9577 = vpow2.f32 %v4228_v31 }
0x2ebe   :  { %v9578_v32 = vpop.eup %9577 }
0x2ebf   :  { %v7742_v33 = vadd.f32 -1.0, %v9578_v32 }
0x2ec1   :  { %v4231_v34 = vsel %vm4226_vm15, %v4223_v25, %v7742_v33 }
0x2ec2   :  { %8720 = vmatmul.mubr.msk.f32.vlgmr.msra.gmra.mrb[52].mxu0 %vm141_vm3, %v4231_v34 }
0x2ec3   :  { %8734 = vmatpush3.msk.msra.mxu0 %vm867_vm4, %v10158_v17  ;;  %8735 = vmatprep.mubr.msk.f32.mxu0 %vm9642_vm2, %v9643_v2 }
0x2ec4   :  { %9340 = vmatprep.subr.bf16.mxu0 %v9641_v1 }
0x2f95   :  { %v4301_v36 = vpop.f32.mrb[52].mxu0 }
0x2f96   :  { %v4302_v37 = vadd.f32 %v10227_v4, %v4301_v36  ;;  %v8721_v39 = vpop.f32.mrb[53].mxu0 }
0x2f98   :  { %v4306_v40 = vmin.f32 %v4302_v37, 0.0  ;;  %vm4305_vm5 = vcmp.gt.f32.partialorder %v4302_v37, 0.0 }
0x2f9a   :  { %v4307_v41 = vmul.f32 1.442695, %v4306_v40 }
0x2f9c   :  { %9579 = vpow2.f32 %v4307_v41 }
0x2fa6   :  { %v9580_v42 = vpop.eup %9579 }
0x2fa7   :  { %v7744_v43 = vadd.f32 -1.0, %v9580_v42 }
0x2fa9   :  { %v4310_v44 = vsel %vm4305_vm5, %v4302_v37, %v7744_v43 }
0x2faa   :  { %8731 = vmatmul.mubr.msk.f32.vlgmr.msra.gmra.mrb[54].mxu1 %vm141_vm3, %v4310_v44 }
0x2fab   :  { %9336 = vmatpush3.bf16.msra.mxu1 %v9836_v23  ;;  %8746 = vmatprep.mubr.msk.f32.mxu1 %vm9642_vm2, %v9643_v2 }
0x2fac   :  { %9337 = vmatprep.subr.bf16.mxu1 %v9641_v1 }
0x2faf   :  { %9339 = vmatpush3.bf16.msra.mxu1 %v9848_v28 }
0x2fb0   :  { %8760 = vmatprep.subr.mxu1 %v9643_v2 }
0x307d   :  { %v4380_v29 = vpop.f32.mrb[54].mxu1 }
0x307e   :  { %v4381_v46 = vadd.f32 %v10240_v18, %v4380_v29  ;;  %v8732_v48 = vpop.f32.mrb[55].mxu1 }
0x3080   :  { %v4384_v50 = vmul.f32 0.14285715, %v4381_v46  ;;  %v4619_v52 = vmul.f32 2.0, %v4381_v46 }
0x3082   :  { %v4385_v53 = vadd.f32 %v4384_v50, %v10175_v35  ;;  %v4620_v38 = vadd.f32 %v4619_v52, %v4618_v49 }
0x3084   :  { %8736 = vmatmul.mubr.msk.f32.vlgmr.msra.gmra.mrb[54].mxu0 %vm863_vm6, %v4385_v53 }
0x3085   :  { %9342 = vmatpush3.bf16.msra.mxu0 %v9799_v6  ;;  %8757 = vmatprep.mubr.msk.f32.mxu0 %vm9642_vm2, %v9643_v2 }
0x3086   :  { %9343 = vmatprep.subr.bf16.mxu0 %v9641_v1 }
0x3089   :  { %9345 = vmatpush3.bf16.msra.mxu0 %v9808_v10 }
0x308a   :  { %9346 = vmatprep.subr.bf16.mxu0 %v9641_v1 }
0x3157   :  { %v4455_v55 = vpop.f32.mrb[54].mxu0 }
0x3158   :  { %v4456_v54 = vadd.f32 %v10215_v58, %v4455_v55  ;;  %v8737_v56 = vpop.f32.mrb[55].mxu0 }
0x315a   :  { %v4460_v57 = vmin.f32 %v4456_v54, 0.0  ;;  %vm4459_vm7 = vcmp.gt.f32.partialorder %v4456_v54, 0.0 }
0x315c   :  { %v4461_v47 = vmul.f32 1.442695, %v4460_v57 }
0x315e   :  { %9581 = vpow2.f32 %v4461_v47 }
0x3168   :  { %v9582_v11 = vpop.eup %9581 }
0x3169   :  { %v7748_v59 = vadd.f32 -1.0, %v9582_v11 }
0x316b   :  { %v4464_v60 = vsel %vm4459_vm7, %v4456_v54, %v7748_v59 }
0x316c   :  { %8747 = vmatmul.mubr.msk.f32.vlgmr.msra.gmra.mrb[56].mxu1 %vm141_vm3, %v4464_v60 }
0x316d   :  { %8761 = vmatpush3.msk.msra.mxu1 %vm867_vm4, %v10158_v17  ;;  %8762 = vmatprep.mubr.msk.f32.mxu1 %vm9642_vm2, %v9643_v2 }
0x316e   :  { %9352 = vmatprep.subr.bf16.mxu1 %v9641_v1 }
0x323f   :  { %v4534_v61 = vpop.f32.mrb[56].mxu1 }
0x3240   :  { %v4535_v62 = vadd.f32 %v10227_v4, %v4534_v61  ;;  %v8748_v63 = vpop.f32.mrb[57].mxu1 }
0x3242   :  { %v4539_v0 = vmin.f32 %v4535_v62, 0.0  ;;  %vm4538_vm8 = vcmp.gt.f32.partialorder %v4535_v62, 0.0 }
0x3244   :  { %v4540_v3 = vmul.f32 1.442695, %v4539_v0 }
0x3246   :  { %9583 = vpow2.f32 %v4540_v3 }
0x3250   :  { %v9584_v7 = vpop.eup %9583 }
0x3251   :  { %v7750_v8 = vadd.f32 -1.0, %v9584_v7 }
0x3253   :  { %v4543_v9 = vsel %vm4538_vm8, %v4535_v62, %v7750_v8 }
0x3254   :  { %8758 = vmatmul.mubr.msk.f32.vlgmr.msra.gmra.mrb[56].mxu0 %vm141_vm3, %v4543_v9 }
0x3255   :  { %9348 = vmatpush3.bf16.msra.mxu0 %v9836_v23  ;;  %8773 = vmatprep.mubr.msk.f32.mxu0 %vm9642_vm2, %v9643_v2 }
0x3256   :  { %9349 = vmatprep.subr.bf16.mxu0 %v9641_v1 }
0x3259   :  { %9351 = vmatpush3.bf16.msra.mxu0 %v9848_v28 }
0x325a   :  { %8787 = vmatprep.subr.mxu0 %v9643_v2 }
0x3327   :  { %v4613_v12 = vpop.f32.mrb[56].mxu0 }
0x3328   :  { %v4614_v13 = vadd.f32 %v10240_v18, %v4613_v12  ;;  %v8759_v14 = vpop.f32.mrb[57].mxu0 }
0x332a   :  { %v4621_v15 = vadd.f32 %v4620_v38, %v4614_v13 }
0x332c   :  { %v4622_v16 = vmul.f32 0.023809524, %v4621_v15 }
0x332e   :  { %v10293_v19 = vadd.f32 %v4622_v16, %v10175_v35 }
0x3330   :  { %8763 = vmatmul.mubr.msk.f32.vlgmr.msra.gmra.mrb[58].mxu1 %vm863_vm6, %v10293_v19 }
0x3331   :  { %9354 = vmatpush3.bf16.msra.mxu1 %v9799_v6  ;;  %8784 = vmatprep.mubr.msk.f32.mxu1 %vm9642_vm2, %v9643_v2 }
0x3332   :  { %9355 = vmatprep.subr.bf16.mxu1 %v9641_v1 }
0x3335   :  { %9357 = vmatpush3.bf16.msra.mxu1 %v9808_v10 }
0x3336   :  { %9358 = vmatprep.subr.bf16.mxu1 %v9641_v1 }
0x3403   :  { %v4693_v20 = vpop.f32.mrb[58].mxu1 }
0x3404   :  { %v4694_v21 = vadd.f32 %v10215_v58, %v4693_v20  ;;  %v8764_v22 = vpop.f32.mrb[59].mxu1 }
0x3406   :  { %v4698_v24 = vmin.f32 %v4694_v21, 0.0  ;;  %vm4697_vm9 = vcmp.gt.f32.partialorder %v4694_v21, 0.0 }
0x3408   :  { %v4699_v25 = vmul.f32 1.442695, %v4698_v24 }
0x340a   :  { %9585 = vpow2.f32 %v4699_v25 }
0x3414   :  { %v9586_v26 = vpop.eup %9585 }
0x3415   :  { %v7754_v30 = vadd.f32 -1.0, %v9586_v26 }
0x3417   :  { %v4702_v31 = vsel %vm4697_vm9, %v4694_v21, %v7754_v30 }
0x3418   :  { %8774 = vmatmul.mubr.msk.f32.vlgmr.msra.gmra.mrb[58].mxu0 %vm141_vm3, %v4702_v31 }
0x3419   :  { %8788 = vmatpush3.msk.msra.mxu0 %vm867_vm4, %v10158_v17  ;;  %8789 = vmatprep.mubr.msk.f32.mxu0 %vm9642_vm2, %v9643_v2 }
0x341a   :  { %9364 = vmatprep.subr.bf16.mxu0 %v9641_v1 }
0x34eb   :  { %v4772_v32 = vpop.f32.mrb[58].mxu0 }
0x34ec   :  { %v4773_v33 = vadd.f32 %v10227_v4, %v4772_v32  ;;  %v8775_v34 = vpop.f32.mrb[59].mxu0 }
0x34ee   :  { %v4777_v36 = vmin.f32 %v4773_v33, 0.0  ;;  %vm4776_vm10 = vcmp.gt.f32.partialorder %v4773_v33, 0.0 }
0x34f0   :  { %v4778_v37 = vmul.f32 1.442695, %v4777_v36 }
0x34f2   :  { %9587 = vpow2.f32 %v4778_v37 }
0x34fc   :  { %v9588_v39 = vpop.eup %9587 }
0x34fd   :  { %v7756_v40 = vadd.f32 -1.0, %v9588_v39 }
0x34ff   :  { %v4781_v41 = vsel %vm4776_vm10, %v4773_v33, %v7756_v40 }
0x3500   :  { %8785 = vmatmul.mubr.msk.f32.vlgmr.msra.gmra.mrb[60].mxu1 %vm141_vm3, %v4781_v41 }
0x3501   :  { %9360 = vmatpush3.bf16.msra.mxu1 %v9836_v23  ;;  %8800 = vmatprep.mubr.msk.f32.mxu1 %vm9642_vm2, %v9643_v2 }
0x3502   :  { %9361 = vmatprep.subr.bf16.mxu1 %v9641_v1 }
0x3505   :  { %9363 = vmatpush3.bf16.msra.mxu1 %v9848_v28 }
0x3506   :  { %8814 = vmatprep.subr.mxu1 %v9643_v2 }
0x35d3   :  { %v4851_v42 = vpop.f32.mrb[60].mxu1 }
0x35d4   :  { %v10319_v43 = vadd.f32 %v10240_v18, %v4851_v42  ;;  %v8786_v44 = vpop.f32.mrb[61].mxu1 }
0x35d6   :  { %v4855_v45 = vmul.f32 0.071428575, %v10319_v43 }
0x35d8   :  { %v4856_v29 = vadd.f32 %v4855_v45, %v10293_v19 }
0x35da   :  { %8790 = vmatmul.mubr.msk.f32.vlgmr.msra.gmra.mrb[60].mxu0 %vm863_vm6, %v4856_v29 }
0x35db   :  { %9366 = vmatpush3.bf16.msra.mxu0 %v9799_v6  ;;  %8811 = vmatprep.mubr.msk.f32.mxu0 %vm9642_vm2, %v9643_v2 }
0x35dc   :  { %9367 = vmatprep.subr.bf16.mxu0 %v9641_v1 }
0x35df   :  { %9369 = vmatpush3.bf16.msra.mxu0 %v9808_v10 }
0x35e0   :  { %9370 = vmatprep.subr.bf16.mxu0 %v9641_v1 }
0x36ad   :  { %v4926_v46 = vpop.f32.mrb[60].mxu0 }
0x36ae   :  { %v4927_v48 = vadd.f32 %v10215_v58, %v4926_v46  ;;  %v8791_v49 = vpop.f32.mrb[61].mxu0 }
0x36b0   :  { %v4931_v50 = vmin.f32 %v4927_v48, 0.0  ;;  %vm4930_vm11 = vcmp.gt.f32.partialorder %v4927_v48, 0.0 }
0x36b2   :  { %v4932_v52 = vmul.f32 1.442695, %v4931_v50 }
0x36b4   :  { %9589 = vpow2.f32 %v4932_v52 }
0x36be   :  { %v9590_v53 = vpop.eup %9589 }
0x36bf   :  { %v7760_v38 = vadd.f32 -1.0, %v9590_v53 }
0x36c1   :  { %v4935_v55 = vsel %vm4930_vm11, %v4927_v48, %v7760_v38 }
0x36c2   :  { %8801 = vmatmul.mubr.msk.f32.vlgmr.msra.gmra.mrb[62].mxu1 %vm141_vm3, %v4935_v55 }
0x36c3   :  { %8815 = vmatpush3.msk.msra.mxu1 %vm867_vm4, %v10158_v17  ;;  %8816 = vmatprep.mubr.msk.f32.mxu1 %vm9642_vm2, %v9643_v2 }
0x36c4   :  { %9376 = vmatprep.subr.bf16.mxu1 %v9641_v1 }
0x3795   :  { %v5005_v54 = vpop.f32.mrb[62].mxu1 }
0x3796   :  { %v5006_v56 = vadd.f32 %v10227_v4, %v5005_v54  ;;  %v8802_v57 = vpop.f32.mrb[63].mxu1 }
0x3798   :  { %v5010_v47 = vmin.f32 %v5006_v56, 0.0  ;;  %vm5009_vm12 = vcmp.gt.f32.partialorder %v5006_v56, 0.0 }
0x379a   :  { %v5011_v11 = vmul.f32 1.442695, %v5010_v47 }
0x379c   :  { %9591 = vpow2.f32 %v5011_v11 }
0x37a6   :  { %v9592_v59 = vpop.eup %9591 }
0x37a7   :  { %v7762_v60 = vadd.f32 -1.0, %v9592_v59 }
0x37a9   :  { %v5014_v61 = vsel %vm5009_vm12, %v5006_v56, %v7762_v60 }
0x37aa   :  { %8812 = vmatmul.mubr.msk.f32.vlgmr.msra.gmra.mrb[62].mxu0 %vm141_vm3, %v5014_v61 }
0x37ab   :  { %9372 = vmatpush3.bf16.msra.mxu0 %v9836_v23  ;;  %8827 = vmatprep.mubr.msk.f32.mxu0 %vm9642_vm2, %v9643_v2 }
0x37ac   :  { %9373 = vmatprep.subr.bf16.mxu0 %v9641_v1 }
0x37af   :  { %9375 = vmatpush3.bf16.msra.mxu0 %v9848_v28 }
0x37b0   :  { %8841 = vmatprep.subr.mxu0 %v9643_v2 }
0x387d   :  { %v5084_v62 = vpop.f32.mrb[62].mxu0 }
0x387e   :  { %v5085_v63 = vadd.f32 %v10240_v18, %v5084_v62  ;;  %v8813_v0 = vpop.f32.mrb[63].mxu0 }
0x3880   :  { %v5088_v3 = vmul.f32 0.071428575, %v5085_v63  ;;  %v5554_v33 = vmul.f32 2.0, %v5085_v63 }
0x3882   :  { %v5089_v7 = vadd.f32 %v5088_v3, %v10293_v19  ;;  %v5555_v39 = vadd.f32 %v5554_v33, %v10319_v43 }
0x3884   :  { %8817 = vmatmul.mubr.msk.f32.vlgmr.msra.gmra.mrb[64].mxu1 %vm863_vm6, %v5089_v7 }
0x3885   :  { %9378 = vmatpush3.bf16.msra.mxu1 %v9799_v6  ;;  %8838 = vmatprep.mubr.msk.f32.mxu1 %vm9642_vm2, %v9643_v2 }
0x3886   :  { %9379 = vmatprep.subr.bf16.mxu1 %v9641_v1 }
0x3889   :  { %9381 = vmatpush3.bf16.msra.mxu1 %v9808_v10 }
0x388a   :  { %9382 = vmatprep.subr.bf16.mxu1 %v9641_v1 }
0x3957   :  { %v5159_v8 = vpop.f32.mrb[64].mxu1 }
0x3958   :  { %v5160_v9 = vadd.f32 %v10215_v58, %v5159_v8  ;;  %v8818_v12 = vpop.f32.mrb[65].mxu1 }
0x395a   :  { %v5164_v13 = vmin.f32 %v5160_v9, 0.0  ;;  %vm5163_vm13 = vcmp.gt.f32.partialorder %v5160_v9, 0.0 }
0x395c   :  { %v5165_v14 = vmul.f32 1.442695, %v5164_v13 }
0x395e   :  { %9593 = vpow2.f32 %v5165_v14 }
0x3968   :  { %v9594_v15 = vpop.eup %9593 }
0x3969   :  { %v7766_v16 = vadd.f32 -1.0, %v9594_v15 }
0x396b   :  { %v5168_v20 = vsel %vm5163_vm13, %v5160_v9, %v7766_v16 }
0x396c   :  { %8828 = vmatmul.mubr.msk.f32.vlgmr.msra.gmra.mrb[64].mxu0 %vm141_vm3, %v5168_v20 }
0x396d   :  { %8842 = vmatpush3.msk.msra.mxu0 %vm867_vm4, %v10158_v17  ;;  %8843 = vmatprep.mubr.msk.f32.mxu0 %vm9642_vm2, %v9643_v2 }
0x396e   :  { %9388 = vmatprep.subr.bf16.mxu0 %v9641_v1 }
0x3a3f   :  { %v5238_v21 = vpop.f32.mrb[64].mxu0 }
0x3a40   :  { %v5239_v22 = vadd.f32 %v10227_v4, %v5238_v21  ;;  %v8829_v24 = vpop.f32.mrb[65].mxu0 }
0x3a42   :  { %v5243_v25 = vmin.f32 %v5239_v22, 0.0  ;;  %vm5242_vm14 = vcmp.gt.f32.partialorder %v5239_v22, 0.0 }
0x3a44   :  { %v5244_v26 = vmul.f32 1.442695, %v5243_v25 }
0x3a46   :  { %9595 = vpow2.f32 %v5244_v26 }
0x3a50   :  { %v9596_v30 = vpop.eup %9595 }
0x3a51   :  { %v7768_v31 = vadd.f32 -1.0, %v9596_v30 }
0x3a53   :  { %v5247_v32 = vsel %vm5242_vm14, %v5239_v22, %v7768_v31 }
0x3a54   :  { %8839 = vmatmul.mubr.msk.f32.vlgmr.msra.gmra.mrb[66].mxu1 %vm141_vm3, %v5247_v32 }
0x3a55   :  { %9384 = vmatpush3.bf16.msra.mxu1 %v9836_v23  ;;  %8854 = vmatprep.mubr.msk.f32.mxu1 %vm9642_vm2, %v9643_v2 }
0x3a56   :  { %9385 = vmatprep.subr.bf16.mxu1 %v9641_v1 }
0x3a59   :  { %9387 = vmatpush3.bf16.msra.mxu1 %v9848_v28 }
0x3a5a   :  { %8868 = vmatprep.subr.mxu1 %v9643_v2 }
0x3b27   :  { %v5317_v34 = vpop.f32.mrb[66].mxu1 }
0x3b28   :  { %v5318_v36 = vadd.f32 %v10240_v18, %v5317_v34  ;;  %v8840_v37 = vpop.f32.mrb[67].mxu1 }
0x3b2a   :  { %v5321_v40 = vmul.f32 0.14285715, %v5318_v36  ;;  %v5556_v41 = vmul.f32 2.0, %v5318_v36 }
0x3b2c   :  { %v5322_v42 = vadd.f32 %v5321_v40, %v10293_v19  ;;  %v5557_v44 = vadd.f32 %v5556_v41, %v5555_v39 }
0x3b2e   :  { %8844 = vmatmul.mubr.msk.f32.vlgmr.msra.gmra.mrb[66].mxu0 %vm863_vm6, %v5322_v42 }
0x3b2f   :  { %9390 = vmatpush3.bf16.msra.mxu0 %v9799_v6  ;;  %8865 = vmatprep.mubr.msk.f32.mxu0 %vm9642_vm2, %v9643_v2 }
0x3b30   :  { %9391 = vmatprep.subr.bf16.mxu0 %v9641_v1 }
0x3b33   :  { %9393 = vmatpush3.bf16.msra.mxu0 %v9808_v10 }
0x3b34   :  { %9394 = vmatprep.subr.bf16.mxu0 %v9641_v1 }
0x3c01   :  { %v5392_v45 = vpop.f32.mrb[66].mxu0 }
0x3c02   :  { %v5393_v43 = vadd.f32 %v10215_v58, %v5392_v45  ;;  %v8845_v29 = vpop.f32.mrb[67].mxu0 }
0x3c04   :  { %v5397_v46 = vmin.f32 %v5393_v43, 0.0  ;;  %vm5396_vm15 = vcmp.gt.f32.partialorder %v5393_v43, 0.0 }
0x3c06   :  { %v5398_v48 = vmul.f32 1.442695, %v5397_v46 }
0x3c08   :  { %9597 = vpow2.f32 %v5398_v48 }
0x3c12   :  { %v9598_v49 = vpop.eup %9597 }
0x3c13   :  { %v7772_v50 = vadd.f32 -1.0, %v9598_v49 }
0x3c15   :  { %v5401_v52 = vsel %vm5396_vm15, %v5393_v43, %v7772_v50 }
0x3c16   :  { %8855 = vmatmul.mubr.msk.f32.vlgmr.msra.gmra.mrb[68].mxu1 %vm141_vm3, %v5401_v52 }
0x3c17   :  { %8869 = vmatpush3.msk.msra.mxu1 %vm867_vm4, %v10158_v17  ;;  %8870 = vmatprep.mubr.msk.f32.mxu1 %vm9642_vm2, %v9643_v2 }
0x3c18   :  { %9400 = vmatprep.subr.bf16.mxu1 %v9641_v1 }
0x3ce9   :  { %v5471_v53 = vpop.f32.mrb[68].mxu1 }
0x3cea   :  { %v5472_v38 = vadd.f32 %v10227_v4, %v5471_v53  ;;  %v8856_v55 = vpop.f32.mrb[69].mxu1 }
0x3cec   :  { %v5476_v54 = vmin.f32 %v5472_v38, 0.0  ;;  %vm5475_vm5 = vcmp.gt.f32.partialorder %v5472_v38, 0.0 }
0x3cee   :  { %v5477_v56 = vmul.f32 1.442695, %v5476_v54 }
0x3cf0   :  { %9599 = vpow2.f32 %v5477_v56 }
0x3cfa   :  { %v9600_v57 = vpop.eup %9599 }
0x3cfb   :  { %v7774_v47 = vadd.f32 -1.0, %v9600_v57 }
0x3cfd   :  { %v5480_v11 = vsel %vm5475_vm5, %v5472_v38, %v7774_v47 }
0x3cfe   :  { %8866 = vmatmul.mubr.msk.f32.vlgmr.msra.gmra.mrb[68].mxu0 %vm141_vm3, %v5480_v11 }
0x3cff   :  { %9396 = vmatpush3.bf16.msra.mxu0 %v9836_v23  ;;  %8881 = vmatprep.mubr.msk.f32.mxu0 %vm9642_vm2, %v9643_v2 }
0x3d00   :  { %9397 = vmatprep.subr.bf16.mxu0 %v9641_v1 }
0x3d03   :  { %9399 = vmatpush3.bf16.msra.mxu0 %v9848_v28 }
0x3d04   :  { %8895 = vmatprep.subr.mxu0 %v9643_v2 }
0x3dd1   :  { %v5550_v59 = vpop.f32.mrb[68].mxu0 }
0x3dd2   :  { %v5551_v60 = vadd.f32 %v10240_v18, %v5550_v59  ;;  %v8867_v61 = vpop.f32.mrb[69].mxu0 }
0x3dd4   :  { %v5558_v62 = vadd.f32 %v5557_v44, %v5551_v60 }
0x3dd6   :  { %v5559_v63 = vmul.f32 0.023809524, %v5558_v62 }
0x3dd8   :  { %v10396_v0 = vadd.f32 %v5559_v63, %v10293_v19 }
0x3dda   :  { %8871 = vmatmul.mubr.msk.f32.vlgmr.msra.gmra.mrb[70].mxu1 %vm863_vm6, %v10396_v0 }
0x3ddb   :  { %9402 = vmatpush3.bf16.msra.mxu1 %v9799_v6  ;;  %8892 = vmatprep.mubr.msk.f32.mxu1 %vm9642_vm2, %v9643_v2 }
0x3ddc   :  { %9403 = vmatprep.subr.bf16.mxu1 %v9641_v1 }
0x3ddf   :  { %9405 = vmatpush3.bf16.msra.mxu1 %v9808_v10 }
0x3de0   :  { %9406 = vmatprep.subr.bf16.mxu1 %v9641_v1 }
0x3ead   :  { %v5630_v3 = vpop.f32.mrb[70].mxu1 }
0x3eae   :  { %v5631_v7 = vadd.f32 %v10215_v58, %v5630_v3  ;;  %v8872_v8 = vpop.f32.mrb[71].mxu1 }
0x3eb0   :  { %v5635_v9 = vmin.f32 %v5631_v7, 0.0  ;;  %vm5634_vm7 = vcmp.gt.f32.partialorder %v5631_v7, 0.0 }
0x3eb2   :  { %v5636_v12 = vmul.f32 1.442695, %v5635_v9 }
0x3eb4   :  { %9601 = vpow2.f32 %v5636_v12 }
0x3ebe   :  { %v9602_v13 = vpop.eup %9601 }
0x3ebf   :  { %v7778_v14 = vadd.f32 -1.0, %v9602_v13 }
0x3ec1   :  { %v5639_v15 = vsel %vm5634_vm7, %v5631_v7, %v7778_v14 }
0x3ec2   :  { %8882 = vmatmul.mubr.msk.f32.vlgmr.msra.gmra.mrb[70].mxu0 %vm141_vm3, %v5639_v15 }
0x3ec3   :  { %8896 = vmatpush3.msk.msra.mxu0 %vm867_vm4, %v10158_v17  ;;  %8897 = vmatprep.mubr.msk.f32.mxu0 %vm9642_vm2, %v9643_v2 }
0x3ec4   :  { %9412 = vmatprep.subr.bf16.mxu0 %v9641_v1 }
0x3f95   :  { %v5709_v16 = vpop.f32.mrb[70].mxu0 }
0x3f96   :  { %v5710_v20 = vadd.f32 %v10227_v4, %v5709_v16  ;;  %v8883_v21 = vpop.f32.mrb[71].mxu0 }
0x3f98   :  { %v5714_v22 = vmin.f32 %v5710_v20, 0.0  ;;  %vm5713_vm8 = vcmp.gt.f32.partialorder %v5710_v20, 0.0 }
0x3f9a   :  { %v5715_v24 = vmul.f32 1.442695, %v5714_v22 }
0x3f9c   :  { %9603 = vpow2.f32 %v5715_v24 }
0x3fa6   :  { %v9604_v25 = vpop.eup %9603 }
0x3fa7   :  { %v7780_v26 = vadd.f32 -1.0, %v9604_v25 }
0x3fa9   :  { %v5718_v30 = vsel %vm5713_vm8, %v5710_v20, %v7780_v26 }
0x3faa   :  { %8893 = vmatmul.mubr.msk.f32.vlgmr.msra.gmra.mrb[72].mxu1 %vm141_vm3, %v5718_v30 }
0x3fab   :  { %9408 = vmatpush3.bf16.msra.mxu1 %v9836_v23  ;;  %8908 = vmatprep.mubr.msk.f32.mxu1 %vm9642_vm2, %v9643_v2 }
0x3fac   :  { %9409 = vmatprep.subr.bf16.mxu1 %v9641_v1 }
0x3faf   :  { %9411 = vmatpush3.bf16.msra.mxu1 %v9848_v28 }
0x3fb0   :  { %8922 = vmatprep.subr.mxu1 %v9643_v2 }
0x407d   :  { %v5788_v31 = vpop.f32.mrb[72].mxu1 }
0x407e   :  { %v10422_v32 = vadd.f32 %v10240_v18, %v5788_v31  ;;  %v8894_v33 = vpop.f32.mrb[73].mxu1 }
0x4080   :  { %v5792_v34 = vmul.f32 0.071428575, %v10422_v32 }
0x4082   :  { %v5793_v36 = vadd.f32 %v5792_v34, %v10396_v0 }
0x4084   :  { %8898 = vmatmul.mubr.msk.f32.vlgmr.msra.gmra.mrb[72].mxu0 %vm863_vm6, %v5793_v36 }
0x4085   :  { %9414 = vmatpush3.bf16.msra.mxu0 %v9799_v6  ;;  %8919 = vmatprep.mubr.msk.f32.mxu0 %vm9642_vm2, %v9643_v2 }
0x4086   :  { %9415 = vmatprep.subr.bf16.mxu0 %v9641_v1 }
0x4089   :  { %9417 = vmatpush3.bf16.msra.mxu0 %v9808_v10 }
0x408a   :  { %9418 = vmatprep.subr.bf16.mxu0 %v9641_v1 }
0x4157   :  { %v5863_v37 = vpop.f32.mrb[72].mxu0 }
0x4158   :  { %v5864_v39 = vadd.f32 %v10215_v58, %v5863_v37  ;;  %v8899_v40 = vpop.f32.mrb[73].mxu0 }
0x415a   :  { %v5868_v41 = vmin.f32 %v5864_v39, 0.0  ;;  %vm5867_vm9 = vcmp.gt.f32.partialorder %v5864_v39, 0.0 }
0x415c   :  { %v5869_v42 = vmul.f32 1.442695, %v5868_v41 }
0x415e   :  { %9605 = vpow2.f32 %v5869_v42 }
0x4168   :  { %v9606_v44 = vpop.eup %9605 }
0x4169   :  { %v7784_v45 = vadd.f32 -1.0, %v9606_v44 }
0x416b   :  { %v5872_v43 = vsel %vm5867_vm9, %v5864_v39, %v7784_v45 }
0x416c   :  { %8909 = vmatmul.mubr.msk.f32.vlgmr.msra.gmra.mrb[74].mxu1 %vm141_vm3, %v5872_v43 }
0x416d   :  { %8923 = vmatpush3.msk.msra.mxu1 %vm867_vm4, %v10158_v17  ;;  %8924 = vmatprep.mubr.msk.f32.mxu1 %vm9642_vm2, %v9643_v2 }
0x416e   :  { %9424 = vmatprep.subr.bf16.mxu1 %v9641_v1 }
0x423f   :  { %v5942_v29 = vpop.f32.mrb[74].mxu1 }
0x4240   :  { %v5943_v46 = vadd.f32 %v10227_v4, %v5942_v29  ;;  %v8910_v48 = vpop.f32.mrb[75].mxu1 }
0x4242   :  { %v5947_v49 = vmin.f32 %v5943_v46, 0.0  ;;  %vm5946_vm10 = vcmp.gt.f32.partialorder %v5943_v46, 0.0 }
0x4244   :  { %v5948_v50 = vmul.f32 1.442695, %v5947_v49 }
0x4246   :  { %9607 = vpow2.f32 %v5948_v50 }
0x4250   :  { %v9608_v52 = vpop.eup %9607 }
0x4251   :  { %v7786_v53 = vadd.f32 -1.0, %v9608_v52 }
0x4253   :  { %v5951_v38 = vsel %vm5946_vm10, %v5943_v46, %v7786_v53 }
0x4254   :  { %8920 = vmatmul.mubr.msk.f32.vlgmr.msra.gmra.mrb[74].mxu0 %vm141_vm3, %v5951_v38 }
0x4255   :  { %9420 = vmatpush3.bf16.msra.mxu0 %v9836_v23  ;;  %8935 = vmatprep.mubr.msk.f32.mxu0 %vm9642_vm2, %v9643_v2 }
0x4256   :  { %9421 = vmatprep.subr.bf16.mxu0 %v9641_v1 }
0x4259   :  { %9423 = vmatpush3.bf16.msra.mxu0 %v9848_v28 }
0x425a   :  { %8949 = vmatprep.subr.mxu0 %v9643_v2 }
0x4327   :  { %v6021_v55 = vpop.f32.mrb[74].mxu0 }
0x4328   :  { %v6022_v54 = vadd.f32 %v10240_v18, %v6021_v55  ;;  %v8921_v56 = vpop.f32.mrb[75].mxu0 }
0x432a   :  { %v6025_v57 = vmul.f32 0.071428575, %v6022_v54  ;;  %v6491_v21 = vmul.f32 2.0, %v6022_v54 }
0x432c   :  { %v6026_v47 = vadd.f32 %v6025_v57, %v10396_v0  ;;  %v6492_v26 = vadd.f32 %v6491_v21, %v10422_v32 }
0x432e   :  { %8925 = vmatmul.mubr.msk.f32.vlgmr.msra.gmra.mrb[76].mxu1 %vm863_vm6, %v6026_v47 }
0x432f   :  { %9426 = vmatpush3.bf16.msra.mxu1 %v9799_v6  ;;  %8946 = vmatprep.mubr.msk.f32.mxu1 %vm9642_vm2, %v9643_v2 }
0x4330   :  { %9427 = vmatprep.subr.bf16.mxu1 %v9641_v1 }
0x4333   :  { %9429 = vmatpush3.bf16.msra.mxu1 %v9808_v10 }
0x4334   :  { %9430 = vmatprep.subr.bf16.mxu1 %v9641_v1 }
0x4401   :  { %v6096_v11 = vpop.f32.mrb[76].mxu1 }
0x4402   :  { %v6097_v59 = vadd.f32 %v10215_v58, %v6096_v11  ;;  %v8926_v60 = vpop.f32.mrb[77].mxu1 }
0x4404   :  { %v6101_v61 = vmin.f32 %v6097_v59, 0.0  ;;  %vm6100_vm11 = vcmp.gt.f32.partialorder %v6097_v59, 0.0 }
0x4406   :  { %v6102_v62 = vmul.f32 1.442695, %v6101_v61 }
0x4408   :  { %9609 = vpow2.f32 %v6102_v62 }
0x4412   :  { %v9610_v63 = vpop.eup %9609 }
0x4413   :  { %v7790_v3 = vadd.f32 -1.0, %v9610_v63 }
0x4415   :  { %v6105_v7 = vsel %vm6100_vm11, %v6097_v59, %v7790_v3  ;;  %v10514_v3 = vld [vmem:[%s10645_s2 + $0x48] sm:$0xf]  ;;  %vm7450_vm11 = vcmask 1045504  }
0x4416   :  { %8936 = vmatmul.mubr.msk.f32.vlgmr.msra.gmra.mrb[76].mxu0 %vm141_vm3, %v6105_v7 }
0x4417   :  { %8950 = vmatpush3.msk.msra.mxu0 %vm867_vm4, %v10158_v17  ;;  %8951 = vmatprep.mubr.msk.f32.mxu0 %vm9642_vm2, %v9643_v2 }
0x4418   :  { %9436 = vmatprep.subr.bf16.mxu0 %v9641_v1 }
0x44e9   :  { %v6175_v8 = vpop.f32.mrb[76].mxu0 }
0x44ea   :  { %v6176_v9 = vadd.f32 %v10227_v4, %v6175_v8  ;;  %v8937_v12 = vpop.f32.mrb[77].mxu0 }
0x44ec   :  { %v6180_v13 = vmin.f32 %v6176_v9, 0.0  ;;  %vm6179_vm12 = vcmp.gt.f32.partialorder %v6176_v9, 0.0 }
0x44ee   :  { %v6181_v14 = vmul.f32 1.442695, %v6180_v13 }
0x44f0   :  { %9611 = vpow2.f32 %v6181_v14 }
0x44fa   :  { %v9612_v15 = vpop.eup %9611 }
0x44fb   :  { %v7792_v16 = vadd.f32 -1.0, %v9612_v15 }
0x44fd   :  { %v6184_v20 = vsel %vm6179_vm12, %v6176_v9, %v7792_v16 }
0x44fe   :  { %8947 = vmatmul.mubr.msk.f32.vlgmr.msra.gmra.mrb[78].mxu1 %vm141_vm3, %v6184_v20 }
0x44ff   :  { %9432 = vmatpush3.bf16.msra.mxu1 %v9836_v23  ;;  %8962 = vmatprep.mubr.msk.f32.mxu1 %vm9642_vm2, %v9643_v2 }
0x4500   :  { %9433 = vmatprep.subr.bf16.mxu1 %v9641_v1 }
0x4503   :  { %9435 = vmatpush3.bf16.msra.mxu1 %v9848_v28 }
0x4504   :  { %8976 = vmatprep.subr.mxu1 %v9643_v2 }
0x45d1   :  { %v6254_v22 = vpop.f32.mrb[78].mxu1 }
0x45d2   :  { %v6255_v24 = vadd.f32 %v10240_v18, %v6254_v22  ;;  %v8948_v25 = vpop.f32.mrb[79].mxu1 }
0x45d4   :  { %v6258_v30 = vmul.f32 0.14285715, %v6255_v24  ;;  %v6493_v31 = vmul.f32 2.0, %v6255_v24 }
0x45d6   :  { %v6259_v33 = vadd.f32 %v6258_v30, %v10396_v0  ;;  %v6494_v34 = vadd.f32 %v6493_v31, %v6492_v26 }
0x45d8   :  { %8952 = vmatmul.mubr.msk.f32.vlgmr.msra.gmra.mrb[78].mxu0 %vm863_vm6, %v6259_v33 }
0x45d9   :  { %9438 = vmatpush3.bf16.msra.mxu0 %v9799_v6  ;;  %8973 = vmatprep.mubr.msk.f32.mxu0 %vm9642_vm2, %v9643_v2 }
0x45da   :  { %9439 = vmatprep.subr.bf16.mxu0 %v9641_v1 }
0x45dd   :  { %9441 = vmatpush3.bf16.msra.mxu0 %v9808_v10 }
0x45de   :  { %9442 = vmatprep.subr.bf16.mxu0 %v9641_v1 }
0x46ab   :  { %v6329_v36 = vpop.f32.mrb[78].mxu0 }
0x46ac   :  { %v6330_v32 = vadd.f32 %v10215_v58, %v6329_v36  ;;  %v8953_v37 = vpop.f32.mrb[79].mxu0 }
0x46ae   :  { %v6334_v39 = vmin.f32 %v6330_v32, 0.0  ;;  %vm6333_vm13 = vcmp.gt.f32.partialorder %v6330_v32, 0.0 }
0x46b0   :  { %v6335_v40 = vmul.f32 1.442695, %v6334_v39 }
0x46b2   :  { %9613 = vpow2.f32 %v6335_v40 }
0x46bc   :  { %v9614_v41 = vpop.eup %9613 }
0x46bd   :  { %v7796_v42 = vadd.f32 -1.0, %v9614_v41 }
0x46bf   :  { %v6338_v44 = vsel %vm6333_vm13, %v6330_v32, %v7796_v42 }
0x46c0   :  { %8963 = vmatmul.mubr.msk.f32.vlgmr.msra.gmra.mrb[80].mxu1 %vm141_vm3, %v6338_v44 }
0x46c1   :  { %8977 = vmatpush3.msk.msra.mxu1 %vm867_vm4, %v10158_v17  ;;  %8978 = vmatprep.mubr.msk.f32.mxu1 %vm9642_vm2, %v9643_v2 }
0x46c2   :  { %9448 = vmatprep.subr.bf16.mxu1 %v9641_v1 }
0x4793   :  { %v6408_v45 = vpop.f32.mrb[80].mxu1 }
0x4794   :  { %v6409_v43 = vadd.f32 %v10227_v4, %v6408_v45  ;;  %v8964_v29 = vpop.f32.mrb[81].mxu1 }
0x4796   :  { %v6413_v46 = vmin.f32 %v6409_v43, 0.0  ;;  %vm6412_vm14 = vcmp.gt.f32.partialorder %v6409_v43, 0.0 }
0x4798   :  { %v6414_v48 = vmul.f32 1.442695, %v6413_v46 }
0x479a   :  { %9615 = vpow2.f32 %v6414_v48 }
0x47a4   :  { %v9616_v49 = vpop.eup %9615 }
0x47a5   :  { %v7798_v50 = vadd.f32 -1.0, %v9616_v49 }
0x47a7   :  { %v6417_v52 = vsel %vm6412_vm14, %v6409_v43, %v7798_v50 }
0x47a8   :  { %8974 = vmatmul.mubr.msk.f32.vlgmr.msra.gmra.mrb[80].mxu0 %vm141_vm3, %v6417_v52 }
0x47a9   :  { %9444 = vmatpush3.bf16.msra.mxu0 %v9836_v23  ;;  %8989 = vmatprep.mubr.msk.f32.mxu0 %vm9642_vm2, %v9643_v2 }
0x47aa   :  { %9445 = vmatprep.subr.bf16.mxu0 %v9641_v1 }
0x47ad   :  { %9447 = vmatpush3.bf16.msra.mxu0 %v9848_v28 }
0x47ae   :  { %9003 = vmatprep.subr.mxu0 %v9643_v2 }
0x487b   :  { %v6487_v17 = vpop.f32.mrb[80].mxu0 }
0x487c   :  { %v6488_v53 = vadd.f32 %v10240_v18, %v6487_v17  ;;  %v8975_v38 = vpop.f32.mrb[81].mxu0 }
0x487e   :  { %v6495_v55 = vadd.f32 %v6494_v34, %v6488_v53 }
0x4880   :  { %v6496_v54 = vmul.f32 0.023809524, %v6495_v55 }
0x4882   :  { %v10499_v56 = vadd.f32 %v6496_v54, %v10396_v0 }
0x4884   :  { %8979 = vmatmul.mubr.msk.f32.vlgmr.msra.gmra.mrb[82].mxu1 %vm863_vm6, %v10499_v56 }
0x4885   :  { %9450 = vmatpush3.bf16.msra.mxu1 %v9799_v6  ;;  %9000 = vmatprep.mubr.msk.f32.mxu1 %vm9642_vm2, %v9643_v2 }
0x4886   :  { %9451 = vmatprep.subr.bf16.mxu1 %v9641_v1 }
0x4889   :  { %9453 = vmatpush3.bf16.msra.mxu1 %v9808_v10 }
0x488a   :  { %9454 = vmatprep.subr.bf16.mxu1 %v9641_v1 }
0x4957   :  { %v6567_v57 = vpop.f32.mrb[82].mxu1 }
0x4958   :  { %v6568_v47 = vadd.f32 %v10215_v58, %v6567_v57  ;;  %v8980_v11 = vpop.f32.mrb[83].mxu1 }
0x4959   :  { %v9639_v11 = vld [vmem:[%s10647_s3 + $0x3] ss:$0 sm:$0xff] }
0x495a   :  { %v6572_v59 = vmin.f32 %v6568_v47, 0.0  ;;  %vm6571_vm15 = vcmp.gt.f32.partialorder %v6568_v47, 0.0 }
0x495c   :  { %v6573_v60 = vmul.f32 1.442695, %v6572_v59 }
0x495e   :  { %9617 = vpow2.f32 %v6573_v60 }
0x4968   :  { %v9618_v61 = vpop.eup %9617 }
0x4969   :  { %v7802_v62 = vadd.f32 -1.0, %v9618_v61 }
0x496b   :  { %v6576_v63 = vsel %vm6571_vm15, %v6568_v47, %v7802_v62 }
0x496c   :  { %8990 = vmatmul.mubr.msk.f32.vlgmr.msra.gmra.mrb[82].mxu0 %vm141_vm3, %v6576_v63 }
0x496d   :  { %9004 = vmatpush3.msk.msra.mxu0 %vm867_vm4, %v10514_v3  ;;  %9005 = vmatprep.mubr.msk.f32.mxu0 %vm9642_vm2, %v9643_v2 }
0x496e   :  { %9460 = vmatprep.subr.bf16.mxu0 %v9641_v1 }
0x4a3f   :  { %v6646_v7 = vpop.f32.mrb[82].mxu0 }
0x4a40   :  { %v6647_v8 = vadd.f32 %v10227_v4, %v6646_v7  ;;  %v8991_v9 = vpop.f32.mrb[83].mxu0 }
0x4a42   :  { %v6651_v12 = vmin.f32 %v6647_v8, 0.0  ;;  %vm6650_vm5 = vcmp.gt.f32.partialorder %v6647_v8, 0.0 }
0x4a44   :  { %v6652_v13 = vmul.f32 1.442695, %v6651_v12  ;;  %v9640_v12 = vld [vmem:[%s10647_s3 + $0x4] ss:$0 sm:$0xff] }
0x4a46   :  { %9619 = vpow2.f32 %v6652_v13 }
0x4a50   :  { %v9620_v14 = vpop.eup %9619 }
0x4a51   :  { %v7804_v15 = vadd.f32 -1.0, %v9620_v14 }
0x4a53   :  { %v6655_v16 = vsel %vm6650_vm5, %v6647_v8, %v7804_v15 }
0x4a54   :  { %9001 = vmatmul.mubr.msk.f32.vlgmr.msra.gmra.mrb[84].mxu1 %vm141_vm3, %v6655_v16 }
0x4a55   :  { %9456 = vmatpush3.bf16.msra.mxu1 %v9836_v23  ;;  %9016 = vmatprep.mubr.msk.f32.mxu1 %vm9642_vm2, %v9643_v2 }
0x4a56   :  { %9457 = vmatprep.subr.bf16.mxu1 %v9641_v1 }
0x4a59   :  { %9459 = vmatpush3.bf16.msra.mxu1 %v9848_v28 }
0x4a5a   :  { %9030 = vmatprep.subr.mxu1 %v9643_v2 }
0x4b27   :  { %v6725_v20 = vpop.f32.mrb[84].mxu1 }
0x4b28   :  { %v10530_v21 = vadd.f32 %v10240_v18, %v6725_v20  ;;  %v9002_v22 = vpop.f32.mrb[85].mxu1 }
0x4b2a   :  { %v6729_v24 = vmul.f32 0.071428575, %v10530_v21 }
0x4b2c   :  { %v6730_v25 = vadd.f32 %v6729_v24, %v10499_v56 }
0x4b2e   :  { %9006 = vmatmul.mubr.msk.f32.vlgmr.msra.gmra.mrb[84].mxu0 %vm863_vm6, %v6730_v25 }
0x4b2f   :  { %9462 = vmatpush3.bf16.msra.mxu0 %v9799_v6  ;;  %9027 = vmatprep.mubr.msk.f32.mxu0 %vm9642_vm2, %v9643_v2 }
0x4b30   :  { %9463 = vmatprep.subr.bf16.mxu0 %v9641_v1 }
0x4b33   :  { %9465 = vmatpush3.bf16.msra.mxu0 %v9808_v10 }
0x4b34   :  { %9466 = vmatprep.subr.bf16.mxu0 %v9641_v1 }
0x4c01   :  { %v6800_v26 = vpop.f32.mrb[84].mxu0 }
0x4c02   :  { %v6801_v30 = vadd.f32 %v10215_v58, %v6800_v26  ;;  %v9007_v31 = vpop.f32.mrb[85].mxu0 }
0x4c03   :  { %v7437_v31 = vrot.slane %v10067_v51, 4 }
0x4c04   :  { %v6805_v33 = vmin.f32 %v6801_v30, 0.0  ;;  %vm6804_vm7 = vcmp.gt.f32.partialorder %v6801_v30, 0.0 }
0x4c06   :  { %v6806_v34 = vmul.f32 1.442695, %v6805_v33 }
0x4c08   :  { %9621 = vpow2.f32 %v6806_v34 }
0x4c12   :  { %v9622_v36 = vpop.eup %9621 }
0x4c13   :  { %v7808_v32 = vadd.f32 -1.0, %v9622_v36 }
0x4c15   :  { %v6809_v37 = vsel %vm6804_vm7, %v6801_v30, %v7808_v32  ;;  %v7435_v30 = vrot.slane %v9964_v5, 6 }
0x4c16   :  { %9017 = vmatmul.mubr.msk.f32.vlgmr.msra.gmra.mrb[86].mxu1 %vm141_vm3, %v6809_v37 }
0x4c17   :  { %9031 = vmatpush3.msk.msra.mxu1 %vm867_vm4, %v10514_v3  ;;  %9032 = vmatprep.mubr.msk.f32.mxu1 %vm9642_vm2, %v9643_v2 }
0x4c18   :  { %9472 = vmatprep.subr.bf16.mxu1 %v9641_v1 }
0x4ce9   :  { %v6879_v39 = vpop.f32.mrb[86].mxu1 }
0x4cea   :  { %v6880_v58 = vadd.f32 %v10227_v4, %v6879_v39  ;;  %v9018_v40 = vpop.f32.mrb[87].mxu1 }
0x4cec   :  { %v6884_v41 = vmin.f32 %v6880_v58, 0.0  ;;  %vm6883_vm8 = vcmp.gt.f32.partialorder %v6880_v58, 0.0 }
0x4cee   :  { %v6885_v42 = vmul.f32 1.442695, %v6884_v41  ;;  %v38_v41 = vld [vmem:[%s10645_s2 + $0x98] sm:$0xff] }
0x4cf0   :  { %9623 = vpow2.f32 %v6885_v42  ;;  %v39_v42 = vld [vmem:[%s10645_s2 + $0xa0] sm:$0xff] }
0x4cfa   :  { %v9624_v44 = vpop.eup %9623 }
0x4cfb   :  { %v7810_v45 = vadd.f32 -1.0, %v9624_v44  ;;  %v9490_v44 = vpack.c.bf16 %v39_v42, %v38_v41 }
0x4cfd   :  { %v6888_v43 = vsel %vm6883_vm8, %v6880_v58, %v7810_v45 }
0x4cfe   :  { %9028 = vmatmul.mubr.msk.f32.vlgmr.msra.gmra.mrb[86].mxu0 %vm141_vm3, %v6888_v43 }
0x4cff   :  { %9468 = vmatpush3.bf16.msra.mxu0 %v9836_v23  ;;  %9043 = vmatprep.mubr.msk.f32.mxu0 %vm9642_vm2, %v9643_v2 }
0x4d00   :  { %9469 = vmatprep.subr.bf16.mxu0 %v9641_v1 }
0x4d03   :  { %9471 = vmatpush3.bf16.msra.mxu0 %v9848_v28 }
0x4d04   :  { %9057 = vmatprep.subr.mxu0 %v9643_v2 }
0x4dd1   :  { %v6958_v4 = vpop.f32.mrb[86].mxu0 }
0x4dd2   :  { %v6959_v29 = vadd.f32 %v10240_v18, %v6958_v4  ;;  %v9029_v46 = vpop.f32.mrb[87].mxu0  ;;  %v9638_v18 = vld [vmem:[%s10647_s3 + $0x2] ss:$0 sm:$0xff] }
0x4dd4   :  { %v6962_v48 = vmul.f32 0.071428575, %v6959_v29 }
0x4dd6   :  { %v6963_v49 = vadd.f32 %v6962_v48, %v10499_v56  ;;  %v7441_v48 = vrot.slane %v10396_v0, 6  ;;  %v41_v0 = vld [vmem:[%s10645_s2 + $0xb0] sm:$0xff] }
0x4dd8   :  { %9033 = vmatmul.mubr.msk.f32.vlgmr.msra.gmra.mrb[88].mxu1 %vm863_vm6, %v6963_v49  ;;  %v7443_v49 = vrot.slane %v10499_v56, 4 }
0x4dd9   :  { %9474 = vmatpush3.bf16.msra.mxu1 %v9799_v6  ;;  %9054 = vmatprep.mubr.msk.f32.mxu1 %vm9642_vm2, %v9643_v2 }
0x4dda   :  { %9475 = vmatprep.subr.bf16.mxu1 %v9641_v1 }
0x4ddd   :  { %9477 = vmatpush3.bf16.msra.mxu1 %v9808_v10 }
0x4dde   :  { %9478 = vmatprep.subr.bf16.mxu1 %v9641_v1 }
0x4eab   :  { %v7033_v50 = vpop.f32.mrb[88].mxu1 }
0x4eac   :  { %v7034_v52 = vadd.f32 %v9638_v18, %v7033_v50  ;;  %v9034_v17 = vpop.f32.mrb[89].mxu1 }
0x4eae   :  { %v7038_v53 = vmin.f32 %v7034_v52, 0.0  ;;  %vm7037_vm9 = vcmp.gt.f32.partialorder %v7034_v52, 0.0 }
0x4eb0   :  { %v7039_v38 = vmul.f32 1.442695, %v7038_v53 }
0x4eb2   :  { %9625 = vpow2.f32 %v7039_v38  ;;  %v40_v38 = vld [vmem:[%s10645_s2 + $0xa8] sm:$0xff] }
0x4ebc   :  { %v9626_v55 = vpop.eup %9625 }
0x4ebd   :  { %v7814_v54 = vadd.f32 -1.0, %v9626_v55  ;;  %v9494_v55 = vpack.c.bf16 %v41_v0, %v40_v38 }
0x4ebf   :  { %v7042_v57 = vsel %vm7037_vm9, %v7034_v52, %v7814_v54  ;;  %v7452_v52 = vsel %vm62_vm0, %v10293_v19, %v7441_v48  ;;  %v7824_v19 = vld [vmem:[%s10647_s3 + $0x5] ss:$0 sm:$0xff] }
0x4ec0   :  { %9044 = vmatmul.mubr.msk.f32.vlgmr.msra.gmra.mrb[88].mxu0 %vm141_vm3, %v7042_v57  ;;  %v7453_v17 = vsel %vm867_vm4, %v7452_v52, %v7443_v49 }
0x4ec1   :  { %9058 = vmatpush3.msk.msra.mxu0 %vm867_vm4, %v10514_v3  ;;  %9059 = vmatprep.mubr.msk.f32.mxu0 %vm9642_vm2, %v9643_v2  ;;  %v7428_v3 = vmul.f32 2.0, %v6959_v29 }
0x4ec2   :  { %9484 = vmatprep.subr.bf16.mxu0 %v9641_v1 }
0x4ec3   :  { %v7429_v15 = vadd.f32 %v7428_v3, %v10530_v21 }
0x4f93   :  { %v7112_v47 = vpop.f32.mrb[88].mxu0 }
0x4f94   :  { %v7113_v59 = vadd.f32 %v9639_v11, %v7112_v47  ;;  %v9045_v60 = vpop.f32.mrb[89].mxu0 }
0x4f95   :  { %v7828_v60 = vld [vmem:[%s10647_s3 + $0x6] ss:$0 sm:$0xff] }
0x4f96   :  { %v7117_v61 = vmin.f32 %v7113_v59, 0.0  ;;  %vm7116_vm10 = vcmp.gt.f32.partialorder %v7113_v59, 0.0 }
0x4f98   :  { %v7118_v62 = vmul.f32 1.442695, %v7117_v61 }
0x4f9a   :  { %9627 = vpow2.f32 %v7118_v62 }
0x4fa4   :  { %v9628_v63 = vpop.eup %9627 }
0x4fa5   :  { %v7816_v7 = vadd.f32 -1.0, %v9628_v63 }
0x4fa7   :  { %v7121_v8 = vsel %vm7116_vm10, %v7113_v59, %v7816_v7 }
0x4fa8   :  { %9055 = vmatmul.mubr.msk.f32.vlgmr.msra.gmra.mrb[90].mxu1 %vm141_vm3, %v7121_v8 }
0x4fa9   :  { %9480 = vmatpush3.bf16.msra.mxu1 %v9836_v23  ;;  %9070 = vmatprep.mubr.msk.f32.mxu1 %vm9642_vm2, %v9643_v2 }
0x4faa   :  { %9481 = vmatprep.subr.bf16.mxu1 %v9641_v1 }
0x4fad   :  { %9483 = vmatpush3.bf16.msra.mxu1 %v9848_v28 }
0x507b   :  { %v7191_v9 = vpop.f32.mrb[90].mxu1 }
0x507c   :  { %v7192_v13 = vadd.f32 %v9640_v12, %v7191_v9  ;;  %v9056_v14 = vpop.f32.mrb[91].mxu1 }
0x507e   :  { %v7195_v16 = vmul.f32 0.14285715, %v7192_v13  ;;  %v7430_v20 = vmul.f32 2.0, %v7192_v13 }
0x5080   :  { %v7196_v23 = vadd.f32 %v7195_v16, %v10499_v56  ;;  %v7431_v22 = vadd.f32 %v7430_v20, %v7429_v15 }
0x5082   :  { %9060 = vmatmul.mubr.msk.f32.vlgmr.msra.gmra.mrb[90].mxu0 %vm863_vm6, %v7196_v23 }
0x5083   :  { %9486 = vmatpush3.bf16.msra.mxu0 %v9799_v6  ;;  %9081 = vmatprep.mubr.msk.f32.mxu0 %vm9642_vm2, %v9643_v2  ;;  %v7439_v6 = vrot.slane %v10175_v35, 2 }
0x5084   :  { %9487 = vmatprep.subr.bf16.mxu0 %v9641_v1  ;;  %v7448_v1 = vsel %vm62_vm0, %v9844_v27, %v7435_v30  ;;  %v37_v27 = vld [vmem:[%s10645_s2 + $0x90] sm:$0xf] }
0x5085   :  { %9084 = vmatprep.subr.msk.mxu1 %vm867_vm4, %v37_v27 }
0x5087   :  { %9489 = vmatpush3.bf16.msra.mxu0 %v9808_v10  ;;  %v7449_v10 = vsel %vm867_vm4, %v7448_v1, %v7437_v31 }
0x5088   :  { %v7451_v36 = vsel %vm7450_vm11, %v7449_v10, %v7439_v6  ;;  %9491 = vmatprep.subr.bf16.mxu0 %v9490_v44 }
0x5155   :  { %v7266_v28 = vpop.f32.mrb[90].mxu0 }
0x5156   :  { %v7267_v24 = vadd.f32 %v9638_v18, %v7266_v28  ;;  %v9061_v25 = vpop.f32.mrb[91].mxu0 }
0x5158   :  { %v7271_v21 = vmin.f32 %v7267_v24, 0.0  ;;  %vm7270_vm2 = vcmp.gt.f32.partialorder %v7267_v24, 0.0 }
0x515a   :  { %v7272_v26 = vmul.f32 1.442695, %v7271_v21 }
0x515c   :  { %9629 = vpow2.f32 %v7272_v26 }
0x5166   :  { %v9630_v33 = vpop.eup %9629 }
0x5167   :  { %v7820_v34 = vadd.f32 -1.0, %v9630_v33 }
0x5169   :  { %v7275_v2 = vsel %vm7270_vm2, %v7267_v24, %v7820_v34 }
0x516a   :  { %9071 = vmatmul.mubr.msk.f32.vlgmr.msra.gmra.mrb[92].mxu1 %vm141_vm3, %v7275_v2 }
0x516b   :  { %9086 = vmatprep.mubr.msk.f32.mxu1 %vm863_vm6, %v7451_v36  ;;  %9085 = vmatpush3.msk.msra.mxu1 %vm867_vm4, %v37_v27 }
0x523d   :  { %v7345_v5 = vpop.f32.mrb[92].mxu1 }
0x523e   :  { %v7346_v51 = vadd.f32 %v9639_v11, %v7345_v5  ;;  %v9072_v32 = vpop.f32.mrb[93].mxu1 }
0x5240   :  { %v7350_v37 = vmin.f32 %v7346_v51, 0.0  ;;  %vm7349_vm12 = vcmp.gt.f32.partialorder %v7346_v51, 0.0 }
0x5242   :  { %v7351_v35 = vmul.f32 1.442695, %v7350_v37 }
0x5244   :  { %9631 = vpow2.f32 %v7351_v35 }
0x524e   :  { %v9632_v39 = vpop.eup %9631 }
0x524f   :  { %v7822_v58 = vadd.f32 -1.0, %v9632_v39 }
0x5251   :  { %v7354_v40 = vsel %vm7349_vm12, %v7346_v51, %v7822_v58 }
0x5252   :  { %9082 = vmatmul.mubr.msk.f32.vlgmr.msra.gmra.mrb[92].mxu0 %vm141_vm3, %v7354_v40 }
0x5253   :  { %9493 = vmatpush3.bf16.msra.mxu0 %v9490_v44 }
0x5254   :  { %9495 = vmatprep.subr.bf16.mxu0 %v9494_v55 }
0x5257   :  { %9497 = vmatpush3.bf16.msra.mxu0 %v9494_v55 }
0x5325   :  { %v7424_v45 = vpop.f32.mrb[92].mxu0 }
0x5326   :  { %v7425_v43 = vadd.f32 %v9640_v12, %v7424_v45  ;;  %v9083_v4 = vpop.f32.mrb[93].mxu0 }
0x5328   :  { %v7432_v29 = vadd.f32 %v7431_v22, %v7425_v43 }
0x532a   :  { %v7433_v46 = vmul.f32 0.023809524, %v7432_v29 }
0x532c   :  { %v7434_v50 = vadd.f32 %v7433_v46, %v10499_v56 }
0x532e   :  { %v7446_v18 = vrot.slane %v7434_v50, 2 }
0x5330   :  { %v7454_v53 = vsel %vm7450_vm11, %v7453_v17, %v7446_v18 }
0x5331   :  { %9087 = vmatmul.mubr.msk.f32.vlgmr.msra.gmra.mrb[94].mxu1 %vm863_vm6, %v7454_v53 }
0x5404   :  { %v9088_v56 = vpop.f32.mrb[94].mxu1 }
0x5405   :  { %v7540_v54 = vadd.f32 %v9088_v56, %v7824_v19  ;;  %v7534_v57 = vpop.f32.mrb[95].mxu1 }
0x5406   :  { %v7535_v47 = vadd.f32 %v7824_v19, %v7534_v57 }
0x5407   :  { %v7544_v59 = vmax.f32 %v7540_v54, 0.0 }
0x5408   :  { %v7543_v11 = vmax.f32 %v7535_v47, 0.0 }
0x540a   :  { %9097 = vmatprep.mubr.msk.f32.mxu0 %vm141_vm3, %v7543_v11 }
0x540b   :  { %9098 = vmatmul.mubr.msk.f32.vlgmr.msra.gmra.mrb[94].mxu0 %vm141_vm3, %v7544_v59 }
0x54de   :  { %v9099_v61 = vpop.f32.mrb[94].mxu0 }
0x54df   :  { %v7627_v62 = vadd.f32 %v9099_v61, %v7828_v60  ;;  %v7621_v63 = vpop.f32.mrb[95].mxu0 }
0x54e0   :  { %v7622_v7 = vadd.f32 %v7828_v60, %v7621_v63 }
0x54e1   :  { %7631 = vst.msk [vmem:[%s10650_s4 + $0x8] sm:$0xff] %vm55_vm1, %v7627_v62 }
0x54e2   :  { %7630 = vst.msk [vmem:[%s10650_s4] sm:$0xff] %vm55_vm1, %v7622_v7 }

</bundles_post_ra>
